<compile_context>
chip_gen: v7x
topology: tpu7x:2x2x1
jax: 0.10.0
libtpu: 0.0.40
codegen_flags: <defaults>
</compile_context>

<pallas_src>
import functools

import jax
import jax.numpy as jnp
from jax.experimental import pallas as pl
from jax.experimental.pallas import tpu as pltpu

# ----------------------------- config (small synthetic T5) -----------------------------
VOCAB = 256
D_MODEL = 64
N_HEADS = 4
D_HEAD = 16          # inner dim per head (N_HEADS * D_HEAD = 64)
D_FF = 128
N_LAYERS = 2
SEQ = 16             # "max_length" analogue
BATCH = 2
PAD_ID = 0
REL_BUCKETS = 32
REL_MAX_DIST = 128
EPS = 1e-6
NEG_BIAS = -1e9      # additive mask value for padded keys


# ----------------------------- fused encoder kernel -----------------------------
def _encoder_kernel(x_ref, posb_ref, maskb_ref,
                    attn_ln_ref, wq_ref, wk_ref, wv_ref, wo_ref,
                    ffn_ln_ref, wi_ref, woff_ref, fln_ref,
                    o_ref, *, n_layers, n_heads, d_head, batch, seq):
    """Whole T5 encoder stack on a (B*S, D) activation slab resident in VMEM."""
    f32 = jnp.float32
    x = x_ref[...]                                   # (B*S, D)

    def rmsnorm(h, w):                               # T5LayerNorm: no mean, no bias
        var = jnp.mean(h * h, axis=-1, keepdims=True)
        return h * jax.lax.rsqrt(var + EPS) * w

    # Shared (across layers) additive attention bias blocks, one per (batch, head):
    # relative-position bias + key padding mask.  Hoisted out of the layer loop.
    bias_blocks = [posb_ref[h] + maskb_ref[b]        # (S, S) + (1, S) -> (S, S)
                   for b in range(batch) for h in range(n_heads)]

    for l in range(n_layers):                        # static unroll over layers
        # ---------------- self-attention sub-layer ----------------
        normed = rmsnorm(x, attn_ln_ref[l])          # (BS, D)
        q = jnp.dot(normed, wq_ref[l], preferred_element_type=f32)   # (BS, H*Dh)
        k = jnp.dot(normed, wk_ref[l], preferred_element_type=f32)
        v = jnp.dot(normed, wv_ref[l], preferred_element_type=f32)

        # All (batch, head) score blocks stacked along rows -> one softmax slab.
        score_blocks = []
        for b in range(batch):
            rows = slice(b * seq, (b + 1) * seq)
            qb, kb = q[rows], k[rows]
            for h in range(n_heads):
                cols = slice(h * d_head, (h + 1) * d_head)
                # T5 attention is NOT scaled by 1/sqrt(d_head)
                score_blocks.append(
                    jnp.dot(qb[:, cols], kb[:, cols].T, preferred_element_type=f32)
                    + bias_blocks[b * n_heads + h])
        s_all = jnp.concatenate(score_blocks, axis=0)                 # (B*H*S, S)
        s_all = s_all - jnp.max(s_all, axis=-1, keepdims=True)
        p_all = jnp.exp(s_all)
        p_all = p_all * pl.reciprocal(jnp.sum(p_all, axis=-1, keepdims=True),
                                      approx=True)

        # Context per (batch, head), concatenated back to (BS, H*Dh), then a
        # single output projection (instead of 4 per-head wo matmuls).
        ctx_rows = []
        for b in range(batch):
            rows = slice(b * seq, (b + 1) * seq)
            vb = v[rows]
            heads = []
            for h in range(n_heads):
                blk = (b * n_heads + h) * seq
                cols = slice(h * d_head, (h + 1) * d_head)
                heads.append(jnp.dot(p_all[blk:blk + seq], vb[:, cols],
                                     preferred_element_type=f32))      # (S, Dh)
            ctx_rows.append(jnp.concatenate(heads, axis=-1))            # (S, H*Dh)
        ctx = jnp.concatenate(ctx_rows, axis=0)                         # (BS, H*Dh)
        x = x + jnp.dot(ctx, wo_ref[l], preferred_element_type=f32)     # residual

        # ---------------- feed-forward sub-layer (DenseReluDense) ----------------
        normed = rmsnorm(x, ffn_ln_ref[l])
        hmid = jnp.maximum(jnp.dot(normed, wi_ref[l], preferred_element_type=f32), 0.0)
        x = x + jnp.dot(hmid, woff_ref[l], preferred_element_type=f32)  # residual

    # ---------------- final RMSNorm ----------------
    o_ref[...] = rmsnorm(x, fln_ref[...])


def encoder_fused(x, pos_bias, mask_bias, params):
    """Single pallas_call over the whole encoder; all weights resident in VMEM."""
    BS, D = x.shape
    H, S, _ = pos_bias.shape
    B = BS // S
    L, _, HD = params["wq"].shape
    F = params["wi"].shape[-1]

    def full(shape):
        return pl.BlockSpec(shape, lambda i, _n=len(shape): (0,) * _n)

    kern = functools.partial(_encoder_kernel, n_layers=L, n_heads=H,
                             d_head=HD // H, batch=B, seq=S)
    return pl.pallas_call(
        kern,
        out_shape=jax.ShapeDtypeStruct((BS, D), jnp.float32),
        grid=(1,),
        in_specs=[
            full((BS, D)),          # x (embedded tokens, flattened batch*seq)
            full((H, S, S)),        # shared relative-position bias
            full((B, 1, S)),        # additive key padding mask
            full((L, 1, D)),        # attn layer-norm weights
            full((L, D, HD)),       # wq
            full((L, D, HD)),       # wk
            full((L, D, HD)),       # wv
            full((L, HD, D)),       # wo
            full((L, 1, D)),        # ffn layer-norm weights
            full((L, D, F)),        # wi
            full((L, F, D)),        # wo_ff
            full((1, D)),           # final layer-norm weight
        ],
        out_specs=full((BS, D)),
        compiler_params=pltpu.CompilerParams(dimension_semantics=("arbitrary",)),
    )(x, pos_bias, mask_bias,
      params["attn_ln"], params["wq"], params["wk"], params["wv"], params["wo"],
      params["ffn_ln"], params["wi"], params["wo_ff"], params["final_ln"])


# ----------------------------- T5 glue (plain JAX) -----------------------------
def _relative_position_bucket(relative_position, num_buckets=REL_BUCKETS,
                              max_distance=REL_MAX_DIST):
    """T5's bidirectional relative-position bucketing (integer index math)."""
    num_buckets = num_buckets // 2
    relative_buckets = jnp.where(relative_position > 0, num_buckets, 0)
    relative_position = jnp.abs(relative_position)
    max_exact = num_buckets // 2
    is_small = relative_position < max_exact
    safe_rel = jnp.maximum(relative_position, 1).astype(jnp.float32)
    rel_if_large = max_exact + (
        jnp.log(safe_rel / max_exact) / jnp.log(max_distance / max_exact)
        * (num_buckets - max_exact)
    ).astype(jnp.int32)
    rel_if_large = jnp.minimum(rel_if_large, num_buckets - 1)
    relative_buckets = relative_buckets + jnp.where(is_small, relative_position, rel_if_large)
    return relative_buckets


def compute_position_bias(rel_bias_table, seq_len):
    ctx = jnp.arange(seq_len)[:, None]
    mem = jnp.arange(seq_len)[None, :]
    buckets = _relative_position_bucket(mem - ctx)              # (S, S)
    values = jnp.take(rel_bias_table, buckets, axis=0)          # (S, S, H)
    return jnp.transpose(values, (2, 0, 1))                     # (H, S, S)


def init_params(key):
    def nrm(k, shape, scale=0.02):
        return scale * jax.random.normal(k, shape, dtype=jnp.float32)

    keys = iter(jax.random.split(key, 8))
    HD = N_HEADS * D_HEAD
    return {
        "embedding": nrm(next(keys), (VOCAB, D_MODEL), 1.0),
        "rel_bias": nrm(next(keys), (REL_BUCKETS, N_HEADS)),
        "attn_ln": jnp.ones((N_LAYERS, 1, D_MODEL), jnp.float32),
        "wq": nrm(next(keys), (N_LAYERS, D_MODEL, HD)),
        "wk": nrm(next(keys), (N_LAYERS, D_MODEL, HD)),
        "wv": nrm(next(keys), (N_LAYERS, D_MODEL, HD)),
        "wo": nrm(next(keys), (N_LAYERS, HD, D_MODEL)),
        "ffn_ln": jnp.ones((N_LAYERS, 1, D_MODEL), jnp.float32),
        "wi": nrm(next(keys), (N_LAYERS, D_MODEL, D_FF)),
        "wo_ff": nrm(next(keys), (N_LAYERS, D_FF, D_MODEL)),
        "final_ln": jnp.ones((1, D_MODEL), jnp.float32),
    }


def frozen_t5_forward(tokens, params):
    """Mirrors FrozenT5.forward: returns (tokens, last_hidden_state)."""
    B, S = tokens.shape
    # embedding lookup (gather) -- host/JAX glue, same as original wrapper
    x = jnp.take(params["embedding"], tokens, axis=0).astype(jnp.float32)   # (B, S, D)
    x = x.reshape(B * S, D_MODEL)                                            # lane/sublane slab

    # attention_mask = tokens != pad_token_id, folded into an additive key bias
    mask_bias = jnp.where(tokens == PAD_ID, NEG_BIAS, 0.0).astype(jnp.float32)
    mask_bias = mask_bias.reshape(B, 1, S)                                   # (B, 1, S)
    pos_bias = compute_position_bias(params["rel_bias"], S)                  # (H, S, S)

    z = encoder_fused(x, pos_bias, mask_bias, params)                        # (B*S, D)
    return tokens, z.reshape(B, S, D_MODEL)


# ----------------------------- main -----------------------------
if __name__ == "__main__":
    key = jax.random.PRNGKey(0)
    k_tok, k_par = jax.random.split(key)

    # deterministic synthetic token ids with trailing padding to exercise the mask
    tokens = jax.random.randint(k_tok, (BATCH, SEQ), 1, VOCAB, dtype=jnp.int32)
    tokens = tokens.at[:, -4:].set(PAD_ID)

    params = init_params(k_par)

    # TODO(synk): text -> token ids (SentencePiece tokenizer) and pretrained HF
    # weight loading have no Pallas equivalent; synthetic tokens/weights used.
    out_tokens, z = jax.jit(frozen_t5_forward)(tokens, params)
    jax.block_until_ready(z)

    assert out_tokens.shape == (BATCH, SEQ)
    assert z.shape == (BATCH, SEQ, D_MODEL)
    assert z.dtype == jnp.float32
    print("KERNEL_OK")
</pallas_src>

<mosaic_0001>
module attributes {stable_mosaic.version = 11 : i64} {
  func.func @_encoder_kernel(%arg0: i32, %arg1: memref<32x64xf32, #tpu.memory_space<vmem>>, %arg2: memref<4x16x16xf32, #tpu.memory_space<vmem>>, %arg3: memref<2x1x16xf32, #tpu.memory_space<vmem>>, %arg4: memref<2x1x64xf32, #tpu.memory_space<vmem>>, %arg5: memref<2x64x64xf32, #tpu.memory_space<vmem>>, %arg6: memref<2x64x64xf32, #tpu.memory_space<vmem>>, %arg7: memref<2x64x64xf32, #tpu.memory_space<vmem>>, %arg8: memref<2x64x64xf32, #tpu.memory_space<vmem>>, %arg9: memref<2x1x64xf32, #tpu.memory_space<vmem>>, %arg10: memref<2x64x128xf32, #tpu.memory_space<vmem>>, %arg11: memref<2x128x64xf32, #tpu.memory_space<vmem>>, %arg12: memref<1x64xf32, #tpu.memory_space<vmem>>, %arg13: memref<32x64xf32, #tpu.memory_space<vmem>>) attributes {dimension_semantics = [#tpu.dimension_semantics<arbitrary>], iteration_bounds = array<i64: 1>, scalar_prefetch = 0 : i64, scratch_operands = 0 : i64, tpu.core_type = #tpu.core_type<tc>, window_params = [{pipeline_mode = #tpu.pipeline_mode<synchronous>, transform_indices = @transform_0, window_bounds = array<i64: 32, 64>}, {pipeline_mode = #tpu.pipeline_mode<synchronous>, transform_indices = @transform_1, window_bounds = array<i64: 4, 16, 16>}, {pipeline_mode = #tpu.pipeline_mode<synchronous>, transform_indices = @transform_2, window_bounds = array<i64: 2, 1, 16>}, {pipeline_mode = #tpu.pipeline_mode<synchronous>, transform_indices = @transform_3, window_bounds = array<i64: 2, 1, 64>}, {pipeline_mode = #tpu.pipeline_mode<synchronous>, transform_indices = @transform_4, window_bounds = array<i64: 2, 64, 64>}, {pipeline_mode = #tpu.pipeline_mode<synchronous>, transform_indices = @transform_5, window_bounds = array<i64: 2, 64, 64>}, {pipeline_mode = #tpu.pipeline_mode<synchronous>, transform_indices = @transform_6, window_bounds = array<i64: 2, 64, 64>}, {pipeline_mode = #tpu.pipeline_mode<synchronous>, transform_indices = @transform_7, window_bounds = array<i64: 2, 64, 64>}, {pipeline_mode = #tpu.pipeline_mode<synchronous>, transform_indices = @transform_8, window_bounds = array<i64: 2, 1, 64>}, {pipeline_mode = #tpu.pipeline_mode<synchronous>, transform_indices = @transform_9, window_bounds = array<i64: 2, 64, 128>}, {pipeline_mode = #tpu.pipeline_mode<synchronous>, transform_indices = @transform_10, window_bounds = array<i64: 2, 128, 64>}, {pipeline_mode = #tpu.pipeline_mode<synchronous>, transform_indices = @transform_11, window_bounds = array<i64: 1, 64>}, {pipeline_mode = #tpu.pipeline_mode<synchronous>, transform_indices = @transform_12, window_bounds = array<i64: 32, 64>}]} {
    %c0 = arith.constant 0 : index
    %c0_0 = arith.constant 0 : index
    %0 = vector.load %arg1[%c0, %c0_0] : memref<32x64xf32, #tpu.memory_space<vmem>>, vector<32x64xf32>
    %c0_1 = arith.constant 0 : index
    %c0_2 = arith.constant 0 : index
    %c0_3 = arith.constant 0 : index
    %1 = vector.load %arg2[%c0_1, %c0_2, %c0_3] : memref<4x16x16xf32, #tpu.memory_space<vmem>>, vector<1x16x16xf32>
    %2 = vector.shape_cast %1 : vector<1x16x16xf32> to vector<16x16xf32>
    %c0_4 = arith.constant 0 : index
    %c0_5 = arith.constant 0 : index
    %c0_6 = arith.constant 0 : index
    %3 = vector.load %arg3[%c0_4, %c0_5, %c0_6] : memref<2x1x16xf32, #tpu.memory_space<vmem>>, vector<1x1x16xf32>
    %4 = vector.shape_cast %3 : vector<1x1x16xf32> to vector<1x16xf32>
    %5 = vector.broadcast %4 : vector<1x16xf32> to vector<16x16xf32>
    %6 = arith.addf %2, %5 : vector<16x16xf32>
    %c1 = arith.constant 1 : index
    %c0_7 = arith.constant 0 : index
    %c0_8 = arith.constant 0 : index
    %7 = vector.load %arg2[%c1, %c0_7, %c0_8] : memref<4x16x16xf32, #tpu.memory_space<vmem>>, vector<1x16x16xf32>
    %8 = vector.shape_cast %7 : vector<1x16x16xf32> to vector<16x16xf32>
    %c0_9 = arith.constant 0 : index
    %c0_10 = arith.constant 0 : index
    %c0_11 = arith.constant 0 : index
    %9 = vector.load %arg3[%c0_9, %c0_10, %c0_11] : memref<2x1x16xf32, #tpu.memory_space<vmem>>, vector<1x1x16xf32>
    %10 = vector.shape_cast %9 : vector<1x1x16xf32> to vector<1x16xf32>
    %11 = vector.broadcast %10 : vector<1x16xf32> to vector<16x16xf32>
    %12 = arith.addf %8, %11 : vector<16x16xf32>
    %c2 = arith.constant 2 : index
    %c0_12 = arith.constant 0 : index
    %c0_13 = arith.constant 0 : index
    %13 = vector.load %arg2[%c2, %c0_12, %c0_13] : memref<4x16x16xf32, #tpu.memory_space<vmem>>, vector<1x16x16xf32>
    %14 = vector.shape_cast %13 : vector<1x16x16xf32> to vector<16x16xf32>
    %c0_14 = arith.constant 0 : index
    %c0_15 = arith.constant 0 : index
    %c0_16 = arith.constant 0 : index
    %15 = vector.load %arg3[%c0_14, %c0_15, %c0_16] : memref<2x1x16xf32, #tpu.memory_space<vmem>>, vector<1x1x16xf32>
    %16 = vector.shape_cast %15 : vector<1x1x16xf32> to vector<1x16xf32>
    %17 = vector.broadcast %16 : vector<1x16xf32> to vector<16x16xf32>
    %18 = arith.addf %14, %17 : vector<16x16xf32>
    %c3 = arith.constant 3 : index
    %c0_17 = arith.constant 0 : index
    %c0_18 = arith.constant 0 : index
    %19 = vector.load %arg2[%c3, %c0_17, %c0_18] : memref<4x16x16xf32, #tpu.memory_space<vmem>>, vector<1x16x16xf32>
    %20 = vector.shape_cast %19 : vector<1x16x16xf32> to vector<16x16xf32>
    %c0_19 = arith.constant 0 : index
    %c0_20 = arith.constant 0 : index
    %c0_21 = arith.constant 0 : index
    %21 = vector.load %arg3[%c0_19, %c0_20, %c0_21] : memref<2x1x16xf32, #tpu.memory_space<vmem>>, vector<1x1x16xf32>
    %22 = vector.shape_cast %21 : vector<1x1x16xf32> to vector<1x16xf32>
    %23 = vector.broadcast %22 : vector<1x16xf32> to vector<16x16xf32>
    %24 = arith.addf %20, %23 : vector<16x16xf32>
    %c0_22 = arith.constant 0 : index
    %c0_23 = arith.constant 0 : index
    %c0_24 = arith.constant 0 : index
    %25 = vector.load %arg2[%c0_22, %c0_23, %c0_24] : memref<4x16x16xf32, #tpu.memory_space<vmem>>, vector<1x16x16xf32>
    %26 = vector.shape_cast %25 : vector<1x16x16xf32> to vector<16x16xf32>
    %c1_25 = arith.constant 1 : index
    %c0_26 = arith.constant 0 : index
    %c0_27 = arith.constant 0 : index
    %27 = vector.load %arg3[%c1_25, %c0_26, %c0_27] : memref<2x1x16xf32, #tpu.memory_space<vmem>>, vector<1x1x16xf32>
    %28 = vector.shape_cast %27 : vector<1x1x16xf32> to vector<1x16xf32>
    %29 = vector.broadcast %28 : vector<1x16xf32> to vector<16x16xf32>
    %30 = arith.addf %26, %29 : vector<16x16xf32>
    %c1_28 = arith.constant 1 : index
    %c0_29 = arith.constant 0 : index
    %c0_30 = arith.constant 0 : index
    %31 = vector.load %arg2[%c1_28, %c0_29, %c0_30] : memref<4x16x16xf32, #tpu.memory_space<vmem>>, vector<1x16x16xf32>
    %32 = vector.shape_cast %31 : vector<1x16x16xf32> to vector<16x16xf32>
    %c1_31 = arith.constant 1 : index
    %c0_32 = arith.constant 0 : index
    %c0_33 = arith.constant 0 : index
    %33 = vector.load %arg3[%c1_31, %c0_32, %c0_33] : memref<2x1x16xf32, #tpu.memory_space<vmem>>, vector<1x1x16xf32>
    %34 = vector.shape_cast %33 : vector<1x1x16xf32> to vector<1x16xf32>
    %35 = vector.broadcast %34 : vector<1x16xf32> to vector<16x16xf32>
    %36 = arith.addf %32, %35 : vector<16x16xf32>
    %c2_34 = arith.constant 2 : index
    %c0_35 = arith.constant 0 : index
    %c0_36 = arith.constant 0 : index
    %37 = vector.load %arg2[%c2_34, %c0_35, %c0_36] : memref<4x16x16xf32, #tpu.memory_space<vmem>>, vector<1x16x16xf32>
    %38 = vector.shape_cast %37 : vector<1x16x16xf32> to vector<16x16xf32>
    %c1_37 = arith.constant 1 : index
    %c0_38 = arith.constant 0 : index
    %c0_39 = arith.constant 0 : index
    %39 = vector.load %arg3[%c1_37, %c0_38, %c0_39] : memref<2x1x16xf32, #tpu.memory_space<vmem>>, vector<1x1x16xf32>
    %40 = vector.shape_cast %39 : vector<1x1x16xf32> to vector<1x16xf32>
    %41 = vector.broadcast %40 : vector<1x16xf32> to vector<16x16xf32>
    %42 = arith.addf %38, %41 : vector<16x16xf32>
    %c3_40 = arith.constant 3 : index
    %c0_41 = arith.constant 0 : index
    %c0_42 = arith.constant 0 : index
    %43 = vector.load %arg2[%c3_40, %c0_41, %c0_42] : memref<4x16x16xf32, #tpu.memory_space<vmem>>, vector<1x16x16xf32>
    %44 = vector.shape_cast %43 : vector<1x16x16xf32> to vector<16x16xf32>
    %c1_43 = arith.constant 1 : index
    %c0_44 = arith.constant 0 : index
    %c0_45 = arith.constant 0 : index
    %45 = vector.load %arg3[%c1_43, %c0_44, %c0_45] : memref<2x1x16xf32, #tpu.memory_space<vmem>>, vector<1x1x16xf32>
    %46 = vector.shape_cast %45 : vector<1x1x16xf32> to vector<1x16xf32>
    %47 = vector.broadcast %46 : vector<1x16xf32> to vector<16x16xf32>
    %48 = arith.addf %44, %47 : vector<16x16xf32>
    %c0_46 = arith.constant 0 : index
    %c0_47 = arith.constant 0 : index
    %c0_48 = arith.constant 0 : index
    %49 = vector.load %arg4[%c0_46, %c0_47, %c0_48] : memref<2x1x64xf32, #tpu.memory_space<vmem>>, vector<1x1x64xf32>
    %50 = vector.shape_cast %49 : vector<1x1x64xf32> to vector<1x64xf32>
    %51 = arith.mulf %0, %0 : vector<32x64xf32>
    %cst = arith.constant dense<0.000000e+00> : vector<32xf32>
    %52 = vector.multi_reduction <add>, %51, %cst [1] : vector<32x64xf32> to vector<32xf32>
    %53 = vector.shape_cast %52 : vector<32xf32> to vector<32x1xf32>
    %cst_49 = arith.constant 6.400000e+01 : f32
    %54 = vector.broadcast %cst_49 : f32 to vector<32x1xf32>
    %55 = arith.divf %53, %54 : vector<32x1xf32>
    %cst_50 = arith.constant 9.99999997E-7 : f32
    %56 = vector.broadcast %cst_50 : f32 to vector<32x1xf32>
    %57 = arith.addf %55, %56 : vector<32x1xf32>
    %58 = math.rsqrt %57 : vector<32x1xf32>
    %59 = vector.broadcast %58 : vector<32x1xf32> to vector<32x64xf32>
    %60 = arith.mulf %0, %59 : vector<32x64xf32>
    %61 = vector.broadcast %50 : vector<1x64xf32> to vector<32x64xf32>
    %62 = arith.mulf %60, %61 : vector<32x64xf32>
    %c0_51 = arith.constant 0 : index
    %c0_52 = arith.constant 0 : index
    %c0_53 = arith.constant 0 : index
    %63 = vector.load %arg5[%c0_51, %c0_52, %c0_53] : memref<2x64x64xf32, #tpu.memory_space<vmem>>, vector<1x64x64xf32>
    %64 = vector.shape_cast %63 : vector<1x64x64xf32> to vector<64x64xf32>
    %cst_54 = arith.constant dense<0.000000e+00> : vector<32x64xf32>
    %65 = tpu.matmul %62, %64, %cst_54 {dimension_numbers = #tpu.dot_dimension_numbers<[1], [0], [0], [1], [0, 0, 1, 1], [], []>} : vector<32x64xf32>, vector<64x64xf32>, vector<32x64xf32> -> vector<32x64xf32>
    %c0_55 = arith.constant 0 : index
    %c0_56 = arith.constant 0 : index
    %c0_57 = arith.constant 0 : index
    %66 = vector.load %arg6[%c0_55, %c0_56, %c0_57] : memref<2x64x64xf32, #tpu.memory_space<vmem>>, vector<1x64x64xf32>
    %67 = vector.shape_cast %66 : vector<1x64x64xf32> to vector<64x64xf32>
    %cst_58 = arith.constant dense<0.000000e+00> : vector<32x64xf32>
    %68 = tpu.matmul %62, %67, %cst_58 {dimension_numbers = #tpu.dot_dimension_numbers<[1], [0], [0], [1], [0, 0, 1, 1], [], []>} : vector<32x64xf32>, vector<64x64xf32>, vector<32x64xf32> -> vector<32x64xf32>
    %c0_59 = arith.constant 0 : index
    %c0_60 = arith.constant 0 : index
    %c0_61 = arith.constant 0 : index
    %69 = vector.load %arg7[%c0_59, %c0_60, %c0_61] : memref<2x64x64xf32, #tpu.memory_space<vmem>>, vector<1x64x64xf32>
    %70 = vector.shape_cast %69 : vector<1x64x64xf32> to vector<64x64xf32>
    %cst_62 = arith.constant dense<0.000000e+00> : vector<32x64xf32>
    %71 = tpu.matmul %62, %70, %cst_62 {dimension_numbers = #tpu.dot_dimension_numbers<[1], [0], [0], [1], [0, 0, 1, 1], [], []>} : vector<32x64xf32>, vector<64x64xf32>, vector<32x64xf32> -> vector<32x64xf32>
    %72 = vector.extract_strided_slice %65 {offsets = [0, 0], sizes = [16, 64], strides = [1, 1]} : vector<32x64xf32> to vector<16x64xf32>
    %73 = vector.extract_strided_slice %68 {offsets = [0, 0], sizes = [16, 64], strides = [1, 1]} : vector<32x64xf32> to vector<16x64xf32>
    %74 = vector.extract_strided_slice %72 {offsets = [0, 0], sizes = [16, 16], strides = [1, 1]} : vector<16x64xf32> to vector<16x16xf32>
    %75 = vector.extract_strided_slice %73 {offsets = [0, 0], sizes = [16, 16], strides = [1, 1]} : vector<16x64xf32> to vector<16x16xf32>
    %76 = tpu.transpose %75, [1, 0] : vector<16x16xf32> -> vector<16x16xf32>
    %cst_63 = arith.constant dense<0.000000e+00> : vector<16x16xf32>
    %77 = tpu.matmul %74, %76, %cst_63 {dimension_numbers = #tpu.dot_dimension_numbers<[1], [0], [0], [1], [0, 0, 1, 1], [], []>} : vector<16x16xf32>, vector<16x16xf32>, vector<16x16xf32> -> vector<16x16xf32>
    %78 = arith.addf %77, %6 : vector<16x16xf32>
    %79 = vector.extract_strided_slice %72 {offsets = [0, 16], sizes = [16, 16], strides = [1, 1]} : vector<16x64xf32> to vector<16x16xf32>
    %80 = vector.extract_strided_slice %73 {offsets = [0, 16], sizes = [16, 16], strides = [1, 1]} : vector<16x64xf32> to vector<16x16xf32>
    %81 = tpu.transpose %80, [1, 0] : vector<16x16xf32> -> vector<16x16xf32>
    %cst_64 = arith.constant dense<0.000000e+00> : vector<16x16xf32>
    %82 = tpu.matmul %79, %81, %cst_64 {dimension_numbers = #tpu.dot_dimension_numbers<[1], [0], [0], [1], [0, 0, 1, 1], [], []>} : vector<16x16xf32>, vector<16x16xf32>, vector<16x16xf32> -> vector<16x16xf32>
    %83 = arith.addf %82, %12 : vector<16x16xf32>
    %84 = vector.extract_strided_slice %72 {offsets = [0, 32], sizes = [16, 16], strides = [1, 1]} : vector<16x64xf32> to vector<16x16xf32>
    %85 = vector.extract_strided_slice %73 {offsets = [0, 32], sizes = [16, 16], strides = [1, 1]} : vector<16x64xf32> to vector<16x16xf32>
    %86 = tpu.transpose %85, [1, 0] : vector<16x16xf32> -> vector<16x16xf32>
    %cst_65 = arith.constant dense<0.000000e+00> : vector<16x16xf32>
    %87 = tpu.matmul %84, %86, %cst_65 {dimension_numbers = #tpu.dot_dimension_numbers<[1], [0], [0], [1], [0, 0, 1, 1], [], []>} : vector<16x16xf32>, vector<16x16xf32>, vector<16x16xf32> -> vector<16x16xf32>
    %88 = arith.addf %87, %18 : vector<16x16xf32>
    %89 = vector.extract_strided_slice %72 {offsets = [0, 48], sizes = [16, 16], strides = [1, 1]} : vector<16x64xf32> to vector<16x16xf32>
    %90 = vector.extract_strided_slice %73 {offsets = [0, 48], sizes = [16, 16], strides = [1, 1]} : vector<16x64xf32> to vector<16x16xf32>
    %91 = tpu.transpose %90, [1, 0] : vector<16x16xf32> -> vector<16x16xf32>
    %cst_66 = arith.constant dense<0.000000e+00> : vector<16x16xf32>
    %92 = tpu.matmul %89, %91, %cst_66 {dimension_numbers = #tpu.dot_dimension_numbers<[1], [0], [0], [1], [0, 0, 1, 1], [], []>} : vector<16x16xf32>, vector<16x16xf32>, vector<16x16xf32> -> vector<16x16xf32>
    %93 = arith.addf %92, %24 : vector<16x16xf32>
    %94 = vector.extract_strided_slice %65 {offsets = [16, 0], sizes = [16, 64], strides = [1, 1]} : vector<32x64xf32> to vector<16x64xf32>
    %95 = vector.extract_strided_slice %68 {offsets = [16, 0], sizes = [16, 64], strides = [1, 1]} : vector<32x64xf32> to vector<16x64xf32>
    %96 = vector.extract_strided_slice %94 {offsets = [0, 0], sizes = [16, 16], strides = [1, 1]} : vector<16x64xf32> to vector<16x16xf32>
    %97 = vector.extract_strided_slice %95 {offsets = [0, 0], sizes = [16, 16], strides = [1, 1]} : vector<16x64xf32> to vector<16x16xf32>
    %98 = tpu.transpose %97, [1, 0] : vector<16x16xf32> -> vector<16x16xf32>
    %cst_67 = arith.constant dense<0.000000e+00> : vector<16x16xf32>
    %99 = tpu.matmul %96, %98, %cst_67 {dimension_numbers = #tpu.dot_dimension_numbers<[1], [0], [0], [1], [0, 0, 1, 1], [], []>} : vector<16x16xf32>, vector<16x16xf32>, vector<16x16xf32> -> vector<16x16xf32>
    %100 = arith.addf %99, %30 : vector<16x16xf32>
    %101 = vector.extract_strided_slice %94 {offsets = [0, 16], sizes = [16, 16], strides = [1, 1]} : vector<16x64xf32> to vector<16x16xf32>
    %102 = vector.extract_strided_slice %95 {offsets = [0, 16], sizes = [16, 16], strides = [1, 1]} : vector<16x64xf32> to vector<16x16xf32>
    %103 = tpu.transpose %102, [1, 0] : vector<16x16xf32> -> vector<16x16xf32>
    %cst_68 = arith.constant dense<0.000000e+00> : vector<16x16xf32>
    %104 = tpu.matmul %101, %103, %cst_68 {dimension_numbers = #tpu.dot_dimension_numbers<[1], [0], [0], [1], [0, 0, 1, 1], [], []>} : vector<16x16xf32>, vector<16x16xf32>, vector<16x16xf32> -> vector<16x16xf32>
    %105 = arith.addf %104, %36 : vector<16x16xf32>
    %106 = vector.extract_strided_slice %94 {offsets = [0, 32], sizes = [16, 16], strides = [1, 1]} : vector<16x64xf32> to vector<16x16xf32>
    %107 = vector.extract_strided_slice %95 {offsets = [0, 32], sizes = [16, 16], strides = [1, 1]} : vector<16x64xf32> to vector<16x16xf32>
    %108 = tpu.transpose %107, [1, 0] : vector<16x16xf32> -> vector<16x16xf32>
    %cst_69 = arith.constant dense<0.000000e+00> : vector<16x16xf32>
    %109 = tpu.matmul %106, %108, %cst_69 {dimension_numbers = #tpu.dot_dimension_numbers<[1], [0], [0], [1], [0, 0, 1, 1], [], []>} : vector<16x16xf32>, vector<16x16xf32>, vector<16x16xf32> -> vector<16x16xf32>
    %110 = arith.addf %109, %42 : vector<16x16xf32>
    %111 = vector.extract_strided_slice %94 {offsets = [0, 48], sizes = [16, 16], strides = [1, 1]} : vector<16x64xf32> to vector<16x16xf32>
    %112 = vector.extract_strided_slice %95 {offsets = [0, 48], sizes = [16, 16], strides = [1, 1]} : vector<16x64xf32> to vector<16x16xf32>
    %113 = tpu.transpose %112, [1, 0] : vector<16x16xf32> -> vector<16x16xf32>
    %cst_70 = arith.constant dense<0.000000e+00> : vector<16x16xf32>
    %114 = tpu.matmul %111, %113, %cst_70 {dimension_numbers = #tpu.dot_dimension_numbers<[1], [0], [0], [1], [0, 0, 1, 1], [], []>} : vector<16x16xf32>, vector<16x16xf32>, vector<16x16xf32> -> vector<16x16xf32>
    %115 = arith.addf %114, %48 : vector<16x16xf32>
    %116 = tpu.concatenate %78, %83, %88, %93, %100, %105, %110, %115 in 0 : vector<16x16xf32>, vector<16x16xf32>, vector<16x16xf32>, vector<16x16xf32>, vector<16x16xf32>, vector<16x16xf32>, vector<16x16xf32>, vector<16x16xf32> -> vector<128x16xf32>
    %cst_71 = arith.constant dense<0xFF800000> : vector<128xf32>
    %117 = vector.multi_reduction <maximumf>, %116, %cst_71 [1] : vector<128x16xf32> to vector<128xf32>
    %118 = vector.shape_cast %117 : vector<128xf32> to vector<128x1xf32>
    %119 = vector.broadcast %118 : vector<128x1xf32> to vector<128x16xf32>
    %120 = arith.subf %116, %119 : vector<128x16xf32>
    %121 = math.exp %120 : vector<128x16xf32>
    %cst_72 = arith.constant dense<0.000000e+00> : vector<128xf32>
    %122 = vector.multi_reduction <add>, %121, %cst_72 [1] : vector<128x16xf32> to vector<128xf32>
    %123 = vector.shape_cast %122 : vector<128xf32> to vector<128x1xf32>
    %124 = tpu.reciprocal %123 {approx = true} : vector<128x1xf32> -> vector<128x1xf32>
    %125 = vector.broadcast %124 : vector<128x1xf32> to vector<128x16xf32>
    %126 = arith.mulf %121, %125 : vector<128x16xf32>
    %127 = vector.extract_strided_slice %71 {offsets = [0, 0], sizes = [16, 64], strides = [1, 1]} : vector<32x64xf32> to vector<16x64xf32>
    %128 = vector.extract_strided_slice %126 {offsets = [0, 0], sizes = [16, 16], strides = [1, 1]} : vector<128x16xf32> to vector<16x16xf32>
    %129 = vector.extract_strided_slice %127 {offsets = [0, 0], sizes = [16, 16], strides = [1, 1]} : vector<16x64xf32> to vector<16x16xf32>
    %cst_73 = arith.constant dense<0.000000e+00> : vector<16x16xf32>
    %130 = tpu.matmul %128, %129, %cst_73 {dimension_numbers = #tpu.dot_dimension_numbers<[1], [0], [0], [1], [0, 0, 1, 1], [], []>} : vector<16x16xf32>, vector<16x16xf32>, vector<16x16xf32> -> vector<16x16xf32>
    %131 = vector.extract_strided_slice %126 {offsets = [16, 0], sizes = [16, 16], strides = [1, 1]} : vector<128x16xf32> to vector<16x16xf32>
    %132 = vector.extract_strided_slice %127 {offsets = [0, 16], sizes = [16, 16], strides = [1, 1]} : vector<16x64xf32> to vector<16x16xf32>
    %cst_74 = arith.constant dense<0.000000e+00> : vector<16x16xf32>
    %133 = tpu.matmul %131, %132, %cst_74 {dimension_numbers = #tpu.dot_dimension_numbers<[1], [0], [0], [1], [0, 0, 1, 1], [], []>} : vector<16x16xf32>, vector<16x16xf32>, vector<16x16xf32> -> vector<16x16xf32>
    %134 = vector.extract_strided_slice %126 {offsets = [32, 0], sizes = [16, 16], strides = [1, 1]} : vector<128x16xf32> to vector<16x16xf32>
    %135 = vector.extract_strided_slice %127 {offsets = [0, 32], sizes = [16, 16], strides = [1, 1]} : vector<16x64xf32> to vector<16x16xf32>
    %cst_75 = arith.constant dense<0.000000e+00> : vector<16x16xf32>
    %136 = tpu.matmul %134, %135, %cst_75 {dimension_numbers = #tpu.dot_dimension_numbers<[1], [0], [0], [1], [0, 0, 1, 1], [], []>} : vector<16x16xf32>, vector<16x16xf32>, vector<16x16xf32> -> vector<16x16xf32>
    %137 = vector.extract_strided_slice %126 {offsets = [48, 0], sizes = [16, 16], strides = [1, 1]} : vector<128x16xf32> to vector<16x16xf32>
    %138 = vector.extract_strided_slice %127 {offsets = [0, 48], sizes = [16, 16], strides = [1, 1]} : vector<16x64xf32> to vector<16x16xf32>
    %cst_76 = arith.constant dense<0.000000e+00> : vector<16x16xf32>
    %139 = tpu.matmul %137, %138, %cst_76 {dimension_numbers = #tpu.dot_dimension_numbers<[1], [0], [0], [1], [0, 0, 1, 1], [], []>} : vector<16x16xf32>, vector<16x16xf32>, vector<16x16xf32> -> vector<16x16xf32>
    %140 = tpu.concatenate %130, %133, %136, %139 in 1 : vector<16x16xf32>, vector<16x16xf32>, vector<16x16xf32>, vector<16x16xf32> -> vector<16x64xf32>
    %141 = vector.extract_strided_slice %71 {offsets = [16, 0], sizes = [16, 64], strides = [1, 1]} : vector<32x64xf32> to vector<16x64xf32>
    %142 = vector.extract_strided_slice %126 {offsets = [64, 0], sizes = [16, 16], strides = [1, 1]} : vector<128x16xf32> to vector<16x16xf32>
    %143 = vector.extract_strided_slice %141 {offsets = [0, 0], sizes = [16, 16], strides = [1, 1]} : vector<16x64xf32> to vector<16x16xf32>
    %cst_77 = arith.constant dense<0.000000e+00> : vector<16x16xf32>
    %144 = tpu.matmul %142, %143, %cst_77 {dimension_numbers = #tpu.dot_dimension_numbers<[1], [0], [0], [1], [0, 0, 1, 1], [], []>} : vector<16x16xf32>, vector<16x16xf32>, vector<16x16xf32> -> vector<16x16xf32>
    %145 = vector.extract_strided_slice %126 {offsets = [80, 0], sizes = [16, 16], strides = [1, 1]} : vector<128x16xf32> to vector<16x16xf32>
    %146 = vector.extract_strided_slice %141 {offsets = [0, 16], sizes = [16, 16], strides = [1, 1]} : vector<16x64xf32> to vector<16x16xf32>
    %cst_78 = arith.constant dense<0.000000e+00> : vector<16x16xf32>
    %147 = tpu.matmul %145, %146, %cst_78 {dimension_numbers = #tpu.dot_dimension_numbers<[1], [0], [0], [1], [0, 0, 1, 1], [], []>} : vector<16x16xf32>, vector<16x16xf32>, vector<16x16xf32> -> vector<16x16xf32>
    %148 = vector.extract_strided_slice %126 {offsets = [96, 0], sizes = [16, 16], strides = [1, 1]} : vector<128x16xf32> to vector<16x16xf32>
    %149 = vector.extract_strided_slice %141 {offsets = [0, 32], sizes = [16, 16], strides = [1, 1]} : vector<16x64xf32> to vector<16x16xf32>
    %cst_79 = arith.constant dense<0.000000e+00> : vector<16x16xf32>
    %150 = tpu.matmul %148, %149, %cst_79 {dimension_numbers = #tpu.dot_dimension_numbers<[1], [0], [0], [1], [0, 0, 1, 1], [], []>} : vector<16x16xf32>, vector<16x16xf32>, vector<16x16xf32> -> vector<16x16xf32>
    %151 = vector.extract_strided_slice %126 {offsets = [112, 0], sizes = [16, 16], strides = [1, 1]} : vector<128x16xf32> to vector<16x16xf32>
    %152 = vector.extract_strided_slice %141 {offsets = [0, 48], sizes = [16, 16], strides = [1, 1]} : vector<16x64xf32> to vector<16x16xf32>
    %cst_80 = arith.constant dense<0.000000e+00> : vector<16x16xf32>
    %153 = tpu.matmul %151, %152, %cst_80 {dimension_numbers = #tpu.dot_dimension_numbers<[1], [0], [0], [1], [0, 0, 1, 1], [], []>} : vector<16x16xf32>, vector<16x16xf32>, vector<16x16xf32> -> vector<16x16xf32>
    %154 = tpu.concatenate %144, %147, %150, %153 in 1 : vector<16x16xf32>, vector<16x16xf32>, vector<16x16xf32>, vector<16x16xf32> -> vector<16x64xf32>
    %155 = tpu.concatenate %140, %154 in 0 : vector<16x64xf32>, vector<16x64xf32> -> vector<32x64xf32>
    %c0_81 = arith.constant 0 : index
    %c0_82 = arith.constant 0 : index
    %c0_83 = arith.constant 0 : index
    %156 = vector.load %arg8[%c0_81, %c0_82, %c0_83] : memref<2x64x64xf32, #tpu.memory_space<vmem>>, vector<1x64x64xf32>
    %157 = vector.shape_cast %156 : vector<1x64x64xf32> to vector<64x64xf32>
    %cst_84 = arith.constant dense<0.000000e+00> : vector<32x64xf32>
    %158 = tpu.matmul %155, %157, %cst_84 {dimension_numbers = #tpu.dot_dimension_numbers<[1], [0], [0], [1], [0, 0, 1, 1], [], []>} : vector<32x64xf32>, vector<64x64xf32>, vector<32x64xf32> -> vector<32x64xf32>
    %159 = arith.addf %0, %158 : vector<32x64xf32>
    %c0_85 = arith.constant 0 : index
    %c0_86 = arith.constant 0 : index
    %c0_87 = arith.constant 0 : index
    %160 = vector.load %arg9[%c0_85, %c0_86, %c0_87] : memref<2x1x64xf32, #tpu.memory_space<vmem>>, vector<1x1x64xf32>
    %161 = vector.shape_cast %160 : vector<1x1x64xf32> to vector<1x64xf32>
    %162 = arith.mulf %159, %159 : vector<32x64xf32>
    %cst_88 = arith.constant dense<0.000000e+00> : vector<32xf32>
    %163 = vector.multi_reduction <add>, %162, %cst_88 [1] : vector<32x64xf32> to vector<32xf32>
    %164 = vector.shape_cast %163 : vector<32xf32> to vector<32x1xf32>
    %cst_89 = arith.constant 6.400000e+01 : f32
    %165 = vector.broadcast %cst_89 : f32 to vector<32x1xf32>
    %166 = arith.divf %164, %165 : vector<32x1xf32>
    %cst_90 = arith.constant 9.99999997E-7 : f32
    %167 = vector.broadcast %cst_90 : f32 to vector<32x1xf32>
    %168 = arith.addf %166, %167 : vector<32x1xf32>
    %169 = math.rsqrt %168 : vector<32x1xf32>
    %170 = vector.broadcast %169 : vector<32x1xf32> to vector<32x64xf32>
    %171 = arith.mulf %159, %170 : vector<32x64xf32>
    %172 = vector.broadcast %161 : vector<1x64xf32> to vector<32x64xf32>
    %173 = arith.mulf %171, %172 : vector<32x64xf32>
    %c0_91 = arith.constant 0 : index
    %c0_92 = arith.constant 0 : index
    %c0_93 = arith.constant 0 : index
    %174 = vector.load %arg10[%c0_91, %c0_92, %c0_93] : memref<2x64x128xf32, #tpu.memory_space<vmem>>, vector<1x64x128xf32>
    %175 = vector.shape_cast %174 : vector<1x64x128xf32> to vector<64x128xf32>
    %cst_94 = arith.constant dense<0.000000e+00> : vector<32x128xf32>
    %176 = tpu.matmul %173, %175, %cst_94 {dimension_numbers = #tpu.dot_dimension_numbers<[1], [0], [0], [1], [0, 0, 1, 1], [], []>} : vector<32x64xf32>, vector<64x128xf32>, vector<32x128xf32> -> vector<32x128xf32>
    %cst_95 = arith.constant 0.000000e+00 : f32
    %177 = vector.broadcast %cst_95 : f32 to vector<32x128xf32>
    %178 = arith.maximumf %176, %177 : vector<32x128xf32>
    %c0_96 = arith.constant 0 : index
    %c0_97 = arith.constant 0 : index
    %c0_98 = arith.constant 0 : index
    %179 = vector.load %arg11[%c0_96, %c0_97, %c0_98] : memref<2x128x64xf32, #tpu.memory_space<vmem>>, vector<1x128x64xf32>
    %180 = vector.shape_cast %179 : vector<1x128x64xf32> to vector<128x64xf32>
    %cst_99 = arith.constant dense<0.000000e+00> : vector<32x64xf32>
    %181 = tpu.matmul %178, %180, %cst_99 {dimension_numbers = #tpu.dot_dimension_numbers<[1], [0], [0], [1], [0, 0, 1, 1], [], []>} : vector<32x128xf32>, vector<128x64xf32>, vector<32x64xf32> -> vector<32x64xf32>
    %182 = arith.addf %159, %181 : vector<32x64xf32>
    %c1_100 = arith.constant 1 : index
    %c0_101 = arith.constant 0 : index
    %c0_102 = arith.constant 0 : index
    %183 = vector.load %arg4[%c1_100, %c0_101, %c0_102] : memref<2x1x64xf32, #tpu.memory_space<vmem>>, vector<1x1x64xf32>
    %184 = vector.shape_cast %183 : vector<1x1x64xf32> to vector<1x64xf32>
    %185 = arith.mulf %182, %182 : vector<32x64xf32>
    %cst_103 = arith.constant dense<0.000000e+00> : vector<32xf32>
    %186 = vector.multi_reduction <add>, %185, %cst_103 [1] : vector<32x64xf32> to vector<32xf32>
    %187 = vector.shape_cast %186 : vector<32xf32> to vector<32x1xf32>
    %cst_104 = arith.constant 6.400000e+01 : f32
    %188 = vector.broadcast %cst_104 : f32 to vector<32x1xf32>
    %189 = arith.divf %187, %188 : vector<32x1xf32>
    %cst_105 = arith.constant 9.99999997E-7 : f32
    %190 = vector.broadcast %cst_105 : f32 to vector<32x1xf32>
    %191 = arith.addf %189, %190 : vector<32x1xf32>
    %192 = math.rsqrt %191 : vector<32x1xf32>
    %193 = vector.broadcast %192 : vector<32x1xf32> to vector<32x64xf32>
    %194 = arith.mulf %182, %193 : vector<32x64xf32>
    %195 = vector.broadcast %184 : vector<1x64xf32> to vector<32x64xf32>
    %196 = arith.mulf %194, %195 : vector<32x64xf32>
    %c1_106 = arith.constant 1 : index
    %c0_107 = arith.constant 0 : index
    %c0_108 = arith.constant 0 : index
    %197 = vector.load %arg5[%c1_106, %c0_107, %c0_108] : memref<2x64x64xf32, #tpu.memory_space<vmem>>, vector<1x64x64xf32>
    %198 = vector.shape_cast %197 : vector<1x64x64xf32> to vector<64x64xf32>
    %cst_109 = arith.constant dense<0.000000e+00> : vector<32x64xf32>
    %199 = tpu.matmul %196, %198, %cst_109 {dimension_numbers = #tpu.dot_dimension_numbers<[1], [0], [0], [1], [0, 0, 1, 1], [], []>} : vector<32x64xf32>, vector<64x64xf32>, vector<32x64xf32> -> vector<32x64xf32>
    %c1_110 = arith.constant 1 : index
    %c0_111 = arith.constant 0 : index
    %c0_112 = arith.constant 0 : index
    %200 = vector.load %arg6[%c1_110, %c0_111, %c0_112] : memref<2x64x64xf32, #tpu.memory_space<vmem>>, vector<1x64x64xf32>
    %201 = vector.shape_cast %200 : vector<1x64x64xf32> to vector<64x64xf32>
    %cst_113 = arith.constant dense<0.000000e+00> : vector<32x64xf32>
    %202 = tpu.matmul %196, %201, %cst_113 {dimension_numbers = #tpu.dot_dimension_numbers<[1], [0], [0], [1], [0, 0, 1, 1], [], []>} : vector<32x64xf32>, vector<64x64xf32>, vector<32x64xf32> -> vector<32x64xf32>
    %c1_114 = arith.constant 1 : index
    %c0_115 = arith.constant 0 : index
    %c0_116 = arith.constant 0 : index
    %203 = vector.load %arg7[%c1_114, %c0_115, %c0_116] : memref<2x64x64xf32, #tpu.memory_space<vmem>>, vector<1x64x64xf32>
    %204 = vector.shape_cast %203 : vector<1x64x64xf32> to vector<64x64xf32>
    %cst_117 = arith.constant dense<0.000000e+00> : vector<32x64xf32>
    %205 = tpu.matmul %196, %204, %cst_117 {dimension_numbers = #tpu.dot_dimension_numbers<[1], [0], [0], [1], [0, 0, 1, 1], [], []>} : vector<32x64xf32>, vector<64x64xf32>, vector<32x64xf32> -> vector<32x64xf32>
    %206 = vector.extract_strided_slice %199 {offsets = [0, 0], sizes = [16, 64], strides = [1, 1]} : vector<32x64xf32> to vector<16x64xf32>
    %207 = vector.extract_strided_slice %202 {offsets = [0, 0], sizes = [16, 64], strides = [1, 1]} : vector<32x64xf32> to vector<16x64xf32>
    %208 = vector.extract_strided_slice %206 {offsets = [0, 0], sizes = [16, 16], strides = [1, 1]} : vector<16x64xf32> to vector<16x16xf32>
    %209 = vector.extract_strided_slice %207 {offsets = [0, 0], sizes = [16, 16], strides = [1, 1]} : vector<16x64xf32> to vector<16x16xf32>
    %210 = tpu.transpose %209, [1, 0] : vector<16x16xf32> -> vector<16x16xf32>
    %cst_118 = arith.constant dense<0.000000e+00> : vector<16x16xf32>
    %211 = tpu.matmul %208, %210, %cst_118 {dimension_numbers = #tpu.dot_dimension_numbers<[1], [0], [0], [1], [0, 0, 1, 1], [], []>} : vector<16x16xf32>, vector<16x16xf32>, vector<16x16xf32> -> vector<16x16xf32>
    %212 = arith.addf %211, %6 : vector<16x16xf32>
    %213 = vector.extract_strided_slice %206 {offsets = [0, 16], sizes = [16, 16], strides = [1, 1]} : vector<16x64xf32> to vector<16x16xf32>
    %214 = vector.extract_strided_slice %207 {offsets = [0, 16], sizes = [16, 16], strides = [1, 1]} : vector<16x64xf32> to vector<16x16xf32>
    %215 = tpu.transpose %214, [1, 0] : vector<16x16xf32> -> vector<16x16xf32>
    %cst_119 = arith.constant dense<0.000000e+00> : vector<16x16xf32>
    %216 = tpu.matmul %213, %215, %cst_119 {dimension_numbers = #tpu.dot_dimension_numbers<[1], [0], [0], [1], [0, 0, 1, 1], [], []>} : vector<16x16xf32>, vector<16x16xf32>, vector<16x16xf32> -> vector<16x16xf32>
    %217 = arith.addf %216, %12 : vector<16x16xf32>
    %218 = vector.extract_strided_slice %206 {offsets = [0, 32], sizes = [16, 16], strides = [1, 1]} : vector<16x64xf32> to vector<16x16xf32>
    %219 = vector.extract_strided_slice %207 {offsets = [0, 32], sizes = [16, 16], strides = [1, 1]} : vector<16x64xf32> to vector<16x16xf32>
    %220 = tpu.transpose %219, [1, 0] : vector<16x16xf32> -> vector<16x16xf32>
    %cst_120 = arith.constant dense<0.000000e+00> : vector<16x16xf32>
    %221 = tpu.matmul %218, %220, %cst_120 {dimension_numbers = #tpu.dot_dimension_numbers<[1], [0], [0], [1], [0, 0, 1, 1], [], []>} : vector<16x16xf32>, vector<16x16xf32>, vector<16x16xf32> -> vector<16x16xf32>
    %222 = arith.addf %221, %18 : vector<16x16xf32>
    %223 = vector.extract_strided_slice %206 {offsets = [0, 48], sizes = [16, 16], strides = [1, 1]} : vector<16x64xf32> to vector<16x16xf32>
    %224 = vector.extract_strided_slice %207 {offsets = [0, 48], sizes = [16, 16], strides = [1, 1]} : vector<16x64xf32> to vector<16x16xf32>
    %225 = tpu.transpose %224, [1, 0] : vector<16x16xf32> -> vector<16x16xf32>
    %cst_121 = arith.constant dense<0.000000e+00> : vector<16x16xf32>
    %226 = tpu.matmul %223, %225, %cst_121 {dimension_numbers = #tpu.dot_dimension_numbers<[1], [0], [0], [1], [0, 0, 1, 1], [], []>} : vector<16x16xf32>, vector<16x16xf32>, vector<16x16xf32> -> vector<16x16xf32>
    %227 = arith.addf %226, %24 : vector<16x16xf32>
    %228 = vector.extract_strided_slice %199 {offsets = [16, 0], sizes = [16, 64], strides = [1, 1]} : vector<32x64xf32> to vector<16x64xf32>
    %229 = vector.extract_strided_slice %202 {offsets = [16, 0], sizes = [16, 64], strides = [1, 1]} : vector<32x64xf32> to vector<16x64xf32>
    %230 = vector.extract_strided_slice %228 {offsets = [0, 0], sizes = [16, 16], strides = [1, 1]} : vector<16x64xf32> to vector<16x16xf32>
    %231 = vector.extract_strided_slice %229 {offsets = [0, 0], sizes = [16, 16], strides = [1, 1]} : vector<16x64xf32> to vector<16x16xf32>
    %232 = tpu.transpose %231, [1, 0] : vector<16x16xf32> -> vector<16x16xf32>
    %cst_122 = arith.constant dense<0.000000e+00> : vector<16x16xf32>
    %233 = tpu.matmul %230, %232, %cst_122 {dimension_numbers = #tpu.dot_dimension_numbers<[1], [0], [0], [1], [0, 0, 1, 1], [], []>} : vector<16x16xf32>, vector<16x16xf32>, vector<16x16xf32> -> vector<16x16xf32>
    %234 = arith.addf %233, %30 : vector<16x16xf32>
    %235 = vector.extract_strided_slice %228 {offsets = [0, 16], sizes = [16, 16], strides = [1, 1]} : vector<16x64xf32> to vector<16x16xf32>
    %236 = vector.extract_strided_slice %229 {offsets = [0, 16], sizes = [16, 16], strides = [1, 1]} : vector<16x64xf32> to vector<16x16xf32>
    %237 = tpu.transpose %236, [1, 0] : vector<16x16xf32> -> vector<16x16xf32>
    %cst_123 = arith.constant dense<0.000000e+00> : vector<16x16xf32>
    %238 = tpu.matmul %235, %237, %cst_123 {dimension_numbers = #tpu.dot_dimension_numbers<[1], [0], [0], [1], [0, 0, 1, 1], [], []>} : vector<16x16xf32>, vector<16x16xf32>, vector<16x16xf32> -> vector<16x16xf32>
    %239 = arith.addf %238, %36 : vector<16x16xf32>
    %240 = vector.extract_strided_slice %228 {offsets = [0, 32], sizes = [16, 16], strides = [1, 1]} : vector<16x64xf32> to vector<16x16xf32>
    %241 = vector.extract_strided_slice %229 {offsets = [0, 32], sizes = [16, 16], strides = [1, 1]} : vector<16x64xf32> to vector<16x16xf32>
    %242 = tpu.transpose %241, [1, 0] : vector<16x16xf32> -> vector<16x16xf32>
    %cst_124 = arith.constant dense<0.000000e+00> : vector<16x16xf32>
    %243 = tpu.matmul %240, %242, %cst_124 {dimension_numbers = #tpu.dot_dimension_numbers<[1], [0], [0], [1], [0, 0, 1, 1], [], []>} : vector<16x16xf32>, vector<16x16xf32>, vector<16x16xf32> -> vector<16x16xf32>
    %244 = arith.addf %243, %42 : vector<16x16xf32>
    %245 = vector.extract_strided_slice %228 {offsets = [0, 48], sizes = [16, 16], strides = [1, 1]} : vector<16x64xf32> to vector<16x16xf32>
    %246 = vector.extract_strided_slice %229 {offsets = [0, 48], sizes = [16, 16], strides = [1, 1]} : vector<16x64xf32> to vector<16x16xf32>
    %247 = tpu.transpose %246, [1, 0] : vector<16x16xf32> -> vector<16x16xf32>
    %cst_125 = arith.constant dense<0.000000e+00> : vector<16x16xf32>
    %248 = tpu.matmul %245, %247, %cst_125 {dimension_numbers = #tpu.dot_dimension_numbers<[1], [0], [0], [1], [0, 0, 1, 1], [], []>} : vector<16x16xf32>, vector<16x16xf32>, vector<16x16xf32> -> vector<16x16xf32>
    %249 = arith.addf %248, %48 : vector<16x16xf32>
    %250 = tpu.concatenate %212, %217, %222, %227, %234, %239, %244, %249 in 0 : vector<16x16xf32>, vector<16x16xf32>, vector<16x16xf32>, vector<16x16xf32>, vector<16x16xf32>, vector<16x16xf32>, vector<16x16xf32>, vector<16x16xf32> -> vector<128x16xf32>
    %cst_126 = arith.constant dense<0xFF800000> : vector<128xf32>
    %251 = vector.multi_reduction <maximumf>, %250, %cst_126 [1] : vector<128x16xf32> to vector<128xf32>
    %252 = vector.shape_cast %251 : vector<128xf32> to vector<128x1xf32>
    %253 = vector.broadcast %252 : vector<128x1xf32> to vector<128x16xf32>
    %254 = arith.subf %250, %253 : vector<128x16xf32>
    %255 = math.exp %254 : vector<128x16xf32>
    %cst_127 = arith.constant dense<0.000000e+00> : vector<128xf32>
    %256 = vector.multi_reduction <add>, %255, %cst_127 [1] : vector<128x16xf32> to vector<128xf32>
    %257 = vector.shape_cast %256 : vector<128xf32> to vector<128x1xf32>
    %258 = tpu.reciprocal %257 {approx = true} : vector<128x1xf32> -> vector<128x1xf32>
    %259 = vector.broadcast %258 : vector<128x1xf32> to vector<128x16xf32>
    %260 = arith.mulf %255, %259 : vector<128x16xf32>
    %261 = vector.extract_strided_slice %205 {offsets = [0, 0], sizes = [16, 64], strides = [1, 1]} : vector<32x64xf32> to vector<16x64xf32>
    %262 = vector.extract_strided_slice %260 {offsets = [0, 0], sizes = [16, 16], strides = [1, 1]} : vector<128x16xf32> to vector<16x16xf32>
    %263 = vector.extract_strided_slice %261 {offsets = [0, 0], sizes = [16, 16], strides = [1, 1]} : vector<16x64xf32> to vector<16x16xf32>
    %cst_128 = arith.constant dense<0.000000e+00> : vector<16x16xf32>
    %264 = tpu.matmul %262, %263, %cst_128 {dimension_numbers = #tpu.dot_dimension_numbers<[1], [0], [0], [1], [0, 0, 1, 1], [], []>} : vector<16x16xf32>, vector<16x16xf32>, vector<16x16xf32> -> vector<16x16xf32>
    %265 = vector.extract_strided_slice %260 {offsets = [16, 0], sizes = [16, 16], strides = [1, 1]} : vector<128x16xf32> to vector<16x16xf32>
    %266 = vector.extract_strided_slice %261 {offsets = [0, 16], sizes = [16, 16], strides = [1, 1]} : vector<16x64xf32> to vector<16x16xf32>
    %cst_129 = arith.constant dense<0.000000e+00> : vector<16x16xf32>
    %267 = tpu.matmul %265, %266, %cst_129 {dimension_numbers = #tpu.dot_dimension_numbers<[1], [0], [0], [1], [0, 0, 1, 1], [], []>} : vector<16x16xf32>, vector<16x16xf32>, vector<16x16xf32> -> vector<16x16xf32>
    %268 = vector.extract_strided_slice %260 {offsets = [32, 0], sizes = [16, 16], strides = [1, 1]} : vector<128x16xf32> to vector<16x16xf32>
    %269 = vector.extract_strided_slice %261 {offsets = [0, 32], sizes = [16, 16], strides = [1, 1]} : vector<16x64xf32> to vector<16x16xf32>
    %cst_130 = arith.constant dense<0.000000e+00> : vector<16x16xf32>
    %270 = tpu.matmul %268, %269, %cst_130 {dimension_numbers = #tpu.dot_dimension_numbers<[1], [0], [0], [1], [0, 0, 1, 1], [], []>} : vector<16x16xf32>, vector<16x16xf32>, vector<16x16xf32> -> vector<16x16xf32>
    %271 = vector.extract_strided_slice %260 {offsets = [48, 0], sizes = [16, 16], strides = [1, 1]} : vector<128x16xf32> to vector<16x16xf32>
    %272 = vector.extract_strided_slice %261 {offsets = [0, 48], sizes = [16, 16], strides = [1, 1]} : vector<16x64xf32> to vector<16x16xf32>
    %cst_131 = arith.constant dense<0.000000e+00> : vector<16x16xf32>
    %273 = tpu.matmul %271, %272, %cst_131 {dimension_numbers = #tpu.dot_dimension_numbers<[1], [0], [0], [1], [0, 0, 1, 1], [], []>} : vector<16x16xf32>, vector<16x16xf32>, vector<16x16xf32> -> vector<16x16xf32>
    %274 = tpu.concatenate %264, %267, %270, %273 in 1 : vector<16x16xf32>, vector<16x16xf32>, vector<16x16xf32>, vector<16x16xf32> -> vector<16x64xf32>
    %275 = vector.extract_strided_slice %205 {offsets = [16, 0], sizes = [16, 64], strides = [1, 1]} : vector<32x64xf32> to vector<16x64xf32>
    %276 = vector.extract_strided_slice %260 {offsets = [64, 0], sizes = [16, 16], strides = [1, 1]} : vector<128x16xf32> to vector<16x16xf32>
    %277 = vector.extract_strided_slice %275 {offsets = [0, 0], sizes = [16, 16], strides = [1, 1]} : vector<16x64xf32> to vector<16x16xf32>
    %cst_132 = arith.constant dense<0.000000e+00> : vector<16x16xf32>
    %278 = tpu.matmul %276, %277, %cst_132 {dimension_numbers = #tpu.dot_dimension_numbers<[1], [0], [0], [1], [0, 0, 1, 1], [], []>} : vector<16x16xf32>, vector<16x16xf32>, vector<16x16xf32> -> vector<16x16xf32>
    %279 = vector.extract_strided_slice %260 {offsets = [80, 0], sizes = [16, 16], strides = [1, 1]} : vector<128x16xf32> to vector<16x16xf32>
    %280 = vector.extract_strided_slice %275 {offsets = [0, 16], sizes = [16, 16], strides = [1, 1]} : vector<16x64xf32> to vector<16x16xf32>
    %cst_133 = arith.constant dense<0.000000e+00> : vector<16x16xf32>
    %281 = tpu.matmul %279, %280, %cst_133 {dimension_numbers = #tpu.dot_dimension_numbers<[1], [0], [0], [1], [0, 0, 1, 1], [], []>} : vector<16x16xf32>, vector<16x16xf32>, vector<16x16xf32> -> vector<16x16xf32>
    %282 = vector.extract_strided_slice %260 {offsets = [96, 0], sizes = [16, 16], strides = [1, 1]} : vector<128x16xf32> to vector<16x16xf32>
    %283 = vector.extract_strided_slice %275 {offsets = [0, 32], sizes = [16, 16], strides = [1, 1]} : vector<16x64xf32> to vector<16x16xf32>
    %cst_134 = arith.constant dense<0.000000e+00> : vector<16x16xf32>
    %284 = tpu.matmul %282, %283, %cst_134 {dimension_numbers = #tpu.dot_dimension_numbers<[1], [0], [0], [1], [0, 0, 1, 1], [], []>} : vector<16x16xf32>, vector<16x16xf32>, vector<16x16xf32> -> vector<16x16xf32>
    %285 = vector.extract_strided_slice %260 {offsets = [112, 0], sizes = [16, 16], strides = [1, 1]} : vector<128x16xf32> to vector<16x16xf32>
    %286 = vector.extract_strided_slice %275 {offsets = [0, 48], sizes = [16, 16], strides = [1, 1]} : vector<16x64xf32> to vector<16x16xf32>
    %cst_135 = arith.constant dense<0.000000e+00> : vector<16x16xf32>
    %287 = tpu.matmul %285, %286, %cst_135 {dimension_numbers = #tpu.dot_dimension_numbers<[1], [0], [0], [1], [0, 0, 1, 1], [], []>} : vector<16x16xf32>, vector<16x16xf32>, vector<16x16xf32> -> vector<16x16xf32>
    %288 = tpu.concatenate %278, %281, %284, %287 in 1 : vector<16x16xf32>, vector<16x16xf32>, vector<16x16xf32>, vector<16x16xf32> -> vector<16x64xf32>
    %289 = tpu.concatenate %274, %288 in 0 : vector<16x64xf32>, vector<16x64xf32> -> vector<32x64xf32>
    %c1_136 = arith.constant 1 : index
    %c0_137 = arith.constant 0 : index
    %c0_138 = arith.constant 0 : index
    %290 = vector.load %arg8[%c1_136, %c0_137, %c0_138] : memref<2x64x64xf32, #tpu.memory_space<vmem>>, vector<1x64x64xf32>
    %291 = vector.shape_cast %290 : vector<1x64x64xf32> to vector<64x64xf32>
    %cst_139 = arith.constant dense<0.000000e+00> : vector<32x64xf32>
    %292 = tpu.matmul %289, %291, %cst_139 {dimension_numbers = #tpu.dot_dimension_numbers<[1], [0], [0], [1], [0, 0, 1, 1], [], []>} : vector<32x64xf32>, vector<64x64xf32>, vector<32x64xf32> -> vector<32x64xf32>
    %293 = arith.addf %182, %292 : vector<32x64xf32>
    %c1_140 = arith.constant 1 : index
    %c0_141 = arith.constant 0 : index
    %c0_142 = arith.constant 0 : index
    %294 = vector.load %arg9[%c1_140, %c0_141, %c0_142] : memref<2x1x64xf32, #tpu.memory_space<vmem>>, vector<1x1x64xf32>
    %295 = vector.shape_cast %294 : vector<1x1x64xf32> to vector<1x64xf32>
    %296 = arith.mulf %293, %293 : vector<32x64xf32>
    %cst_143 = arith.constant dense<0.000000e+00> : vector<32xf32>
    %297 = vector.multi_reduction <add>, %296, %cst_143 [1] : vector<32x64xf32> to vector<32xf32>
    %298 = vector.shape_cast %297 : vector<32xf32> to vector<32x1xf32>
    %cst_144 = arith.constant 6.400000e+01 : f32
    %299 = vector.broadcast %cst_144 : f32 to vector<32x1xf32>
    %300 = arith.divf %298, %299 : vector<32x1xf32>
    %cst_145 = arith.constant 9.99999997E-7 : f32
    %301 = vector.broadcast %cst_145 : f32 to vector<32x1xf32>
    %302 = arith.addf %300, %301 : vector<32x1xf32>
    %303 = math.rsqrt %302 : vector<32x1xf32>
    %304 = vector.broadcast %303 : vector<32x1xf32> to vector<32x64xf32>
    %305 = arith.mulf %293, %304 : vector<32x64xf32>
    %306 = vector.broadcast %295 : vector<1x64xf32> to vector<32x64xf32>
    %307 = arith.mulf %305, %306 : vector<32x64xf32>
    %c1_146 = arith.constant 1 : index
    %c0_147 = arith.constant 0 : index
    %c0_148 = arith.constant 0 : index
    %308 = vector.load %arg10[%c1_146, %c0_147, %c0_148] : memref<2x64x128xf32, #tpu.memory_space<vmem>>, vector<1x64x128xf32>
    %309 = vector.shape_cast %308 : vector<1x64x128xf32> to vector<64x128xf32>
    %cst_149 = arith.constant dense<0.000000e+00> : vector<32x128xf32>
    %310 = tpu.matmul %307, %309, %cst_149 {dimension_numbers = #tpu.dot_dimension_numbers<[1], [0], [0], [1], [0, 0, 1, 1], [], []>} : vector<32x64xf32>, vector<64x128xf32>, vector<32x128xf32> -> vector<32x128xf32>
    %cst_150 = arith.constant 0.000000e+00 : f32
    %311 = vector.broadcast %cst_150 : f32 to vector<32x128xf32>
    %312 = arith.maximumf %310, %311 : vector<32x128xf32>
    %c1_151 = arith.constant 1 : index
    %c0_152 = arith.constant 0 : index
    %c0_153 = arith.constant 0 : index
    %313 = vector.load %arg11[%c1_151, %c0_152, %c0_153] : memref<2x128x64xf32, #tpu.memory_space<vmem>>, vector<1x128x64xf32>
    %314 = vector.shape_cast %313 : vector<1x128x64xf32> to vector<128x64xf32>
    %cst_154 = arith.constant dense<0.000000e+00> : vector<32x64xf32>
    %315 = tpu.matmul %312, %314, %cst_154 {dimension_numbers = #tpu.dot_dimension_numbers<[1], [0], [0], [1], [0, 0, 1, 1], [], []>} : vector<32x128xf32>, vector<128x64xf32>, vector<32x64xf32> -> vector<32x64xf32>
    %316 = arith.addf %293, %315 : vector<32x64xf32>
    %c0_155 = arith.constant 0 : index
    %c0_156 = arith.constant 0 : index
    %317 = vector.load %arg12[%c0_155, %c0_156] : memref<1x64xf32, #tpu.memory_space<vmem>>, vector<1x64xf32>
    %318 = arith.mulf %316, %316 : vector<32x64xf32>
    %cst_157 = arith.constant dense<0.000000e+00> : vector<32xf32>
    %319 = vector.multi_reduction <add>, %318, %cst_157 [1] : vector<32x64xf32> to vector<32xf32>
    %320 = vector.shape_cast %319 : vector<32xf32> to vector<32x1xf32>
    %cst_158 = arith.constant 6.400000e+01 : f32
    %321 = vector.broadcast %cst_158 : f32 to vector<32x1xf32>
    %322 = arith.divf %320, %321 : vector<32x1xf32>
    %cst_159 = arith.constant 9.99999997E-7 : f32
    %323 = vector.broadcast %cst_159 : f32 to vector<32x1xf32>
    %324 = arith.addf %322, %323 : vector<32x1xf32>
    %325 = math.rsqrt %324 : vector<32x1xf32>
    %326 = vector.broadcast %325 : vector<32x1xf32> to vector<32x64xf32>
    %327 = arith.mulf %316, %326 : vector<32x64xf32>
    %328 = vector.broadcast %317 : vector<1x64xf32> to vector<32x64xf32>
    %329 = arith.mulf %327, %328 : vector<32x64xf32>
    %c0_160 = arith.constant 0 : index
    %c0_161 = arith.constant 0 : index
    %330 = vector.load %arg13[%c0_160, %c0_161] : memref<32x64xf32, #tpu.memory_space<vmem>>, vector<32x64xf32>
    tpu.vector_store %arg13[%c0_160, %c0_161], %329 {strides = array<i32>} : memref<32x64xf32, #tpu.memory_space<vmem>>, vector<32x64xf32>,
    return
  }
  func.func @transform_0(%arg0: i32) -> (i32, i32) {
    %c0_i32 = arith.constant 0 : i32
    %c0_i32_0 = arith.constant 0 : i32
    %c0_i32_1 = arith.constant 0 : i32
    return %c0_i32, %c0_i32_0 : i32, i32
  }
  func.func @transform_1(%arg0: i32) -> (i32, i32, i32) {
    %c0_i32 = arith.constant 0 : i32
    %c0_i32_0 = arith.constant 0 : i32
    %c0_i32_1 = arith.constant 0 : i32
    %c0_i32_2 = arith.constant 0 : i32
    return %c0_i32, %c0_i32_0, %c0_i32_1 : i32, i32, i32
  }
  func.func @transform_2(%arg0: i32) -> (i32, i32, i32) {
    %c0_i32 = arith.constant 0 : i32
    %c0_i32_0 = arith.constant 0 : i32
    %c0_i32_1 = arith.constant 0 : i32
    %c0_i32_2 = arith.constant 0 : i32
    return %c0_i32, %c0_i32_0, %c0_i32_1 : i32, i32, i32
  }
  func.func @transform_3(%arg0: i32) -> (i32, i32, i32) {
    %c0_i32 = arith.constant 0 : i32
    %c0_i32_0 = arith.constant 0 : i32
    %c0_i32_1 = arith.constant 0 : i32
    %c0_i32_2 = arith.constant 0 : i32
    return %c0_i32, %c0_i32_0, %c0_i32_1 : i32, i32, i32
  }
  func.func @transform_4(%arg0: i32) -> (i32, i32, i32) {
    %c0_i32 = arith.constant 0 : i32
    %c0_i32_0 = arith.constant 0 : i32
    %c0_i32_1 = arith.constant 0 : i32
    %c0_i32_2 = arith.constant 0 : i32
    return %c0_i32, %c0_i32_0, %c0_i32_1 : i32, i32, i32
  }
  func.func @transform_5(%arg0: i32) -> (i32, i32, i32) {
    %c0_i32 = arith.constant 0 : i32
    %c0_i32_0 = arith.constant 0 : i32
    %c0_i32_1 = arith.constant 0 : i32
    %c0_i32_2 = arith.constant 0 : i32
    return %c0_i32, %c0_i32_0, %c0_i32_1 : i32, i32, i32
  }
  func.func @transform_6(%arg0: i32) -> (i32, i32, i32) {
    %c0_i32 = arith.constant 0 : i32
    %c0_i32_0 = arith.constant 0 : i32
    %c0_i32_1 = arith.constant 0 : i32
    %c0_i32_2 = arith.constant 0 : i32
    return %c0_i32, %c0_i32_0, %c0_i32_1 : i32, i32, i32
  }
  func.func @transform_7(%arg0: i32) -> (i32, i32, i32) {
    %c0_i32 = arith.constant 0 : i32
    %c0_i32_0 = arith.constant 0 : i32
    %c0_i32_1 = arith.constant 0 : i32
    %c0_i32_2 = arith.constant 0 : i32
    return %c0_i32, %c0_i32_0, %c0_i32_1 : i32, i32, i32
  }
  func.func @transform_8(%arg0: i32) -> (i32, i32, i32) {
    %c0_i32 = arith.constant 0 : i32
    %c0_i32_0 = arith.constant 0 : i32
    %c0_i32_1 = arith.constant 0 : i32
    %c0_i32_2 = arith.constant 0 : i32
    return %c0_i32, %c0_i32_0, %c0_i32_1 : i32, i32, i32
  }
  func.func @transform_9(%arg0: i32) -> (i32, i32, i32) {
    %c0_i32 = arith.constant 0 : i32
    %c0_i32_0 = arith.constant 0 : i32
    %c0_i32_1 = arith.constant 0 : i32
    %c0_i32_2 = arith.constant 0 : i32
    return %c0_i32, %c0_i32_0, %c0_i32_1 : i32, i32, i32
  }
  func.func @transform_10(%arg0: i32) -> (i32, i32, i32) {
    %c0_i32 = arith.constant 0 : i32
    %c0_i32_0 = arith.constant 0 : i32
    %c0_i32_1 = arith.constant 0 : i32
    %c0_i32_2 = arith.constant 0 : i32
    return %c0_i32, %c0_i32_0, %c0_i32_1 : i32, i32, i32
  }
  func.func @transform_11(%arg0: i32) -> (i32, i32) {
    %c0_i32 = arith.constant 0 : i32
    %c0_i32_0 = arith.constant 0 : i32
    %c0_i32_1 = arith.constant 0 : i32
    return %c0_i32, %c0_i32_0 : i32, i32
  }
  func.func @transform_12(%arg0: i32) -> (i32, i32) {
    %c0_i32 = arith.constant 0 : i32
    %c0_i32_0 = arith.constant 0 : i32
    %c0_i32_1 = arith.constant 0 : i32
    return %c0_i32, %c0_i32_0 : i32, i32
  }
}

</mosaic_0001>

<bundles_post_ra>
// kernel: frozen_t5_forward.1
= control target key start
LH: loop header
LB: loop body
LE: loop exit
PB: predicated region body
PF: predicated region fallthrough
CT: control target
= control target key end

     0   :  { %vm93_vm0 = vcmask 523264   ;;  %s7898_s0 = inlined_call_operand.vmem [shape: f32[32,64], index: 0, kind: input, shape index: {}]   ;;  %s7899_s1 = inlined_call_operand.vmem [shape: f32[4,16,16], index: 1, kind: input, shape index: {}]   ;;  %s7900_s2 = inlined_call_operand.vmem [shape: f32[2,1,16], index: 2, kind: input, shape index: {}]   ;;  %s7901_s3 = inlined_call_operand.vmem [shape: f32[2,1,64], index: 3, kind: input, shape index: {}]   ;;  %s7902_s4 = inlined_call_operand.vmem [shape: f32[2,64,64], index: 4, kind: input, shape index: {}]   ;;  %s7903_s5 = inlined_call_operand.vmem [shape: f32[2,64,64], index: 5, kind: input, shape index: {}]   ;;  %s7904_s6 = inlined_call_operand.vmem [shape: f32[2,64,64], index: 6, kind: input, shape index: {}]   ;;  %s7905_s7 = inlined_call_operand.vmem [shape: f32[2,64,64], index: 7, kind: input, shape index: {}]   ;;  %s7906_s8 = inlined_call_operand.vmem [shape: f32[2,1,64], index: 8, kind: input, shape index: {}]   ;;  %s7907_s9 = inlined_call_operand.vmem [shape: f32[2,64,128], index: 9, kind: input, shape index: {}]   ;;  %s7908_s10 = inlined_call_operand.vmem [shape: f32[2,128,64], index: 10, kind: input, shape index: {}]   ;;  %s7909_s11 = inlined_call_operand.vmem [shape: f32[1,64], index: 11, kind: input, shape index: {}]   ;;  %s7910_s12 = inlined_call_operand.hbm [shape: f32[32,64], index: 12, kind: output, shape index: {}]  }
   0x1   :  { %v6654_v0 = vld [vmem:[%s7898_s0] sm:$0xff]  ;;  %v6659_v1 = vld [vmem:[%s7898_s0 + $0x10] sm:$0xff]  ;;  %v6664_v2 = vld [vmem:[%s7898_s0 + $0x8] sm:$0xff] }
   0x2   :  { %v89_v3 = vmul.f32 %v6654_v0, %v6654_v0  ;;  %v91_v4 = vmul.f32 %v6659_v1, %v6659_v1  ;;  %v90_v5 = vmul.f32 %v6664_v2, %v6664_v2  ;;  %v6675_v6 = vld [vmem:[%s7898_s0 + $0x18] sm:$0xff] }
   0x3   :  { %17 = vsyncpa [#allocation3], 0  ;;  %v92_v7 = vmul.f32 %v6675_v6, %v6675_v6  ;;  %v133_v12 = vld [vmem:[%s7902_s4] sm:$0xff]  ;;  %v134_v13 = vld [vmem:[%s7902_s4 + $0x8] sm:$0xff]  ;;  %vm424_vm1 = vcmask 130048   ;;  %s6577_s25 = smov 112  }
   0x4   :  { %v94_v8 = vsel %vm93_vm0, %v89_v3, 0.0  ;;  %v100_v9 = vsel %vm93_vm0, %v91_v4, 0.0  ;;  %v97_v10 = vsel %vm93_vm0, %v90_v5, 0.0  ;;  %v5868_v14 = vpack.c.bf16 %v134_v13, %v133_v12  ;;  %v331_v15 = vld [vmem:[%s7904_s6] sm:$0xff]  ;;  %v332_v16 = vld [vmem:[%s7904_s6 + $0x8] sm:$0xff]  ;;  %v135_v18 = vld [vmem:[%s7902_s4 + $0x10] sm:$0xff] }
   0x5   :  { %95 = vadd.xlane.f32.xlu0 %v94_v8  ;;  %101 = vadd.xlane.f32.xlu1 %v100_v9  ;;  %v103_v11 = vsel %vm93_vm0, %v92_v7, 0.0  ;;  %v5900_v17 = vpack.c.bf16 %v332_v16, %v331_v15  ;;  %v136_v19 = vld [vmem:[%s7902_s4 + $0x18] sm:$0xff]  ;;  %v333_v21 = vld [vmem:[%s7904_s6 + $0x10] sm:$0xff]  ;;  %v137_v24 = vld [vmem:[%s7902_s4 + $0x20] sm:$0xff]  ;;  %s6578_s26 = smov 96   ;;  %s6579_s27 = smov 80  }
   0x6   :  { %5869 = vmatprep.subr.bf16.mxu1 %v5868_v14  ;;  %v5872_v20 = vpack.c.bf16 %v136_v19, %v135_v18  ;;  %v334_v22 = vld [vmem:[%s7904_s6 + $0x18] sm:$0xff]  ;;  %v138_v25 = vld [vmem:[%s7902_s4 + $0x28] sm:$0xff]  ;;  %v335_v26 = vld [vmem:[%s7904_s6 + $0x20] sm:$0xff]  ;;  %s6580_s14 = smov 16   ;;  %vm1691_vm3 = vcmask 261120   ;;  %vm1694_vm4 = vcmask 392192  }
   0x7   :  { %5871 = vmatpush3.bf16.msra.mxu1 %v5868_v14  ;;  %5901 = vmatprep.subr.bf16.mxu0 %v5900_v17  ;;  %v5904_v23 = vpack.c.bf16 %v334_v22, %v333_v21  ;;  %v5876_v27 = vpack.c.bf16 %v138_v25, %v137_v24  ;;  %v336_v28 = vld [vmem:[%s7904_s6 + $0x28] sm:$0xff]  ;;  %v139_v29 = vld [vmem:[%s7902_s4 + $0x30] sm:$0xff]  ;;  %v140_v30 = vld [vmem:[%s7902_s4 + $0x38] sm:$0xff] }
   0x8   :  { %5903 = vmatpush3.bf16.msra.mxu0 %v5900_v17  ;;  %5873 = vmatprep.subr.bf16.mxu1 %v5872_v20  ;;  %v5908_v31 = vpack.c.bf16 %v336_v28, %v335_v26  ;;  %v5880_v32 = vpack.c.bf16 %v140_v30, %v139_v29  ;;  %v337_v33 = vld [vmem:[%s7904_s6 + $0x30] sm:$0xff]  ;;  %v338_v34 = vld [vmem:[%s7904_s6 + $0x38] sm:$0xff]  ;;  %v238_v36 = vld [vmem:[%s7903_s5] sm:$0xff] }
   0x9   :  { %98 = vadd.xlane.f32.xlu0 %v97_v10  ;;  %104 = vadd.xlane.f32.xlu1 %v103_v11  ;;  %v5912_v35 = vpack.c.bf16 %v338_v34, %v337_v33  ;;  %v239_v37 = vld [vmem:[%s7903_s5 + $0x8] sm:$0xff]  ;;  %v4861_v52 = vld [vmem:[%s7901_s3] ss:$0 sm:$0xff]  ;;  %v240_v58 = vld [vmem:[%s7903_s5 + $0x10] sm:$0xff] }
   0xa   :  { %5905 = vmatprep.subr.bf16.mxu0 %v5904_v23  ;;  %v5884_v38 = vpack.c.bf16 %v239_v37, %v238_v36  ;;  %v241_v59 = vld [vmem:[%s7903_s5 + $0x18] sm:$0xff]  ;;  %v242_v3 = vld [vmem:[%s7903_s5 + $0x20] sm:$0xff]  ;;  %v243_v4 = vld [vmem:[%s7903_s5 + $0x28] sm:$0xff] }
   0xb   :  { %5875 = vmatpush3.bf16.msra.mxu1 %v5872_v20  ;;  %v245_v7 = vld [vmem:[%s7903_s5 + $0x38] sm:$0xff]  ;;  %vm6790_vm2 = vmpackc.low %vm424_vm1, %vm424_vm1 }
   0xc   :  { %5907 = vmatpush3.bf16.msra.mxu0 %v5904_v23  ;;  %5877 = vmatprep.subr.bf16.mxu1 %v5876_v27 }
   0xd   :  { %5909 = vmatprep.subr.bf16.mxu0 %v5908_v31 }
   0xf   :  { %5879 = vmatpush3.bf16.msra.mxu1 %v5876_v27 }
  0x10   :  { %5911 = vmatpush3.bf16.msra.mxu0 %v5908_v31  ;;  %5881 = vmatprep.subr.bf16.mxu1 %v5880_v32 }
  0x11   :  { %5913 = vmatprep.subr.bf16.mxu0 %v5912_v35 }
  0x13   :  { %5883 = vmatpush3.bf16.msra.mxu1 %v5880_v32 }
  0x14   :  { %5915 = vmatpush3.bf16.msra.mxu0 %v5912_v35  ;;  %5885 = vmatprep.subr.bf16.mxu1 %v5884_v38 }
  0x92   :  { %v96_v39 = vpop.xlane.xlu0 %95  ;;  %v102_v40 = vpop.xlane.xlu1 %101 }
  0x93   :  { %v107_v41 = vmul.f32 0.015625, %v96_v39  ;;  %v109_v42 = vmul.f32 0.015625, %v102_v40 }
  0x95   :  { %v111_v43 = vadd.f32 1e-06, %v107_v41  ;;  %v113_v44 = vadd.f32 1e-06, %v109_v42 }
  0x96   :  { %v99_v45 = vpop.xlane.xlu0 %98  ;;  %v105_v46 = vpop.xlane.xlu1 %104 }
  0x97   :  { %6381 = vrsqrt.f32 %v111_v43  ;;  %v108_v47 = vmul.f32 0.015625, %v99_v45  ;;  %v110_v48 = vmul.f32 0.015625, %v105_v46 }
  0x98   :  { %6383 = vrsqrt.f32 %v113_v44 }
  0x99   :  { %v112_v49 = vadd.f32 1e-06, %v108_v47  ;;  %v114_v50 = vadd.f32 1e-06, %v110_v48 }
  0x9b   :  { %6385 = vrsqrt.f32 %v112_v49 }
  0x9c   :  { %6387 = vrsqrt.f32 %v114_v50 }
  0xa1   :  { %v6382_v51 = vpop.eup %6381 }
  0xa2   :  { %v6384_v53 = vpop.eup %6383  ;;  %v119_v54 = vmul.f32 %v6382_v51, %v6654_v0 }
  0xa3   :  { %v121_v55 = vmul.f32 %v6384_v53, %v6659_v1  ;;  %v5888_v1 = vpack.c.bf16 %v241_v59, %v240_v58 }
  0xa4   :  { %v129_v56 = vmul.f32 %v4861_v52, %v119_v54 }
  0xa5   :  { %v6386_v57 = vpop.eup %6385  ;;  %v131_v62 = vmul.f32 %v4861_v52, %v121_v55 }
  0xa6   :  { %v6388_v60 = vpop.eup %6387  ;;  %5364 = vmatprep.mubr.msk.f32.mxu1 %vm93_vm0, %v129_v56  ;;  %5408 = vmatprep.mubr.msk.f32.mxu0 %vm93_vm0, %v129_v56  ;;  %v120_v61 = vmul.f32 %v6386_v57, %v6664_v2  ;;  %v5892_v2 = vpack.c.bf16 %v243_v4, %v242_v3  ;;  %v47_v3 = vld [vmem:[%s7899_s1 + $0x8] sm:$0xff]  ;;  %v4852_v4 = vld [vmem:[%s7900_s2] ss:$0 sm:$0xff] }
  0xa7   :  { %v122_v63 = vmul.f32 %v6388_v60, %v6675_v6  ;;  %v244_v6 = vld [vmem:[%s7903_s5 + $0x30] sm:$0xff] }
  0xa8   :  { %v130_v0 = vmul.f32 %v4861_v52, %v120_v61  ;;  %v5896_v8 = vpack.c.bf16 %v245_v7, %v244_v6 }
  0xa9   :  { %v132_v5 = vmul.f32 %v4861_v52, %v122_v63 }
  0xaa   :  { %5365 = vmatmul.mubr.msk.f32.vlgmr.msra.gmra.mrb[0].mxu1 %vm93_vm0, %v130_v0  ;;  %5409 = vmatmul.mubr.msk.f32.vlgmr.msra.gmra.mrb[0].mxu0 %vm93_vm0, %v130_v0 }
  0xab   :  { %5887 = vmatpush3.bf16.msra.mxu1 %v5884_v38  ;;  %5367 = vmatprep.mubr.msk.f32.mxu1 %vm93_vm0, %v131_v62 }
  0xac   :  { %5889 = vmatprep.subr.bf16.mxu1 %v5888_v1  ;;  %5411 = vmatprep.mubr.msk.f32.mxu0 %vm93_vm0, %v131_v62 }
  0xae   :  { %5368 = vmatmul.mubr.msk.f32.gmra.mrb[2].mxu1 %vm93_vm0, %v132_v5  ;;  %5412 = vmatmul.mubr.msk.f32.gmra.mrb[2].mxu0 %vm93_vm0, %v132_v5 }
  0xaf   :  { %5891 = vmatpush3.bf16.msra.mxu1 %v5888_v1  ;;  %5386 = vmatprep.mubr.msk.f32.mxu1 %vm93_vm0, %v129_v56 }
  0xb0   :  { %5893 = vmatprep.subr.bf16.mxu1 %v5892_v2 }
  0xb3   :  { %5895 = vmatpush3.bf16.msra.mxu1 %v5892_v2  ;;  %v6877_v2 = vadd.f32 %v4852_v4, %v47_v3 }
  0xb4   :  { %5897 = vmatprep.subr.bf16.mxu1 %v5896_v8 }
  0xb7   :  { %5899 = vmatpush3.bf16.msra.mxu1 %v5896_v8 }
  0xba   :  { %5387 = vmatmul.mubr.msk.f32.vlgmr.msra.gmra.mrb[4].mxu1 %vm93_vm0, %v130_v0 }
  0xbb   :  { %5389 = vmatprep.mubr.msk.f32.mxu1 %vm93_vm0, %v131_v62 }
  0xbe   :  { %5390 = vmatmul.mubr.msk.f32.gmra.mrb[6].mxu1 %vm93_vm0, %v132_v5  ;;  %v46_v5 = vld [vmem:[%s7899_s1] sm:$0xff] }
  0xbf   :  { %v6879_v6 = vadd.f32 %v4852_v4, %v46_v5 }
 0x17d   :  { %v5366_v9 = vpop.f32.mrb[0].mxu1  ;;  %v5410_v10 = vpop.f32.mrb[0].mxu0 }
 0x17e   :  { %v219_v11 = vpop.f32.mrb[1].mxu1  ;;  %v405_v12 = vpop.f32.mrb[1].mxu0 }
 0x17f   :  { %512 = vrot.lane.b32.xlu1 %v219_v11, %s6577_s25  ;;  %5418 = vmatprep.mubr.msk.f32.mxu1 %vm424_vm1, %v219_v11  ;;  %v6776_v13 = vpack.c.bf16 %v5410_v10, %v405_v12  ;;  %v6778_v14 = vpack.i.bf16 %v5410_v10, %v405_v12 }
 0x181   :  { %v6780_v15 = vpop.f32.mrb[2].mxu1  ;;  %v5413_v16 = vpop.f32.mrb[2].mxu0 }
 0x182   :  { %v6782_v17 = vpop.f32.mrb[3].mxu1  ;;  %v415_v18 = vpop.f32.mrb[3].mxu0 }
 0x183   :  { %v6784_v19 = vpack.i.bf16 %v5413_v16, %v415_v18  ;;  %v6786_v20 = vpack.c.bf16 %v5413_v16, %v415_v18  ;;  %v4853_v16 = vld [vmem:[%s7899_s1 + $0x10] sm:$0xff] }
 0x18d   :  { %v5388_v21 = vpop.f32.mrb[4].mxu1 }
 0x18e   :  { %v312_v22 = vpop.f32.mrb[5].mxu1 }
 0x18f   :  { %v5916_v23 = vpack.c.bf16 %v5388_v21, %v312_v22  ;;  %v6266_v24 = vpack.i.bf16 %v5388_v21, %v312_v22  ;;  %v6904_v21 = vadd.f32 %v4853_v16, %v4852_v4 }
 0x191   :  { %6267 = vrot.lane.b32.xlu1 %v6266_v24, %s6578_s26  ;;  %6262 = vrot.lane.b32.xlu0 %v6266_v24, %s6577_s25  ;;  %v5391_v26 = vpop.f32.mrb[6].mxu1 }
 0x192   :  { %5918 = vmatprep.subr.msk.bf16.mxu1 %vm6790_vm2, %v5916_v23  ;;  %v322_v27 = vpop.f32.mrb[7].mxu1 }
 0x193   :  { %v5940_v28 = vpack.c.bf16 %v5391_v26, %v322_v27  ;;  %5921 = vmatpush3.bf16.xpose.msk.msra.mxu1 %vm6790_vm2, %v5916_v23  ;;  %v6276_v29 = vpack.i.bf16 %v5391_v26, %v322_v27 }
 0x195   :  { %6272 = vrot.lane.b32.xlu1 %v6266_v24, %s6579_s27  ;;  %514 = vrot.lane.b32.xlu0 %v5366_v9, %s6577_s25  ;;  %v4855_v24 = vld [vmem:[%s7899_s1 + $0x20] sm:$0xff] }
 0x199   :  { %605 = vrot.lane.b32.xlu1 %v5366_v9, %s6578_s26  ;;  %603 = vrot.lane.b32.xlu0 %v219_v11, %s6578_s26 }
 0x19a   :  { %5419 = vmatmul.mubr.msk.f32.vlgmr.msra.gmra.mrb[8].mxu1 %vm424_vm1, %v5366_v9 }
 0x19d   :  { %694 = vrot.lane.b32.xlu0 %v219_v11, %s6579_s27  ;;  %6277 = vrot.lane.b32.xlu1 %v6276_v29, %s6577_s25 }
 0x1a1   :  { %6282 = vrot.lane.b32.xlu0 %v6276_v29, %s6578_s26  ;;  %696 = vrot.lane.b32.xlu1 %v5366_v9, %s6579_s27 }
 0x1a5   :  { %872 = vrot.lane.b32.xlu0 %v6782_v17, %s6577_s25  ;;  %6287 = vrot.lane.b32.xlu1 %v6276_v29, %s6579_s27 }
 0x1a9   :  { %963 = vrot.lane.b32.xlu0 %v6782_v17, %s6578_s26  ;;  %874 = vrot.lane.b32.xlu1 %v6780_v15, %s6577_s25 }
 0x1ad   :  { %1054 = vrot.lane.b32.xlu0 %v6782_v17, %s6579_s27  ;;  %965 = vrot.lane.b32.xlu1 %v6780_v15, %s6578_s26 }
 0x1b1   :  { %1056 = vrot.lane.b32.xlu1 %v6780_v15, %s6579_s27 }
 0x1f1   :  { %v513_v30 = vpop.permute.xlu1 %512 }
 0x1f2   :  { %5425 = vmatprep.mubr.msk.f32.mxu1 %vm424_vm1, %v513_v30  ;;  %v4858_v30 = vld [vmem:[%s7899_s1 + $0x38] sm:$0xff] }
 0x203   :  { %v6268_v31 = vpop.permute.xlu1 %6267  ;;  %v6263_v32 = vpop.permute.xlu0 %6262 }
 0x204   :  { %v6270_v33 = vunpack.i.h.bf16 %v6268_v31  ;;  %v6269_v34 = vunpack.i.l.bf16 %v6268_v31  ;;  %v6265_v35 = vunpack.i.h.bf16 %v6263_v32  ;;  %v6264_v36 = vunpack.i.l.bf16 %v6263_v32 }
 0x205   :  { %v6921_v32 = vadd.f32 %v4855_v24, %v4852_v4 }
 0x206   :  { %v5928_v37 = vpack.c.bf16 %v6270_v33, %v6269_v34  ;;  %v5922_v38 = vpack.c.bf16 %v6265_v35, %v6264_v36  ;;  %v4860_v35 = vld [vmem:[%s7900_s2 + $0x1] ss:$0 sm:$0xff]  ;;  %v4857_v36 = vld [vmem:[%s7899_s1 + $0x30] sm:$0xff]  ;;  %s6582_s2 = smov 48  }
 0x207   :  { %v6273_v39 = vpop.permute.xlu1 %6272  ;;  %v515_v40 = vpop.permute.xlu0 %514 }
 0x208   :  { %v6275_v41 = vunpack.i.h.bf16 %v6273_v39  ;;  %v6274_v42 = vunpack.i.l.bf16 %v6273_v39  ;;  %5924 = vmatprep.subr.msk.bf16.mxu1 %vm6790_vm2, %v5922_v38  ;;  %5930 = vmatprep.subr.msk.bf16.mxu0 %vm6790_vm2, %v5928_v37  ;;  %v6938_v39 = vadd.f32 %v4860_v35, %v47_v3 }
 0x209   :  { %5927 = vmatpush3.bf16.xpose.msk.msra.mxu1 %vm6790_vm2, %v5922_v38  ;;  %5933 = vmatpush3.bf16.xpose.msk.msra.mxu0 %vm6790_vm2, %v5928_v37  ;;  %v6933_v37 = vadd.f32 %v4858_v30, %v4852_v4 }
 0x20a   :  { %v5934_v43 = vpack.c.bf16 %v6275_v41, %v6274_v42  ;;  %5942 = vmatprep.subr.msk.bf16.mxu0 %vm6790_vm2, %v5940_v28  ;;  %v6942_v41 = vadd.f32 %v4857_v36, %v4852_v4 }
 0x20b   :  { %v606_v44 = vpop.permute.xlu1 %605  ;;  %v604_v45 = vpop.permute.xlu0 %603 }
 0x20c   :  { %5432 = vmatprep.mubr.msk.f32.mxu0 %vm424_vm1, %v604_v45  ;;  %5936 = vmatprep.subr.msk.bf16.mxu1 %vm6790_vm2, %v5934_v43 }
 0x20f   :  { %v695_v46 = vpop.permute.xlu0 %694  ;;  %v6278_v47 = vpop.permute.xlu1 %6277 }
 0x210   :  { %v6280_v48 = vunpack.i.h.bf16 %v6278_v47  ;;  %v6279_v49 = vunpack.i.l.bf16 %v6278_v47  ;;  %5426 = vmatmul.mubr.msk.f32.vlgmr.msra.gmra.mrb[10].mxu1 %vm424_vm1, %v515_v40  ;;  %5433 = vmatmul.mubr.msk.f32.vlgmr.msra.gmra.mrb[4].mxu0 %vm424_vm1, %v606_v44 }
 0x211   :  { %5939 = vmatpush3.bf16.xpose.msk.msra.mxu1 %vm6790_vm2, %v5934_v43  ;;  %5439 = vmatprep.mubr.msk.f32.mxu1 %vm424_vm1, %v695_v46  ;;  %v6947_v46 = vadd.f32 %v4860_v35, %v46_v5  ;;  %v6987_v5 = vadd.f32 %v4860_v35, %v4858_v30 }
 0x212   :  { %v5946_v50 = vpack.c.bf16 %v6280_v48, %v6279_v49  ;;  %5945 = vmatpush3.bf16.xpose.msk.msra.mxu0 %vm6790_vm2, %v5940_v28  ;;  %5446 = vmatprep.mubr.msk.f32.mxu0 %vm424_vm1, %v6782_v17 }
 0x213   :  { %v6283_v51 = vpop.permute.xlu0 %6282  ;;  %v697_v52 = vpop.permute.xlu1 %696 }
 0x214   :  { %v6285_v53 = vunpack.i.h.bf16 %v6283_v51  ;;  %v6284_v54 = vunpack.i.l.bf16 %v6283_v51  ;;  %5948 = vmatprep.subr.msk.bf16.mxu1 %vm6790_vm2, %v5946_v50 }
 0x216   :  { %v5952_v55 = vpack.c.bf16 %v6285_v53, %v6284_v54 }
 0x217   :  { %v873_v56 = vpop.permute.xlu0 %872  ;;  %v6288_v57 = vpop.permute.xlu1 %6287 }
 0x218   :  { %v6290_v58 = vunpack.i.h.bf16 %v6288_v57  ;;  %v6289_v59 = vunpack.i.l.bf16 %v6288_v57  ;;  %5440 = vmatmul.mubr.msk.f32.vlgmr.msra.gmra.mrb[12].mxu1 %vm424_vm1, %v697_v52  ;;  %5954 = vmatprep.subr.msk.bf16.mxu0 %vm6790_vm2, %v5952_v55  ;;  %v6970_v57 = vadd.f32 %v4860_v35, %v4853_v16 }
 0x219   :  { %5447 = vmatmul.mubr.msk.f32.vlgmr.msra.gmra.mrb[6].mxu0 %vm424_vm1, %v6780_v15  ;;  %5951 = vmatpush3.bf16.xpose.msk.msra.mxu1 %vm6790_vm2, %v5946_v50  ;;  %v4856_v15 = vld [vmem:[%s7899_s1 + $0x28] sm:$0xff] }
 0x21a   :  { %v5958_v60 = vpack.c.bf16 %v6290_v58, %v6289_v59  ;;  %5453 = vmatprep.mubr.msk.f32.mxu1 %vm424_vm1, %v873_v56  ;;  %5957 = vmatpush3.bf16.xpose.msk.msra.mxu0 %vm6790_vm2, %v5952_v55  ;;  %v6902_v18 = vadd.f32 %v4856_v15, %v4852_v4  ;;  %v6961_v53 = vadd.f32 %v4860_v35, %v4856_v15 }
 0x21b   :  { %5965 = vmatprep.subr.bf16.mxu0 %v6776_v13  ;;  %v964_v61 = vpop.permute.xlu0 %963  ;;  %v875_v62 = vpop.permute.xlu1 %874 }
 0x21c   :  { %5460 = vmatprep.mubr.msk.f32.mxu0 %vm424_vm1, %v964_v61  ;;  %5960 = vmatprep.subr.msk.bf16.mxu1 %vm6790_vm2, %v5958_v60 }
 0x21f   :  { %v1055_v63 = vpop.permute.xlu0 %1054  ;;  %v966_v0 = vpop.permute.xlu1 %965 }
 0x220   :  { %5454 = vmatmul.mubr.msk.f32.vlgmr.msra.gmra.mrb[14].mxu1 %vm424_vm1, %v875_v62  ;;  %v6975_v62 = vadd.f32 %v4860_v35, %v4855_v24 }
 0x221   :  { %5461 = vmatmul.mubr.msk.f32.vlgmr.msra.gmra.mrb[8].mxu0 %vm424_vm1, %v966_v0  ;;  %5963 = vmatpush3.bf16.xpose.msk.msra.mxu1 %vm6790_vm2, %v5958_v60 }
 0x222   :  { %5467 = vmatprep.mubr.msk.f32.mxu1 %vm424_vm1, %v1055_v63  ;;  %5967 = vmatpush3.bf16.msra.mxu0 %v6776_v13  ;;  %v4854_v13 = vld [vmem:[%s7899_s1 + $0x18] sm:$0xff]  ;;  %s6581_s1 = smov 32  }
 0x223   :  { %v1057_v1 = vpop.permute.xlu1 %1056  ;;  %v6900_v17 = vadd.f32 %v4854_v13, %v4852_v4  ;;  %v6959_v52 = vadd.f32 %v4860_v35, %v4854_v13 }
 0x228   :  { %5468 = vmatmul.mubr.msk.f32.vlgmr.msra.gmra.mrb[16].mxu1 %vm424_vm1, %v1057_v1 }
 0x26d   :  { %v5420_v7 = vpop.f32.mrb[8].mxu1 }
 0x26e   :  { %v6882_v8 = vadd.f32 %v5420_v7, %v6877_v2  ;;  %v503_v9 = vpop.f32.mrb[9].mxu1 }
 0x26f   :  { %v6885_v10 = vadd.f32 %v503_v9, %v6879_v6 }
 0x270   :  { %v1148_v11 = vsel %vm424_vm1, %v6882_v8, -inf }
 0x271   :  { %1149 = vmax.xlane.f32.xlu1 %v1148_v11  ;;  %v1145_v12 = vsel %vm424_vm1, %v6885_v10, -inf }
 0x272   :  { %1146 = vmax.xlane.f32.xlu0 %v1145_v12  ;;  %v6996_v12 = vadd.f32 %v4860_v35, %v4857_v36 }
 0x2e3   :  { %v5427_v22 = vpop.f32.mrb[10].mxu1  ;;  %v5434_v23 = vpop.f32.mrb[4].mxu0 }
 0x2e4   :  { %v6910_v26 = vadd.f32 %v5427_v22, %v6900_v17  ;;  %v6913_v27 = vadd.f32 %v5434_v23, %v6902_v18  ;;  %v594_v28 = vpop.f32.mrb[11].mxu1  ;;  %v685_v29 = vpop.f32.mrb[5].mxu0 }
 0x2e5   :  { %v6919_v31 = vadd.f32 %v594_v28, %v6904_v21  ;;  %v6936_v38 = vadd.f32 %v685_v29, %v6921_v32 }
 0x2e6   :  { %v1160_v33 = vsel %vm424_vm1, %v6913_v27, -inf  ;;  %v1154_v34 = vsel %vm424_vm1, %v6910_v26, -inf }
 0x2e7   :  { %1161 = vmax.xlane.f32.xlu1 %v1160_v33  ;;  %1155 = vmax.xlane.f32.xlu0 %v1154_v34  ;;  %v1151_v40 = vsel %vm424_vm1, %v6919_v31, -inf  ;;  %v1157_v51 = vsel %vm424_vm1, %v6936_v38, -inf }
 0x2eb   :  { %v5441_v42 = vpop.f32.mrb[12].mxu1  ;;  %1152 = vmax.xlane.f32.xlu0 %v1151_v40 }
 0x2ec   :  { %v6945_v43 = vadd.f32 %v5441_v42, %v6933_v37  ;;  %v5448_v44 = vpop.f32.mrb[6].mxu0  ;;  %v776_v45 = vpop.f32.mrb[13].mxu1 }
 0x2ed   :  { %v863_v47 = vpop.f32.mrb[7].mxu0  ;;  %v6950_v48 = vadd.f32 %v5448_v44, %v6938_v39  ;;  %v6953_v49 = vadd.f32 %v776_v45, %v6942_v41 }
 0x2ee   :  { %v1166_v50 = vsel %vm424_vm1, %v6945_v43, -inf  ;;  %v6964_v54 = vadd.f32 %v863_v47, %v6947_v46 }
 0x2ef   :  { %1167 = vmax.xlane.f32.xlu1 %v1166_v50  ;;  %1158 = vmax.xlane.f32.xlu0 %v1157_v51  ;;  %v1172_v55 = vsel %vm424_vm1, %v6950_v48, -inf  ;;  %v1163_v56 = vsel %vm424_vm1, %v6953_v49, -inf }
 0x2f0   :  { %v1169_v4 = vsel %vm424_vm1, %v6964_v54, -inf }
 0x2f3   :  { %1173 = vmax.xlane.f32.xlu1 %v1172_v55  ;;  %v5455_v58 = vpop.f32.mrb[14].mxu1  ;;  %1164 = vmax.xlane.f32.xlu0 %v1163_v56 }
 0x2f4   :  { %v5462_v59 = vpop.f32.mrb[8].mxu0  ;;  %v6973_v60 = vadd.f32 %v5455_v58, %v6959_v52  ;;  %v954_v61 = vpop.f32.mrb[15].mxu1 }
 0x2f5   :  { %v1045_v63 = vpop.f32.mrb[9].mxu0  ;;  %v6978_v0 = vadd.f32 %v5462_v59, %v6961_v53  ;;  %v6981_v1 = vadd.f32 %v954_v61, %v6970_v57 }
 0x2f6   :  { %v1178_v3 = vsel %vm424_vm1, %v6973_v60, -inf  ;;  %v6990_v7 = vadd.f32 %v1045_v63, %v6975_v62 }
 0x2f7   :  { %1179 = vmax.xlane.f32.xlu1 %v1178_v3  ;;  %1170 = vmax.xlane.f32.xlu0 %v1169_v4  ;;  %v1184_v9 = vsel %vm424_vm1, %v6978_v0, -inf  ;;  %v1175_v11 = vsel %vm424_vm1, %v6981_v1, -inf }
 0x2f8   :  { %v1181_v24 = vsel %vm424_vm1, %v6990_v7, -inf }
 0x2fb   :  { %1185 = vmax.xlane.f32.xlu1 %v1184_v9  ;;  %v5469_v13 = vpop.f32.mrb[16].mxu1  ;;  %1176 = vmax.xlane.f32.xlu0 %v1175_v11 }
 0x2fc   :  { %v6999_v15 = vadd.f32 %v5469_v13, %v6987_v5  ;;  %v1136_v16 = vpop.f32.mrb[17].mxu1 }
 0x2fd   :  { %v7002_v22 = vadd.f32 %v1136_v16, %v6996_v12 }
 0x2fe   :  { %v1190_v23 = vsel %vm424_vm1, %v6999_v15, -inf  ;;  %v1150_v33 = vpop.xlane.xlu1 %1149 }
 0x2ff   :  { %1191 = vmax.xlane.f32.xlu1 %v1190_v23  ;;  %1182 = vmax.xlane.f32.xlu0 %v1181_v24  ;;  %v1187_v28 = vsel %vm424_vm1, %v7002_v22, -inf  ;;  %v1147_v29 = vpop.xlane.xlu0 %1146  ;;  %v1194_v34 = vsub.f32 %v6882_v8, %v1150_v33 }
 0x300   :  { %v1193_v30 = vsub.f32 %v6885_v10, %v1147_v29 }
 0x301   :  { %v1211_v36 = vmul.f32 1.442695, %v1194_v34 }
 0x302   :  { %v1209_v35 = vmul.f32 1.442695, %v1193_v30 }
 0x303   :  { %1188 = vmax.xlane.f32.xlu0 %v1187_v28 }
 0x304   :  { %6389 = vpow2.f32 %v1209_v35 }
 0x305   :  { %6391 = vpow2.f32 %v1211_v36 }
 0x30e   :  { %v7020_v40 = vpop.eup %6389 }
 0x30f   :  { %v1241_v42 = vsel %vm424_vm1, %v7020_v40, 0.0  ;;  %v7024_v44 = vpop.eup %6391 }
 0x310   :  { %6297 = vrot.lane.b32.xlu1 %v6778_v14, %s6578_s26 }
 0x314   :  { %6302 = vrot.lane.b32.xlu1 %v6778_v14, %s6579_s27 }
 0x318   :  { %6307 = vrot.lane.b32.xlu1 %v6784_v19, %s6577_s25 }
 0x319   :  { %6292 = vrot.lane.b32.xlu0 %v6778_v14, %s6577_s25  ;;  %v1244_v14 = vsel %vm424_vm1, %v7024_v44, 0.0 }
 0x338   :  { %1242 = vadd.xlane.f32.xlu0 %v1241_v42 }
 0x33c   :  { %1245 = vadd.xlane.f32.xlu1 %v1244_v14 }
 0x374   :  { %v1162_v10 = vpop.xlane.xlu1 %1161  ;;  %v1156_v45 = vpop.xlane.xlu0 %1155 }
 0x375   :  { %v1198_v8 = vsub.f32 %v6913_v27, %v1162_v10  ;;  %v1196_v47 = vsub.f32 %v6910_v26, %v1156_v45 }
 0x377   :  { %v1215_v50 = vmul.f32 1.442695, %v1196_v47  ;;  %v1219_v51 = vmul.f32 1.442695, %v1198_v8 }
 0x378   :  { %v1153_v55 = vpop.xlane.xlu0 %1152 }
 0x379   :  { %v1195_v56 = vsub.f32 %v6919_v31, %v1153_v55  ;;  %6393 = vpow2.f32 %v1215_v50 }
 0x37a   :  { %6395 = vpow2.f32 %v1219_v51 }
 0x37b   :  { %v1213_v58 = vmul.f32 1.442695, %v1195_v56 }
 0x37c   :  { %v1168_v59 = vpop.xlane.xlu1 %1167  ;;  %v1159_v61 = vpop.xlane.xlu0 %1158 }
 0x37d   :  { %6397 = vpow2.f32 %v1213_v58  ;;  %v1200_v63 = vsub.f32 %v6945_v43, %v1168_v59  ;;  %v1197_v3 = vsub.f32 %v6936_v38, %v1159_v61 }
 0x37f   :  { %v1223_v4 = vmul.f32 1.442695, %v1200_v63  ;;  %v1217_v9 = vmul.f32 1.442695, %v1197_v3 }
 0x380   :  { %v1174_v27 = vpop.xlane.xlu1 %1173  ;;  %v1165_v11 = vpop.xlane.xlu0 %1164 }
 0x381   :  { %6399 = vpow2.f32 %v1223_v4  ;;  %v1202_v26 = vsub.f32 %v6950_v48, %v1174_v27  ;;  %v1199_v13 = vsub.f32 %v6953_v49, %v1165_v11 }
 0x382   :  { %6401 = vpow2.f32 %v1217_v9 }
 0x383   :  { %v1227_v31 = vmul.f32 1.442695, %v1202_v26  ;;  %v1221_v16 = vmul.f32 1.442695, %v1199_v13  ;;  %v7035_v23 = vpop.eup %6393 }
 0x384   :  { %v1180_v24 = vpop.xlane.xlu1 %1179  ;;  %v1171_v28 = vpop.xlane.xlu0 %1170  ;;  %v1250_v29 = vsel %vm424_vm1, %v7035_v23, 0.0 }
 0x385   :  { %6403 = vpow2.f32 %v1227_v31  ;;  %v1204_v43 = vsub.f32 %v6973_v60, %v1180_v24  ;;  %v1201_v38 = vsub.f32 %v6964_v54, %v1171_v28  ;;  %v7041_v30 = vpop.eup %6395  ;;  %1251 = vadd.xlane.f32.xlu1 %v1250_v29 }
 0x386   :  { %6405 = vpow2.f32 %v1221_v16  ;;  %v1256_v42 = vsel %vm424_vm1, %v7041_v30, 0.0 }
 0x387   :  { %v7043_v48 = vpop.eup %6397  ;;  %v1231_v49 = vmul.f32 1.442695, %v1204_v43  ;;  %v1225_v33 = vmul.f32 1.442695, %v1201_v38 }
 0x388   :  { %v1186_v34 = vpop.xlane.xlu1 %1185  ;;  %v1177_v35 = vpop.xlane.xlu0 %1176  ;;  %v1247_v36 = vsel %vm424_vm1, %v7043_v48, 0.0 }
 0x389   :  { %6407 = vpow2.f32 %v1231_v49  ;;  %v1206_v60 = vsub.f32 %v6978_v0, %v1186_v34  ;;  %v1203_v54 = vsub.f32 %v6981_v1, %v1177_v35  ;;  %1248 = vadd.xlane.f32.xlu0 %v1247_v36  ;;  %1257 = vadd.xlane.f32.xlu1 %v1256_v42 }
 0x38a   :  { %6409 = vpow2.f32 %v1225_v33 }
 0x38b   :  { %v7051_v14 = vpop.eup %6399  ;;  %v1235_v10 = vmul.f32 1.442695, %v1206_v60  ;;  %v1229_v45 = vmul.f32 1.442695, %v1203_v54 }
 0x38c   :  { %v7053_v8 = vpop.eup %6401  ;;  %v1192_v47 = vpop.xlane.xlu1 %1191  ;;  %v1262_v51 = vsel %vm424_vm1, %v7051_v14, 0.0 }
 0x38d   :  { %v1183_v50 = vpop.xlane.xlu0 %1182  ;;  %6411 = vpow2.f32 %v1235_v10  ;;  %v1208_v0 = vsub.f32 %v6999_v15, %v1192_v47  ;;  %v1253_v55 = vsel %vm424_vm1, %v7053_v8, 0.0  ;;  %1263 = vadd.xlane.f32.xlu1 %v1262_v51 }
 0x38e   :  { %v1205_v1 = vsub.f32 %v6990_v7, %v1183_v50  ;;  %6413 = vpow2.f32 %v1229_v45  ;;  %1254 = vadd.xlane.f32.xlu0 %v1253_v55 }
 0x38f   :  { %v7061_v56 = vpop.eup %6403  ;;  %v1239_v58 = vmul.f32 1.442695, %v1208_v0 }
 0x390   :  { %v1233_v59 = vmul.f32 1.442695, %v1205_v1  ;;  %v7063_v61 = vpop.eup %6405  ;;  %v6298_v63 = vpop.permute.xlu1 %6297  ;;  %v1268_v4 = vsel %vm424_vm1, %v7061_v56, 0.0 }
 0x391   :  { %v1189_v3 = vpop.xlane.xlu0 %1188  ;;  %6415 = vpow2.f32 %v1239_v58  ;;  %v6300_v15 = vunpack.i.h.bf16 %v6298_v63  ;;  %v6299_v7 = vunpack.i.l.bf16 %v6298_v63  ;;  %1269 = vadd.xlane.f32.xlu1 %v1268_v4  ;;  %v1259_v27 = vsel %vm424_vm1, %v7063_v61, 0.0 }
 0x392   :  { %v1207_v9 = vsub.f32 %v7002_v22, %v1189_v3  ;;  %6417 = vpow2.f32 %v1233_v59  ;;  %1260 = vadd.xlane.f32.xlu0 %v1259_v27 }
 0x393   :  { %v7070_v11 = vpop.eup %6407  ;;  %v5972_v13 = vpack.c.bf16 %v6300_v15, %v6299_v7 }
 0x394   :  { %v1237_v26 = vmul.f32 1.442695, %v1207_v9  ;;  %v7072_v31 = vpop.eup %6409  ;;  %v6303_v16 = vpop.permute.xlu1 %6302  ;;  %v1274_v28 = vsel %vm424_vm1, %v7070_v11, 0.0 }
 0x395   :  { %v6293_v24 = vpop.permute.xlu0 %6292  ;;  %5973 = vmatprep.subr.bf16.mxu0 %v5972_v13  ;;  %v6305_v22 = vunpack.i.h.bf16 %v6303_v16  ;;  %v6304_v38 = vunpack.i.l.bf16 %v6303_v16  ;;  %1275 = vadd.xlane.f32.xlu1 %v1274_v28  ;;  %v1265_v49 = vsel %vm424_vm1, %v7072_v31, 0.0 }
 0x396   :  { %6419 = vpow2.f32 %v1237_v26  ;;  %v6295_v43 = vunpack.i.h.bf16 %v6293_v24  ;;  %v6294_v29 = vunpack.i.l.bf16 %v6293_v24  ;;  %1266 = vadd.xlane.f32.xlu0 %v1265_v49 }
 0x397   :  { %v7078_v33 = vpop.eup %6411  ;;  %v5976_v54 = vpack.c.bf16 %v6305_v22, %v6304_v38 }
 0x398   :  { %v7080_v34 = vpop.eup %6413  ;;  %v1280_v35 = vsel %vm424_vm1, %v7078_v33, 0.0  ;;  %v5968_v36 = vpack.c.bf16 %v6295_v43, %v6294_v29  ;;  %v6308_v0 = vpop.permute.xlu1 %6307 }
 0x399   :  { %v1271_v60 = vsel %vm424_vm1, %v7080_v34, 0.0  ;;  %1281 = vadd.xlane.f32.xlu1 %v1280_v35  ;;  %v6309_v24 = vunpack.i.l.bf16 %v6308_v0 }
 0x39a   :  { %5969 = vmatprep.subr.bf16.mxu1 %v5968_v36  ;;  %1272 = vadd.xlane.f32.xlu0 %v1271_v60 }
 0x39b   :  { %v7086_v42 = vpop.eup %6415  ;;  %5971 = vmatpush3.bf16.msra.mxu1 %v5968_v36 }
 0x39c   :  { %v7088_v10 = vpop.eup %6417  ;;  %5977 = vmatprep.subr.bf16.mxu1 %v5976_v54  ;;  %v1286_v45 = vsel %vm424_vm1, %v7086_v42, 0.0 }
 0x39d   :  { %v1277_v47 = vsel %vm424_vm1, %v7088_v10, 0.0  ;;  %1287 = vadd.xlane.f32.xlu1 %v1286_v45 }
 0x39e   :  { %1278 = vadd.xlane.f32.xlu0 %v1277_v47 }
 0x3a0   :  { %v7094_v50 = vpop.eup %6419 }
 0x3a1   :  { %v1283_v51 = vsel %vm424_vm1, %v7094_v50, 0.0 }
 0x3a2   :  { %1284 = vadd.xlane.f32.xlu0 %v1283_v51 }
 0x3ae   :  { %6317 = vrot.lane.b32.xlu1 %v6784_v19, %s6579_s27 }
 0x3b8   :  { %6312 = vrot.lane.b32.xlu0 %v6784_v19, %s6578_s26 }
 0x3c5   :  { %v1243_v1 = vpop.xlane.xlu0 %1242 }
 0x3c6   :  { %6421 = vrcp.f32 %v1243_v1 }
 0x3c9   :  { %v1246_v55 = vpop.xlane.xlu1 %1245 }
 0x3ca   :  { %6423 = vrcp.f32 %v1246_v55 }
 0x3d0   :  { %v6422_v58 = vpop.eup %6421 }
 0x3d1   :  { %v1305_v59 = vmul.f32 %v6422_v58, %v7020_v40 }
 0x3d3   :  { %5474 = vmatprep.mubr.msk.f32.mxu0 %vm424_vm1, %v1305_v59 }
 0x3d4   :  { %v6424_v63 = vpop.eup %6423 }
 0x3d5   :  { %v1306_v3 = vmul.f32 %v6424_v63, %v7024_v44  ;;  %v6310_v44 = vunpack.i.h.bf16 %v6308_v0 }
 0x3d7   :  { %5475 = vmatmul.mubr.msk.f32.vlgmr.msra.gmra.mrb[10].mxu0 %vm424_vm1, %v1306_v3  ;;  %v5984_v38 = vpack.c.bf16 %v6310_v44, %v6309_v24  ;;  %v2072_v24 = vld [vmem:[%s7905_s7 + $0x8] sm:$0xff] }
 0x3d8   :  { %5975 = vmatpush3.bf16.msra.mxu0 %v5972_v13 }
 0x3d9   :  { %5981 = vmatprep.subr.bf16.mxu0 %v6786_v20 }
 0x412   :  { %v1252_v4 = vpop.xlane.xlu1 %1251 }
 0x413   :  { %6425 = vrcp.f32 %v1252_v4 }
 0x416   :  { %v1249_v19 = vpop.xlane.xlu0 %1248  ;;  %v1258_v15 = vpop.xlane.xlu1 %1257 }
 0x417   :  { %6427 = vrcp.f32 %v1249_v19 }
 0x418   :  { %6429 = vrcp.f32 %v1258_v15 }
 0x41a   :  { %v1264_v7 = vpop.xlane.xlu1 %1263 }
 0x41b   :  { %v1255_v9 = vpop.xlane.xlu0 %1254 }
 0x41c   :  { %6431 = vrcp.f32 %v1255_v9 }
 0x41d   :  { %v6426_v27 = vpop.eup %6425  ;;  %6433 = vrcp.f32 %v1264_v7 }
 0x41e   :  { %v1270_v40 = vpop.xlane.xlu1 %1269  ;;  %v1308_v43 = vmul.f32 %v6426_v27, %v7035_v23 }
 0x41f   :  { %v1261_v26 = vpop.xlane.xlu0 %1260 }
 0x420   :  { %6435 = vrcp.f32 %v1261_v26 }
 0x421   :  { %v6428_v16 = vpop.eup %6427  ;;  %6437 = vrcp.f32 %v1270_v40 }
 0x422   :  { %v1307_v13 = vmul.f32 %v6428_v16, %v7043_v48  ;;  %v1276_v28 = vpop.xlane.xlu1 %1275  ;;  %v6430_v29 = vpop.eup %6429 }
 0x423   :  { %v1267_v22 = vpop.xlane.xlu0 %1266  ;;  %v1310_v23 = vmul.f32 %v6430_v29, %v7041_v30 }
 0x424   :  { %5481 = vmatprep.mubr.msk.f32.mxu1 %vm424_vm1, %v1307_v13  ;;  %6439 = vrcp.f32 %v1267_v22  ;;  %v2075_v22 = vld [vmem:[%s7905_s7 + $0x20] sm:$0xff] }
 0x425   :  { %5482 = vmatmul.mubr.msk.f32.vlgmr.msra.gmra.mrb[18].mxu1 %vm424_vm1, %v1308_v43  ;;  %6441 = vrcp.f32 %v1276_v28 }
 0x426   :  { %5979 = vmatpush3.bf16.msra.mxu1 %v5976_v54  ;;  %v6432_v49 = vpop.eup %6431  ;;  %v1282_v35 = vpop.xlane.xlu1 %1281 }
 0x427   :  { %5985 = vmatprep.subr.bf16.mxu1 %v5984_v38  ;;  %v1273_v36 = vpop.xlane.xlu0 %1272  ;;  %v1309_v48 = vmul.f32 %v6432_v49, %v7053_v8  ;;  %v6434_v60 = vpop.eup %6433  ;;  %v2077_v49 = vld [vmem:[%s7905_s7 + $0x30] sm:$0xff] }
 0x428   :  { %6443 = vrcp.f32 %v1273_v36  ;;  %v1312_v0 = vmul.f32 %v6434_v60, %v7051_v14 }
 0x429   :  { %5488 = vmatprep.mubr.msk.f32.mxu0 %vm424_vm1, %v1309_v48 }
 0x42a   :  { %v6436_v45 = vpop.eup %6435  ;;  %5489 = vmatmul.mubr.msk.f32.vlgmr.msra.gmra.mrb[12].mxu0 %vm424_vm1, %v1310_v23  ;;  %v1288_v47 = vpop.xlane.xlu1 %1287 }
 0x42b   :  { %5983 = vmatpush3.bf16.msra.mxu0 %v6786_v20  ;;  %v1279_v54 = vpop.xlane.xlu0 %1278  ;;  %v1311_v51 = vmul.f32 %v6436_v45, %v7063_v61  ;;  %v6438_v1 = vpop.eup %6437 }
 0x42c   :  { %6445 = vrcp.f32 %v1279_v54  ;;  %v1314_v61 = vmul.f32 %v6438_v1, %v7061_v56 }
 0x42d   :  { %6447 = vrcp.f32 %v1282_v35  ;;  %5495 = vmatprep.mubr.msk.f32.mxu1 %vm424_vm1, %v1311_v51  ;;  %v2078_v35 = vld [vmem:[%s7905_s7 + $0x38] sm:$0xff] }
 0x42e   :  { %v6440_v30 = vpop.eup %6439  ;;  %5496 = vmatmul.mubr.msk.f32.vlgmr.msra.gmra.mrb[20].mxu1 %vm424_vm1, %v1312_v0  ;;  %v6318_v8 = vpop.permute.xlu1 %6317  ;;  %6449 = vrcp.f32 %v1288_v47  ;;  %v6008_v36 = vpack.c.bf16 %v2078_v35, %v2077_v49 }
 0x42f   :  { %5987 = vmatpush3.bf16.msra.mxu1 %v5984_v38  ;;  %v6320_v55 = vunpack.i.h.bf16 %v6318_v8  ;;  %v6319_v58 = vunpack.i.l.bf16 %v6318_v8  ;;  %v1285_v59 = vpop.xlane.xlu0 %1284  ;;  %v1313_v20 = vmul.f32 %v6440_v30, %v7072_v31  ;;  %v6442_v63 = vpop.eup %6441  ;;  %v2076_v38 = vld [vmem:[%s7905_s7 + $0x28] sm:$0xff] }
 0x430   :  { %6451 = vrcp.f32 %v1285_v59  ;;  %v1316_v9 = vmul.f32 %v6442_v63, %v7070_v11  ;;  %v6004_v29 = vpack.c.bf16 %v2076_v38, %v2075_v22  ;;  %v6550_v38 = vld [vmem:[%s7898_s0] sm:$0xff] }
 0x431   :  { %v5992_v14 = vpack.c.bf16 %v6320_v55, %v6319_v58  ;;  %5502 = vmatprep.mubr.msk.f32.mxu0 %vm424_vm1, %v1313_v20 }
 0x432   :  { %v6444_v3 = vpop.eup %6443  ;;  %5503 = vmatmul.mubr.msk.f32.vlgmr.msra.gmra.mrb[14].mxu0 %vm424_vm1, %v1314_v61 }
 0x433   :  { %v6313_v4 = vpop.permute.xlu0 %6312  ;;  %5993 = vmatprep.subr.bf16.mxu1 %v5992_v14  ;;  %v1315_v19 = vmul.f32 %v6444_v3, %v7080_v34 }
 0x434   :  { %v6315_v15 = vunpack.i.h.bf16 %v6313_v4  ;;  %v6314_v7 = vunpack.i.l.bf16 %v6313_v4 }
 0x435   :  { %5509 = vmatprep.mubr.msk.f32.mxu1 %vm424_vm1, %v1315_v19 }
 0x436   :  { %v6446_v31 = vpop.eup %6445  ;;  %5510 = vmatmul.mubr.msk.f32.vlgmr.msra.gmra.mrb[22].mxu1 %vm424_vm1, %v1316_v9  ;;  %v5988_v56 = vpack.c.bf16 %v6315_v15, %v6314_v7 }
 0x437   :  { %v6448_v40 = vpop.eup %6447  ;;  %5995 = vmatpush3.bf16.msra.mxu1 %v5992_v14  ;;  %v1317_v27 = vmul.f32 %v6446_v31, %v7088_v10  ;;  %v2071_v10 = vld [vmem:[%s7905_s7] sm:$0xff] }
 0x438   :  { %5989 = vmatprep.subr.bf16.mxu0 %v5988_v56  ;;  %v6450_v26 = vpop.eup %6449  ;;  %v1318_v16 = vmul.f32 %v6448_v40, %v7078_v33  ;;  %v2073_v33 = vld [vmem:[%s7905_s7 + $0x10] sm:$0xff] }
 0x439   :  { %5991 = vmatpush3.bf16.msra.mxu0 %v5988_v56  ;;  %5516 = vmatprep.mubr.msk.f32.mxu0 %vm424_vm1, %v1317_v27  ;;  %v1320_v44 = vmul.f32 %v6450_v26, %v7086_v42  ;;  %v2074_v42 = vld [vmem:[%s7905_s7 + $0x18] sm:$0xff] }
 0x43a   :  { %v6452_v34 = vpop.eup %6451  ;;  %v6000_v13 = vpack.c.bf16 %v2074_v42, %v2073_v33 }
 0x43b   :  { %v1319_v11 = vmul.f32 %v6452_v34, %v7094_v50  ;;  %v5996_v50 = vpack.c.bf16 %v2072_v24, %v2071_v10 }
 0x43c   :  { %5517 = vmatmul.mubr.msk.f32.vlgmr.msra.gmra.mrb[16].mxu0 %vm424_vm1, %v1318_v16 }
 0x43d   :  { %5523 = vmatprep.mubr.msk.f32.mxu1 %vm424_vm1, %v1319_v11  ;;  %5997 = vmatprep.subr.bf16.mxu0 %v5996_v50 }
 0x43e   :  { %5524 = vmatmul.mubr.msk.f32.vlgmr.msra.gmra.mrb[24].mxu1 %vm424_vm1, %v1320_v44  ;;  %5999 = vmatpush3.bf16.msra.mxu0 %v5996_v50 }
 0x43f   :  { %6001 = vmatprep.subr.bf16.mxu0 %v6000_v13 }
 0x442   :  { %6003 = vmatpush3.bf16.msra.mxu0 %v6000_v13 }
 0x443   :  { %6005 = vmatprep.subr.bf16.mxu0 %v6004_v29 }
 0x446   :  { %6007 = vmatpush3.bf16.msra.mxu0 %v6004_v29 }
 0x447   :  { %6009 = vmatprep.subr.bf16.mxu0 %v6008_v36 }
 0x44a   :  { %6011 = vmatpush3.bf16.msra.mxu0 %v6008_v36 }
 0x4aa   :  { %v5476_v28 = vpop.f32.mrb[10].mxu0 }
 0x4ab   :  { %v1393_v43 = vpop.f32.mrb[11].mxu0 }
 0x4f8   :  { %v5483_v48 = vpop.f32.mrb[18].mxu1 }
 0x4f9   :  { %1669 = vrot.lane.b32.xlu1 %v5483_v48, %s6580_s14  ;;  %v1482_v23 = vpop.f32.mrb[19].mxu1 }
 0x4fa   :  { %1667 = vrot.lane.b32.xlu0 %v1482_v23, %s6580_s14 }
 0x4fd   :  { %v5490_v60 = vpop.f32.mrb[12].mxu0 }
 0x4fe   :  { %v1569_v45 = vpop.f32.mrb[13].mxu0  ;;  %1677 = vrot.lane.b32.xlu1 %v5490_v60, %s6581_s1 }
 0x4ff   :  { %1675 = vrot.lane.b32.xlu0 %v1569_v45, %s6581_s1  ;;  %v6551_v45 = vld [vmem:[%s7898_s0 + $0x18] sm:$0xff] }
 0x501   :  { %v5497_v47 = vpop.f32.mrb[20].mxu1 }
 0x502   :  { %1685 = vrot.lane.b32.xlu1 %v5497_v47, %s6582_s2  ;;  %v1656_v54 = vpop.f32.mrb[21].mxu1 }
 0x503   :  { %1683 = vrot.lane.b32.xlu0 %v1656_v54, %s6582_s2  ;;  %v6552_v54 = vld [vmem:[%s7898_s0 + $0x10] sm:$0xff] }
 0x505   :  { %v5504_v51 = vpop.f32.mrb[14].mxu0 }
 0x506   :  { %v1769_v0 = vpop.f32.mrb[15].mxu0 }
 0x509   :  { %v5511_v1 = vpop.f32.mrb[22].mxu1 }
 0x50a   :  { %2045 = vrot.lane.b32.xlu1 %v5511_v1, %s6580_s14  ;;  %v1858_v30 = vpop.f32.mrb[23].mxu1  ;;  %v2223_v1 = vld [vmem:[%s7907_s9] sm:$0xff] }
 0x50b   :  { %2043 = vrot.lane.b32.xlu0 %v1858_v30, %s6580_s14  ;;  %v2224_v30 = vld [vmem:[%s7907_s9 + $0x8] sm:$0xff] }
 0x50f   :  { %v5518_v8 = vpop.f32.mrb[16].mxu0 }
 0x510   :  { %v1945_v55 = vpop.f32.mrb[17].mxu0  ;;  %2053 = vrot.lane.b32.xlu1 %v5518_v8, %s6581_s1 }
 0x511   :  { %2051 = vrot.lane.b32.xlu0 %v1945_v55, %s6581_s1  ;;  %v5525_v58 = vpop.f32.mrb[24].mxu1 }
 0x512   :  { %v2032_v59 = vpop.f32.mrb[25].mxu1 }
 0x514   :  { %2061 = vrot.lane.b32.xlu1 %v5525_v58, %s6582_s2  ;;  %v6012_v58 = vpack.c.bf16 %v2224_v30, %v2223_v1 }
 0x515   :  { %2059 = vrot.lane.b32.xlu0 %v2032_v59, %s6582_s2  ;;  %v2225_v59 = vld [vmem:[%s7907_s9 + $0x10] sm:$0xff] }
 0x516   :  { %6013 = vmatprep.subr.bf16.mxu1 %v6012_v58 }
 0x517   :  { %6015 = vmatpush3.bf16.msra.mxu1 %v6012_v58 }
 0x56b   :  { %v1670_v20 = vpop.permute.xlu1 %1669 }
 0x56c   :  { %v1668_v61 = vpop.permute.xlu0 %1667  ;;  %v1690_v19 = vsel %vm424_vm1, %v5476_v28, %v1670_v20  ;;  %v6549_v28 = vld [vmem:[%s7898_s0 + $0x8] sm:$0xff]  ;;  %v2226_v20 = vld [vmem:[%s7907_s9 + $0x18] sm:$0xff] }
 0x56d   :  { %v1689_v3 = vsel %vm424_vm1, %v1393_v43, %v1668_v61 }
 0x570   :  { %v1678_v63 = vpop.permute.xlu1 %1677 }
 0x571   :  { %v1676_v14 = vpop.permute.xlu0 %1675  ;;  %v1693_v9 = vsel %vm1691_vm3, %v1690_v19, %v1678_v63  ;;  %v6016_v63 = vpack.c.bf16 %v2226_v20, %v2225_v59  ;;  %v2229_v19 = vld [vmem:[%s7907_s9 + $0x30] sm:$0xff] }
 0x572   :  { %v1692_v15 = vsel %vm1691_vm3, %v1689_v3, %v1676_v14  ;;  %v2227_v14 = vld [vmem:[%s7907_s9 + $0x20] sm:$0xff]  ;;  %v2228_v3 = vld [vmem:[%s7907_s9 + $0x28] sm:$0xff] }
 0x573   :  { %6017 = vmatprep.subr.bf16.mxu1 %v6016_v63 }
 0x574   :  { %v1686_v4 = vpop.permute.xlu1 %1685  ;;  %6019 = vmatpush3.bf16.msra.mxu1 %v6016_v63 }
 0x575   :  { %v1684_v7 = vpop.permute.xlu0 %1683  ;;  %v1696_v56 = vsel %vm1694_vm4, %v1693_v9, %v1686_v4  ;;  %v6020_v4 = vpack.c.bf16 %v2228_v3, %v2227_v14  ;;  %v2332_v9 = vld [vmem:[%s7908_s10] sm:$0xff] }
 0x576   :  { %v1695_v31 = vsel %vm1694_vm4, %v1692_v15, %v1684_v7  ;;  %v2230_v15 = vld [vmem:[%s7907_s9 + $0x38] sm:$0xff] }
 0x577   :  { %5542 = vmatprep.mubr.msk.f32.mxu0 %vm93_vm0, %v1695_v31  ;;  %6021 = vmatprep.subr.bf16.mxu1 %v6020_v4  ;;  %v6024_v7 = vpack.c.bf16 %v2230_v15, %v2229_v19  ;;  %v2333_v31 = vld [vmem:[%s7908_s10 + $0x8] sm:$0xff] }
 0x578   :  { %5543 = vmatmul.mubr.msk.f32.vlgmr.msra.gmra.mrb[18].mxu0 %vm93_vm0, %v1696_v56  ;;  %6023 = vmatpush3.bf16.msra.mxu1 %v6020_v4  ;;  %v2334_v56 = vld [vmem:[%s7908_s10 + $0x10] sm:$0xff] }
 0x579   :  { %6025 = vmatprep.subr.bf16.mxu1 %v6024_v7 }
 0x57c   :  { %v2046_v40 = vpop.permute.xlu1 %2045  ;;  %6027 = vmatpush3.bf16.msra.mxu1 %v6024_v7 }
 0x57d   :  { %v2044_v27 = vpop.permute.xlu0 %2043  ;;  %v2066_v44 = vsel %vm424_vm1, %v5504_v51, %v2046_v40  ;;  %v6028_v40 = vpack.c.bf16 %v2333_v31, %v2332_v9 }
 0x57e   :  { %v2065_v16 = vsel %vm424_vm1, %v1769_v0, %v2044_v27  ;;  %v2335_v27 = vld [vmem:[%s7908_s10 + $0x18] sm:$0xff] }
 0x57f   :  { %6029 = vmatprep.subr.bf16.mxu0 %v6028_v40 }
 0x580   :  { %6031 = vmatpush3.bf16.msra.mxu0 %v6028_v40  ;;  %v2346_v40 = vld [vmem:[%s7908_s10 + $0x70] sm:$0xff] }
 0x582   :  { %v2054_v26 = vpop.permute.xlu1 %2053 }
 0x583   :  { %v2052_v34 = vpop.permute.xlu0 %2051  ;;  %v2068_v33 = vsel %vm1691_vm3, %v2066_v44, %v2054_v26  ;;  %v6032_v26 = vpack.c.bf16 %v2335_v27, %v2334_v56  ;;  %v2338_v44 = vld [vmem:[%s7908_s10 + $0x30] sm:$0xff]  ;;  %v2347_v27 = vld [vmem:[%s7908_s10 + $0x78] sm:$0xff] }
 0x584   :  { %v2067_v10 = vsel %vm1691_vm3, %v2065_v16, %v2052_v34  ;;  %v2336_v34 = vld [vmem:[%s7908_s10 + $0x20] sm:$0xff]  ;;  %v2337_v16 = vld [vmem:[%s7908_s10 + $0x28] sm:$0xff] }
 0x585   :  { %6033 = vmatprep.subr.bf16.mxu0 %v6032_v26 }
 0x586   :  { %v2062_v11 = vpop.permute.xlu1 %2061  ;;  %6035 = vmatpush3.bf16.msra.mxu0 %v6032_v26  ;;  %v6056_v26 = vpack.c.bf16 %v2347_v27, %v2346_v40  ;;  %v4963_v40 = vld [vmem:[%s7904_s6 + $0x70] sm:$0xff] }
 0x587   :  { %v2060_v24 = vpop.permute.xlu0 %2059  ;;  %v2070_v42 = vsel %vm1694_vm4, %v2068_v33, %v2062_v11  ;;  %v6036_v11 = vpack.c.bf16 %v2337_v16, %v2336_v34  ;;  %v2340_v33 = vld [vmem:[%s7908_s10 + $0x40] sm:$0xff] }
 0x588   :  { %v2069_v50 = vsel %vm1694_vm4, %v2067_v10, %v2060_v24  ;;  %v2339_v10 = vld [vmem:[%s7908_s10 + $0x38] sm:$0xff] }
 0x589   :  { %5545 = vmatprep.mubr.msk.f32.mxu0 %vm93_vm0, %v2069_v50  ;;  %6037 = vmatprep.subr.bf16.mxu0 %v6036_v11  ;;  %v6040_v24 = vpack.c.bf16 %v2339_v10, %v2338_v44  ;;  %v2341_v50 = vld [vmem:[%s7908_s10 + $0x48] sm:$0xff] }
 0x58a   :  { %5546 = vmatmul.mubr.msk.f32.gmra.mrb[20].mxu0 %vm93_vm0, %v2070_v42  ;;  %v6044_v42 = vpack.c.bf16 %v2341_v50, %v2340_v33 }
 0x58b   :  { %6039 = vmatpush3.bf16.msra.mxu0 %v6036_v11 }
 0x58c   :  { %6041 = vmatprep.subr.bf16.mxu0 %v6040_v24 }
 0x58f   :  { %6043 = vmatpush3.bf16.msra.mxu0 %v6040_v24 }
 0x590   :  { %6045 = vmatprep.subr.bf16.mxu0 %v6044_v42 }
 0x593   :  { %6047 = vmatpush3.bf16.msra.mxu0 %v6044_v42 }
 0x64b   :  { %v5544_v13 = vpop.f32.mrb[18].mxu0 }
 0x64c   :  { %v7191_v43 = vadd.f32 %v6549_v28, %v5544_v13  ;;  %v2157_v22 = vpop.f32.mrb[19].mxu0  ;;  %v2342_v13 = vld [vmem:[%s7908_s10 + $0x50] sm:$0xff]  ;;  %v2343_v28 = vld [vmem:[%s7908_s10 + $0x58] sm:$0xff] }
 0x64d   :  { %v7196_v29 = vadd.f32 %v6550_v38, %v2157_v22  ;;  %v6048_v22 = vpack.c.bf16 %v2343_v28, %v2342_v13  ;;  %v2344_v38 = vld [vmem:[%s7908_s10 + $0x60] sm:$0xff] }
 0x64e   :  { %v2182_v49 = vmul.f32 %v7191_v43, %v7191_v43 }
 0x64f   :  { %v2181_v35 = vmul.f32 %v7196_v29, %v7196_v29  ;;  %6049 = vmatprep.subr.bf16.mxu0 %v6048_v22 }
 0x650   :  { %v2188_v36 = vsel %vm93_vm0, %v2182_v49, 0.0  ;;  %v2345_v49 = vld [vmem:[%s7908_s10 + $0x68] sm:$0xff]  ;;  %6051 = vmatpush3.bf16.msra.mxu0 %v6048_v22 }
 0x651   :  { %2189 = vadd.xlane.f32.xlu1 %v2188_v36  ;;  %v2185_v48 = vsel %vm93_vm0, %v2181_v35, 0.0  ;;  %v6052_v35 = vpack.c.bf16 %v2345_v49, %v2344_v38 }
 0x652   :  { %2186 = vadd.xlane.f32.xlu0 %v2185_v48 }
 0x653   :  { %6053 = vmatprep.subr.bf16.mxu0 %v6052_v35 }
 0x654   :  { %6055 = vmatpush3.bf16.msra.mxu0 %v6052_v35 }
 0x655   :  { %6057 = vmatprep.subr.bf16.mxu0 %v6056_v26 }
 0x658   :  { %6059 = vmatpush3.bf16.msra.mxu0 %v6056_v26  ;;  %v4964_v26 = vld [vmem:[%s7904_s6 + $0x78] sm:$0xff] }
 0x65d   :  { %v5547_v23 = vpop.f32.mrb[20].mxu0 }
 0x65e   :  { %v2167_v60 = vpop.f32.mrb[21].mxu0  ;;  %v7207_v47 = vadd.f32 %v6551_v45, %v5547_v23 }
 0x65f   :  { %v7212_v51 = vadd.f32 %v6552_v54, %v2167_v60 }
 0x660   :  { %v2184_v55 = vmul.f32 %v7207_v47, %v7207_v47 }
 0x661   :  { %v2183_v0 = vmul.f32 %v7212_v51, %v7212_v51 }
 0x662   :  { %v2194_v61 = vsel %vm93_vm0, %v2184_v55, 0.0 }
 0x663   :  { %v2191_v8 = vsel %vm93_vm0, %v2183_v0, 0.0 }
 0x664   :  { %2192 = vadd.xlane.f32.xlu0 %v2191_v8  ;;  %v4926_v8 = vld [vmem:[%s7906_s8] ss:$0 sm:$0xff] }
 0x668   :  { %2195 = vadd.xlane.f32.xlu0 %v2194_v61 }
 0x6de   :  { %v2190_v36 = vpop.xlane.xlu1 %2189 }
 0x6df   :  { %v2198_v48 = vmul.f32 0.015625, %v2190_v36  ;;  %v2187_v23 = vpop.xlane.xlu0 %2186 }
 0x6e0   :  { %v2197_v60 = vmul.f32 0.015625, %v2187_v23 }
 0x6e1   :  { %v2202_v45 = vadd.f32 1e-06, %v2198_v48 }
 0x6e2   :  { %v2201_v54 = vadd.f32 1e-06, %v2197_v60  ;;  %v4933_v60 = vld [vmem:[%s7902_s4 + $0x40] sm:$0xff] }
 0x6e3   :  { %6453 = vrsqrt.f32 %v2202_v45  ;;  %v4934_v45 = vld [vmem:[%s7902_s4 + $0x48] sm:$0xff] }
 0x6e4   :  { %6455 = vrsqrt.f32 %v2201_v54  ;;  %v4957_v54 = vld [vmem:[%s7904_s6 + $0x40] sm:$0xff] }
 0x6ed   :  { %v6454_v0 = vpop.eup %6453 }
 0x6ee   :  { %v6456_v1 = vpop.eup %6455  ;;  %v2210_v30 = vmul.f32 %v6454_v0, %v7191_v43  ;;  %v6060_v0 = vpack.c.bf16 %v4934_v45, %v4933_v60  ;;  %v4948_v60 = vld [vmem:[%s7903_s5 + $0x58] sm:$0xff] }
 0x6ef   :  { %v2209_v55 = vmul.f32 %v6456_v1, %v7196_v29 }
 0x6f0   :  { %v2220_v61 = vmul.f32 %v4926_v8, %v2210_v30  ;;  %6061 = vmatprep.subr.bf16.mxu1 %v6060_v0 }
 0x6f1   :  { %v2193_v58 = vpop.xlane.xlu0 %2192  ;;  %v2219_v59 = vmul.f32 %v4926_v8, %v2209_v55 }
 0x6f2   :  { %v2199_v20 = vmul.f32 0.015625, %v2193_v58  ;;  %v4935_v58 = vld [vmem:[%s7902_s4 + $0x50] sm:$0xff] }
 0x6f3   :  { %5564 = vmatprep.mubr.msk.f32.mxu1 %vm93_vm0, %v2219_v59  ;;  %v4936_v59 = vld [vmem:[%s7902_s4 + $0x58] sm:$0xff] }
 0x6f4   :  { %v2203_v63 = vadd.f32 1e-06, %v2199_v20  ;;  %5565 = vmatmul.mubr.msk.f32.vlgmr.msra.gmra.mrb[26].mxu1 %vm93_vm0, %v2220_v61  ;;  %v4959_v20 = vld [vmem:[%s7904_s6 + $0x50] sm:$0xff]  ;;  %v6064_v61 = vpack.c.bf16 %v4936_v59, %v4935_v58 }
 0x6f5   :  { %v2196_v14 = vpop.xlane.xlu0 %2195  ;;  %6063 = vmatpush3.bf16.msra.mxu1 %v6060_v0 }
 0x6f6   :  { %6457 = vrsqrt.f32 %v2203_v63  ;;  %v2200_v3 = vmul.f32 0.015625, %v2196_v14  ;;  %v4960_v63 = vld [vmem:[%s7904_s6 + $0x58] sm:$0xff]  ;;  %6065 = vmatprep.subr.bf16.mxu1 %v6064_v61 }
 0x6f7   :  { %v6096_v14 = vpack.c.bf16 %v4960_v63, %v4959_v20  ;;  %v4952_v63 = vld [vmem:[%s7903_s5 + $0x78] sm:$0xff] }
 0x6f8   :  { %v2204_v4 = vadd.f32 1e-06, %v2200_v3  ;;  %v4937_v3 = vld [vmem:[%s7902_s4 + $0x60] sm:$0xff] }
 0x6f9   :  { %6067 = vmatpush3.bf16.msra.mxu1 %v6064_v61  ;;  %v4951_v61 = vld [vmem:[%s7903_s5 + $0x70] sm:$0xff] }
 0x6fa   :  { %6459 = vrsqrt.f32 %v2204_v4  ;;  %v4938_v4 = vld [vmem:[%s7902_s4 + $0x68] sm:$0xff] }
 0x700   :  { %v6458_v19 = vpop.eup %6457 }
 0x701   :  { %v2211_v15 = vmul.f32 %v6458_v19, %v7212_v51  ;;  %v4961_v19 = vld [vmem:[%s7904_s6 + $0x60] sm:$0xff] }
 0x703   :  { %v2221_v7 = vmul.f32 %v4926_v8, %v2211_v15  ;;  %v6068_v15 = vpack.c.bf16 %v4938_v4, %v4937_v3 }
 0x704   :  { %v6460_v9 = vpop.eup %6459 }
 0x705   :  { %5567 = vmatprep.mubr.msk.f32.mxu1 %vm93_vm0, %v2221_v7  ;;  %v2212_v31 = vmul.f32 %v6460_v9, %v7207_v47  ;;  %v4962_v7 = vld [vmem:[%s7904_s6 + $0x68] sm:$0xff]  ;;  %6069 = vmatprep.subr.bf16.mxu1 %v6068_v15 }
 0x706   :  { %v6100_v9 = vpack.c.bf16 %v4962_v7, %v4961_v19  ;;  %6071 = vmatpush3.bf16.msra.mxu1 %v6068_v15 }
 0x707   :  { %v2222_v56 = vmul.f32 %v4926_v8, %v2212_v31  ;;  %v4939_v31 = vld [vmem:[%s7902_s4 + $0x70] sm:$0xff] }
 0x709   :  { %5568 = vmatmul.mubr.msk.f32.gmra.mrb[28].mxu1 %vm93_vm0, %v2222_v56  ;;  %v4940_v56 = vld [vmem:[%s7902_s4 + $0x78] sm:$0xff] }
 0x70a   :  { %v6072_v27 = vpack.c.bf16 %v4940_v56, %v4939_v31 }
 0x70c   :  { %6073 = vmatprep.subr.bf16.mxu1 %v6072_v27 }
 0x70d   :  { %6075 = vmatpush3.bf16.msra.mxu1 %v6072_v27 }
 0x7c7   :  { %v5566_v34 = vpop.f32.mrb[26].mxu1 }
 0x7c8   :  { %v2309_v16 = vpop.f32.mrb[27].mxu1  ;;  %v2329_v44 = vmax.f32 %v5566_v34, 0.0  ;;  %v6104_v34 = vpack.c.bf16 %v4964_v26, %v4963_v40 }
 0x7c9   :  { %v2328_v11 = vmax.f32 %v2309_v16, 0.0  ;;  %v4945_v16 = vld [vmem:[%s7903_s5 + $0x40] sm:$0xff] }
 0x7cb   :  { %5602 = vmatprep.mubr.f32.mxu0 %v2328_v11  ;;  %v4946_v11 = vld [vmem:[%s7903_s5 + $0x48] sm:$0xff] }
 0x7cc   :  { %5603 = vmatmul.mubr.f32.vlgmr.msra.gmra.mrb[22].mxu0 %v2329_v44  ;;  %v6076_v44 = vpack.c.bf16 %v4946_v11, %v4945_v16 }
 0x7ce   :  { %6077 = vmatprep.subr.bf16.mxu1 %v6076_v44 }
 0x7dc   :  { %v5569_v10 = vpop.f32.mrb[28].mxu1 }
 0x7dd   :  { %v2319_v24 = vpop.f32.mrb[29].mxu1  ;;  %v2331_v50 = vmax.f32 %v5569_v10, 0.0 }
 0x7de   :  { %v2330_v33 = vmax.f32 %v2319_v24, 0.0 }
 0x7e0   :  { %5605 = vmatprep.mubr.f32.mxu0 %v2330_v33 }
 0x7e1   :  { %5606 = vmatmul.mubr.f32.gmra.mrb[24].mxu0 %v2331_v50 }
 0x89f   :  { %v5604_v42 = vpop.f32.mrb[22].mxu0 }
 0x8a0   :  { %v7304_v13 = vadd.f32 %v5604_v42, %v7191_v43  ;;  %v2414_v28 = vpop.f32.mrb[23].mxu0 }
 0x8a1   :  { %v7307_v22 = vadd.f32 %v2414_v28, %v7196_v29 }
 0x8a2   :  { %v2440_v38 = vmul.f32 %v7304_v13, %v7304_v13 }
 0x8a3   :  { %v2439_v49 = vmul.f32 %v7307_v22, %v7307_v22 }
 0x8a4   :  { %v2446_v35 = vsel %vm93_vm0, %v2440_v38, 0.0 }
 0x8a5   :  { %2447 = vadd.xlane.f32.xlu1 %v2446_v35  ;;  %v2443_v36 = vsel %vm93_vm0, %v2439_v49, 0.0 }
 0x8a6   :  { %2444 = vadd.xlane.f32.xlu0 %v2443_v36  ;;  %v4932_v36 = vld [vmem:[%s7901_s3 + $0x1] ss:$0 sm:$0xff] }
 0x8b4   :  { %v5607_v48 = vpop.f32.mrb[24].mxu0 }
 0x8b5   :  { %v7316_v43 = vadd.f32 %v5607_v48, %v7207_v47  ;;  %v2424_v23 = vpop.f32.mrb[25].mxu0 }
 0x8b6   :  { %v7319_v29 = vadd.f32 %v2424_v23, %v7212_v51  ;;  %v4958_v51 = vld [vmem:[%s7904_s6 + $0x48] sm:$0xff]  ;;  %v4947_v23 = vld [vmem:[%s7903_s5 + $0x50] sm:$0xff] }
 0x8b7   :  { %v2442_v47 = vmul.f32 %v7316_v43, %v7316_v43  ;;  %v6092_v30 = vpack.c.bf16 %v4958_v51, %v4957_v54  ;;  %v4949_v51 = vld [vmem:[%s7903_s5 + $0x60] sm:$0xff] }
 0x8b8   :  { %v2441_v1 = vmul.f32 %v7319_v29, %v7319_v29 }
 0x8b9   :  { %v2452_v8 = vsel %vm93_vm0, %v2442_v47, 0.0  ;;  %6093 = vmatprep.subr.bf16.mxu0 %v6092_v30  ;;  %v6080_v47 = vpack.c.bf16 %v4948_v60, %v4947_v23 }
 0x8ba   :  { %2453 = vadd.xlane.f32.xlu1 %v2452_v8  ;;  %v2449_v55 = vsel %vm93_vm0, %v2441_v1, 0.0  ;;  %6095 = vmatpush3.bf16.msra.mxu0 %v6092_v30  ;;  %v4950_v1 = vld [vmem:[%s7903_s5 + $0x68] sm:$0xff] }
 0x8bb   :  { %2450 = vadd.xlane.f32.xlu0 %v2449_v55  ;;  %6097 = vmatprep.subr.bf16.mxu0 %v6096_v14  ;;  %v6084_v59 = vpack.c.bf16 %v4950_v1, %v4949_v51 }
 0x8be   :  { %6099 = vmatpush3.bf16.msra.mxu0 %v6096_v14  ;;  %v6088_v14 = vpack.c.bf16 %v4952_v63, %v4951_v61 }
 0x8bf   :  { %6101 = vmatprep.subr.bf16.mxu0 %v6100_v9 }
 0x8c2   :  { %6103 = vmatpush3.bf16.msra.mxu0 %v6100_v9 }
 0x8c3   :  { %6105 = vmatprep.subr.bf16.mxu0 %v6104_v34 }
 0x8c6   :  { %6107 = vmatpush3.bf16.msra.mxu0 %v6104_v34 }
 0x932   :  { %v2448_v10 = vpop.xlane.xlu1 %2447 }
 0x933   :  { %v2456_v24 = vmul.f32 0.015625, %v2448_v10  ;;  %v2445_v33 = vpop.xlane.xlu0 %2444 }
 0x934   :  { %v2455_v50 = vmul.f32 0.015625, %v2445_v33 }
 0x935   :  { %v2460_v42 = vadd.f32 1e-06, %v2456_v24 }
 0x936   :  { %v2459_v28 = vadd.f32 1e-06, %v2455_v50 }
 0x937   :  { %6461 = vrsqrt.f32 %v2460_v42 }
 0x938   :  { %6463 = vrsqrt.f32 %v2459_v28 }
 0x941   :  { %v6462_v38 = vpop.eup %6461 }
 0x942   :  { %v6464_v49 = vpop.eup %6463  ;;  %v2468_v35 = vmul.f32 %v6462_v38, %v7304_v13 }
 0x943   :  { %v2467_v48 = vmul.f32 %v6464_v49, %v7307_v22 }
 0x944   :  { %v2478_v54 = vmul.f32 %v4932_v36, %v2468_v35 }
 0x945   :  { %v2477_v45 = vmul.f32 %v4932_v36, %v2467_v48 }
 0x947   :  { %v2454_v0 = vpop.xlane.xlu1 %2453  ;;  %5624 = vmatprep.mubr.msk.f32.mxu1 %vm93_vm0, %v2477_v45  ;;  %5668 = vmatprep.mubr.msk.f32.mxu0 %vm93_vm0, %v2477_v45 }
 0x948   :  { %v2458_v30 = vmul.f32 0.015625, %v2454_v0  ;;  %5625 = vmatmul.mubr.msk.f32.vlgmr.msra.gmra.mrb[30].mxu1 %vm93_vm0, %v2478_v54  ;;  %5669 = vmatmul.mubr.msk.f32.vlgmr.msra.gmra.mrb[26].mxu0 %vm93_vm0, %v2478_v54  ;;  %v2451_v8 = vpop.xlane.xlu0 %2450 }
 0x949   :  { %v2457_v55 = vmul.f32 0.015625, %v2451_v8  ;;  %6079 = vmatpush3.bf16.msra.mxu1 %v6076_v44 }
 0x94a   :  { %v2462_v58 = vadd.f32 1e-06, %v2458_v30  ;;  %6081 = vmatprep.subr.bf16.mxu1 %v6080_v47 }
 0x94b   :  { %v2461_v20 = vadd.f32 1e-06, %v2457_v55 }
 0x94c   :  { %6465 = vrsqrt.f32 %v2462_v58 }
 0x94d   :  { %6467 = vrsqrt.f32 %v2461_v20  ;;  %6083 = vmatpush3.bf16.msra.mxu1 %v6080_v47 }
 0x94e   :  { %6085 = vmatprep.subr.bf16.mxu1 %v6084_v59 }
 0x951   :  { %6087 = vmatpush3.bf16.msra.mxu1 %v6084_v59 }
 0x952   :  { %6089 = vmatprep.subr.bf16.mxu1 %v6088_v14 }
 0x955   :  { %6091 = vmatpush3.bf16.msra.mxu1 %v6088_v14 }
 0x956   :  { %v6466_v3 = vpop.eup %6465 }
 0x957   :  { %v6468_v4 = vpop.eup %6467  ;;  %v2470_v19 = vmul.f32 %v6466_v3, %v7316_v43 }
 0x958   :  { %v2469_v15 = vmul.f32 %v6468_v4, %v7319_v29 }
 0x959   :  { %v2480_v9 = vmul.f32 %v4932_v36, %v2470_v19 }
 0x95a   :  { %v2479_v7 = vmul.f32 %v4932_v36, %v2469_v15 }
 0x95c   :  { %5627 = vmatprep.mubr.msk.f32.mxu1 %vm93_vm0, %v2479_v7  ;;  %5671 = vmatprep.mubr.msk.f32.mxu0 %vm93_vm0, %v2479_v7 }
 0x95d   :  { %5628 = vmatmul.mubr.msk.f32.gmra.mrb[32].mxu1 %vm93_vm0, %v2480_v9  ;;  %5672 = vmatmul.mubr.msk.f32.gmra.mrb[28].mxu0 %vm93_vm0, %v2480_v9 }
 0x95e   :  { %5646 = vmatprep.mubr.msk.f32.mxu1 %vm93_vm0, %v2477_v45 }
 0x961   :  { %5647 = vmatmul.mubr.msk.f32.vlgmr.msra.gmra.mrb[34].mxu1 %vm93_vm0, %v2478_v54 }
 0x962   :  { %5649 = vmatprep.mubr.msk.f32.mxu1 %vm93_vm0, %v2479_v7 }
 0x965   :  { %5650 = vmatmul.mubr.msk.f32.gmra.mrb[36].mxu1 %vm93_vm0, %v2480_v9 }
 0xa1b   :  { %v5626_v31 = vpop.f32.mrb[30].mxu1  ;;  %v5670_v56 = vpop.f32.mrb[26].mxu0 }
 0xa1c   :  { %v2568_v40 = vpop.f32.mrb[31].mxu1  ;;  %v2756_v27 = vpop.f32.mrb[27].mxu0 }
 0xa1d   :  { %v7418_v26 = vpack.i.bf16 %v5670_v56, %v2756_v27  ;;  %2862 = vrot.lane.b32.xlu1 %v2568_v40, %s6577_s25  ;;  %5678 = vmatprep.mubr.msk.f32.mxu1 %vm424_vm1, %v2568_v40  ;;  %v7422_v34 = vpack.c.bf16 %v5670_v56, %v2756_v27 }
 0xa30   :  { %v7424_v16 = vpop.f32.mrb[32].mxu1  ;;  %v5673_v11 = vpop.f32.mrb[28].mxu0 }
 0xa31   :  { %v7426_v44 = vpop.f32.mrb[33].mxu1  ;;  %v2766_v10 = vpop.f32.mrb[29].mxu0 }
 0xa32   :  { %v7428_v24 = vpack.i.bf16 %v5673_v11, %v2766_v10  ;;  %v7430_v33 = vpack.c.bf16 %v5673_v11, %v2766_v10 }
 0xa34   :  { %v5648_v50 = vpop.f32.mrb[34].mxu1 }
 0xa35   :  { %v2662_v42 = vpop.f32.mrb[35].mxu1 }
 0xa36   :  { %v6108_v28 = vpack.c.bf16 %v5648_v50, %v2662_v42  ;;  %v6326_v38 = vpack.i.bf16 %v5648_v50, %v2662_v42 }
 0xa38   :  { %6327 = vrot.lane.b32.xlu1 %v6326_v38, %s6578_s26  ;;  %6322 = vrot.lane.b32.xlu0 %v6326_v38, %s6577_s25  ;;  %v5651_v49 = vpop.f32.mrb[36].mxu1 }
 0xa39   :  { %6110 = vmatprep.subr.msk.bf16.mxu1 %vm6790_vm2, %v6108_v28  ;;  %v2672_v35 = vpop.f32.mrb[37].mxu1 }
 0xa3a   :  { %v6132_v36 = vpack.c.bf16 %v5651_v49, %v2672_v35  ;;  %6113 = vmatpush3.bf16.xpose.msk.msra.mxu1 %vm6790_vm2, %v6108_v28  ;;  %v6336_v48 = vpack.i.bf16 %v5651_v49, %v2672_v35 }
 0xa3c   :  { %6332 = vrot.lane.b32.xlu1 %v6326_v38, %s6579_s27  ;;  %2864 = vrot.lane.b32.xlu0 %v5626_v31, %s6577_s25 }
 0xa40   :  { %2955 = vrot.lane.b32.xlu1 %v5626_v31, %s6578_s26  ;;  %2953 = vrot.lane.b32.xlu0 %v2568_v40, %s6578_s26 }
 0xa41   :  { %5679 = vmatmul.mubr.msk.f32.vlgmr.msra.gmra.mrb[38].mxu1 %vm424_vm1, %v5626_v31 }
 0xa44   :  { %3044 = vrot.lane.b32.xlu0 %v2568_v40, %s6579_s27  ;;  %6337 = vrot.lane.b32.xlu1 %v6336_v48, %s6577_s25 }
 0xa48   :  { %6342 = vrot.lane.b32.xlu0 %v6336_v48, %s6578_s26  ;;  %3046 = vrot.lane.b32.xlu1 %v5626_v31, %s6579_s27 }
 0xa4c   :  { %3222 = vrot.lane.b32.xlu0 %v7426_v44, %s6577_s25  ;;  %6347 = vrot.lane.b32.xlu1 %v6336_v48, %s6579_s27 }
 0xa50   :  { %3313 = vrot.lane.b32.xlu0 %v7426_v44, %s6578_s26  ;;  %3224 = vrot.lane.b32.xlu1 %v7424_v16, %s6577_s25 }
 0xa54   :  { %3404 = vrot.lane.b32.xlu0 %v7426_v44, %s6579_s27  ;;  %3315 = vrot.lane.b32.xlu1 %v7424_v16, %s6578_s26 }
 0xa58   :  { %3406 = vrot.lane.b32.xlu1 %v7424_v16, %s6579_s27 }
 0xa8f   :  { %v2863_v23 = vpop.permute.xlu1 %2862 }
 0xa90   :  { %5685 = vmatprep.mubr.msk.f32.mxu1 %vm424_vm1, %v2863_v23 }
 0xaaa   :  { %v6328_v60 = vpop.permute.xlu1 %6327  ;;  %v6323_v45 = vpop.permute.xlu0 %6322 }
 0xaab   :  { %v6330_v54 = vunpack.i.h.bf16 %v6328_v60  ;;  %v6329_v47 = vunpack.i.l.bf16 %v6328_v60  ;;  %v6325_v0 = vunpack.i.h.bf16 %v6323_v45  ;;  %v6324_v51 = vunpack.i.l.bf16 %v6323_v45 }
 0xaad   :  { %v6120_v1 = vpack.c.bf16 %v6330_v54, %v6329_v47  ;;  %v6114_v30 = vpack.c.bf16 %v6325_v0, %v6324_v51 }
 0xaae   :  { %v6333_v8 = vpop.permute.xlu1 %6332  ;;  %v2865_v55 = vpop.permute.xlu0 %2864 }
 0xaaf   :  { %v6335_v58 = vunpack.i.h.bf16 %v6333_v8  ;;  %v6334_v59 = vunpack.i.l.bf16 %v6333_v8  ;;  %6116 = vmatprep.subr.msk.bf16.mxu1 %vm6790_vm2, %v6114_v30  ;;  %6122 = vmatprep.subr.msk.bf16.mxu0 %vm6790_vm2, %v6120_v1 }
 0xab0   :  { %6119 = vmatpush3.bf16.xpose.msk.msra.mxu1 %vm6790_vm2, %v6114_v30  ;;  %6125 = vmatpush3.bf16.xpose.msk.msra.mxu0 %vm6790_vm2, %v6120_v1 }
 0xab1   :  { %v6126_v20 = vpack.c.bf16 %v6335_v58, %v6334_v59  ;;  %6134 = vmatprep.subr.msk.bf16.mxu0 %vm6790_vm2, %v6132_v36 }
 0xab2   :  { %v2956_v61 = vpop.permute.xlu1 %2955  ;;  %v2954_v63 = vpop.permute.xlu0 %2953 }
 0xab3   :  { %5692 = vmatprep.mubr.msk.f32.mxu0 %vm424_vm1, %v2954_v63  ;;  %6128 = vmatprep.subr.msk.bf16.mxu1 %vm6790_vm2, %v6126_v20 }
 0xab6   :  { %v3045_v14 = vpop.permute.xlu0 %3044  ;;  %v6338_v3 = vpop.permute.xlu1 %6337 }
 0xab7   :  { %v6340_v4 = vunpack.i.h.bf16 %v6338_v3  ;;  %v6339_v19 = vunpack.i.l.bf16 %v6338_v3  ;;  %5686 = vmatmul.mubr.msk.f32.vlgmr.msra.gmra.mrb[40].mxu1 %vm424_vm1, %v2865_v55  ;;  %5693 = vmatmul.mubr.msk.f32.vlgmr.msra.gmra.mrb[30].mxu0 %vm424_vm1, %v2956_v61 }
 0xab8   :  { %6131 = vmatpush3.bf16.xpose.msk.msra.mxu1 %vm6790_vm2, %v6126_v20  ;;  %5699 = vmatprep.mubr.msk.f32.mxu1 %vm424_vm1, %v3045_v14 }
 0xab9   :  { %v6138_v15 = vpack.c.bf16 %v6340_v4, %v6339_v19  ;;  %6137 = vmatpush3.bf16.xpose.msk.msra.mxu0 %vm6790_vm2, %v6132_v36  ;;  %5706 = vmatprep.mubr.msk.f32.mxu0 %vm424_vm1, %v7426_v44 }
 0xaba   :  { %v6343_v7 = vpop.permute.xlu0 %6342  ;;  %v3047_v9 = vpop.permute.xlu1 %3046 }
 0xabb   :  { %v6345_v31 = vunpack.i.h.bf16 %v6343_v7  ;;  %v6344_v56 = vunpack.i.l.bf16 %v6343_v7  ;;  %6140 = vmatprep.subr.msk.bf16.mxu1 %vm6790_vm2, %v6138_v15 }
 0xabd   :  { %v6144_v40 = vpack.c.bf16 %v6345_v31, %v6344_v56 }
 0xabe   :  { %v3223_v27 = vpop.permute.xlu0 %3222  ;;  %v6348_v11 = vpop.permute.xlu1 %6347 }
 0xabf   :  { %v6350_v10 = vunpack.i.h.bf16 %v6348_v11  ;;  %v6349_v50 = vunpack.i.l.bf16 %v6348_v11  ;;  %5700 = vmatmul.mubr.msk.f32.vlgmr.msra.gmra.mrb[42].mxu1 %vm424_vm1, %v3047_v9  ;;  %6146 = vmatprep.subr.msk.bf16.mxu0 %vm6790_vm2, %v6144_v40 }
 0xac0   :  { %5707 = vmatmul.mubr.msk.f32.vlgmr.msra.gmra.mrb[32].mxu0 %vm424_vm1, %v7424_v16  ;;  %6143 = vmatpush3.bf16.xpose.msk.msra.mxu1 %vm6790_vm2, %v6138_v15 }
 0xac1   :  { %v6150_v44 = vpack.c.bf16 %v6350_v10, %v6349_v50  ;;  %5713 = vmatprep.mubr.msk.f32.mxu1 %vm424_vm1, %v3223_v27  ;;  %6149 = vmatpush3.bf16.xpose.msk.msra.mxu0 %vm6790_vm2, %v6144_v40 }
 0xac2   :  { %6157 = vmatprep.subr.bf16.mxu0 %v7422_v34  ;;  %v3314_v42 = vpop.permute.xlu0 %3313  ;;  %v3225_v28 = vpop.permute.xlu1 %3224 }
 0xac3   :  { %5720 = vmatprep.mubr.msk.f32.mxu0 %vm424_vm1, %v3314_v42  ;;  %6152 = vmatprep.subr.msk.bf16.mxu1 %vm6790_vm2, %v6150_v44 }
 0xac6   :  { %v3405_v38 = vpop.permute.xlu0 %3404  ;;  %v3316_v16 = vpop.permute.xlu1 %3315 }
 0xac7   :  { %5714 = vmatmul.mubr.msk.f32.vlgmr.msra.gmra.mrb[44].mxu1 %vm424_vm1, %v3225_v28 }
 0xac8   :  { %5721 = vmatmul.mubr.msk.f32.vlgmr.msra.gmra.mrb[34].mxu0 %vm424_vm1, %v3316_v16  ;;  %6155 = vmatpush3.bf16.xpose.msk.msra.mxu1 %vm6790_vm2, %v6150_v44 }
 0xac9   :  { %5727 = vmatprep.mubr.msk.f32.mxu1 %vm424_vm1, %v3405_v38  ;;  %6159 = vmatpush3.bf16.msra.mxu0 %v7422_v34 }
 0xaca   :  { %v3407_v49 = vpop.permute.xlu1 %3406 }
 0xacf   :  { %5728 = vmatmul.mubr.msk.f32.vlgmr.msra.gmra.mrb[46].mxu1 %vm424_vm1, %v3407_v49 }
 0xb14   :  { %v5680_v35 = vpop.f32.mrb[38].mxu1 }
 0xb15   :  { %v7507_v36 = vadd.f32 %v5680_v35, %v6877_v2  ;;  %v2853_v48 = vpop.f32.mrb[39].mxu1 }
 0xb16   :  { %v7510_v23 = vadd.f32 %v2853_v48, %v6879_v6 }
 0xb17   :  { %v3498_v60 = vsel %vm424_vm1, %v7507_v36, -inf }
 0xb18   :  { %3499 = vmax.xlane.f32.xlu1 %v3498_v60  ;;  %v3495_v25 = vsel %vm424_vm1, %v7510_v23, -inf }
 0xb19   :  { %3496 = vmax.xlane.f32.xlu0 %v3495_v25 }
 0xb8a   :  { %v5687_v34 = vpop.f32.mrb[40].mxu1  ;;  %v5694_v45 = vpop.f32.mrb[30].mxu0 }
 0xb8b   :  { %v7517_v54 = vadd.f32 %v5687_v34, %v6900_v17  ;;  %v7520_v2 = vadd.f32 %v5694_v45, %v6902_v18  ;;  %v2944_v47 = vpop.f32.mrb[41].mxu1  ;;  %v3035_v0 = vpop.f32.mrb[31].mxu0 }
 0xb8c   :  { %v7523_v6 = vadd.f32 %v2944_v47, %v6904_v21  ;;  %v7530_v30 = vadd.f32 %v3035_v0, %v6921_v32 }
 0xb8d   :  { %v3510_v51 = vsel %vm424_vm1, %v7520_v2, -inf  ;;  %v3504_v1 = vsel %vm424_vm1, %v7517_v54, -inf }
 0xb8e   :  { %3511 = vmax.xlane.f32.xlu1 %v3510_v51  ;;  %3505 = vmax.xlane.f32.xlu0 %v3504_v1  ;;  %v3501_v17 = vsel %vm424_vm1, %v7523_v6, -inf  ;;  %v3507_v61 = vsel %vm424_vm1, %v7530_v30, -inf }
 0xb92   :  { %v5701_v18 = vpop.f32.mrb[42].mxu1  ;;  %3502 = vmax.xlane.f32.xlu0 %v3501_v17 }
 0xb93   :  { %v7535_v8 = vadd.f32 %v5701_v18, %v6933_v37  ;;  %v5708_v21 = vpop.f32.mrb[32].mxu0  ;;  %v3126_v55 = vpop.f32.mrb[43].mxu1 }
 0xb94   :  { %v3213_v58 = vpop.f32.mrb[33].mxu0  ;;  %v7538_v59 = vadd.f32 %v5708_v21, %v6938_v39  ;;  %v7541_v20 = vadd.f32 %v3126_v55, %v6942_v41 }
 0xb95   :  { %v3516_v32 = vsel %vm424_vm1, %v7535_v8, -inf  ;;  %v7548_v37 = vadd.f32 %v3213_v58, %v6947_v46 }
 0xb96   :  { %3517 = vmax.xlane.f32.xlu1 %v3516_v32  ;;  %3508 = vmax.xlane.f32.xlu0 %v3507_v61  ;;  %v3522_v63 = vsel %vm424_vm1, %v7538_v59, -inf  ;;  %v3513_v39 = vsel %vm424_vm1, %v7541_v20, -inf }
 0xb97   :  { %v3519_v9 = vsel %vm424_vm1, %v7548_v37, -inf }
 0xb9a   :  { %3523 = vmax.xlane.f32.xlu1 %v3522_v63  ;;  %v5715_v41 = vpop.f32.mrb[44].mxu1  ;;  %3514 = vmax.xlane.f32.xlu0 %v3513_v39 }
 0xb9b   :  { %v5722_v14 = vpop.f32.mrb[34].mxu0  ;;  %v7555_v3 = vadd.f32 %v5715_v41, %v6959_v52  ;;  %v3304_v4 = vpop.f32.mrb[45].mxu1 }
 0xb9c   :  { %v3395_v19 = vpop.f32.mrb[35].mxu0  ;;  %v7558_v15 = vadd.f32 %v5722_v14, %v6961_v53  ;;  %v7561_v46 = vadd.f32 %v3304_v4, %v6970_v57 }
 0xb9d   :  { %v3528_v7 = vsel %vm424_vm1, %v7555_v3, -inf  ;;  %v7568_v31 = vadd.f32 %v3395_v19, %v6975_v62 }
 0xb9e   :  { %3529 = vmax.xlane.f32.xlu1 %v3528_v7  ;;  %3520 = vmax.xlane.f32.xlu0 %v3519_v9  ;;  %v3534_v52 = vsel %vm424_vm1, %v7558_v15, -inf  ;;  %v3525_v53 = vsel %vm424_vm1, %v7561_v46, -inf }
 0xb9f   :  { %v3531_v11 = vsel %vm424_vm1, %v7568_v31, -inf }
 0xba2   :  { %3535 = vmax.xlane.f32.xlu1 %v3534_v52  ;;  %v5729_v57 = vpop.f32.mrb[46].mxu1  ;;  %3526 = vmax.xlane.f32.xlu0 %v3525_v53 }
 0xba3   :  { %v7575_v56 = vadd.f32 %v5729_v57, %v6987_v5  ;;  %v3486_v40 = vpop.f32.mrb[47].mxu1 }
 0xba4   :  { %v7578_v27 = vadd.f32 %v3486_v40, %v6996_v12 }
 0xba5   :  { %v3540_v62 = vsel %vm424_vm1, %v7575_v56, -inf  ;;  %v3500_v50 = vpop.xlane.xlu1 %3499 }
 0xba6   :  { %3541 = vmax.xlane.f32.xlu1 %v3540_v62  ;;  %3532 = vmax.xlane.f32.xlu0 %v3531_v11  ;;  %v3537_v10 = vsel %vm424_vm1, %v7578_v27, -inf  ;;  %v3497_v5 = vpop.xlane.xlu0 %3496  ;;  %v3544_v44 = vsub.f32 %v7507_v36, %v3500_v50 }
 0xba7   :  { %v3543_v12 = vsub.f32 %v7510_v23, %v3497_v5 }
 0xba8   :  { %v3561_v28 = vmul.f32 1.442695, %v3544_v44 }
 0xba9   :  { %v3559_v42 = vmul.f32 1.442695, %v3543_v12 }
 0xbaa   :  { %3538 = vmax.xlane.f32.xlu0 %v3537_v10 }
 0xbab   :  { %6469 = vpow2.f32 %v3559_v42 }
 0xbac   :  { %6471 = vpow2.f32 %v3561_v28 }
 0xbb5   :  { %v7596_v38 = vpop.eup %6469 }
 0xbb6   :  { %v3591_v16 = vsel %vm424_vm1, %v7596_v38, 0.0  ;;  %v7600_v49 = vpop.eup %6471 }
 0xbb7   :  { %6357 = vrot.lane.b32.xlu1 %v7418_v26, %s6578_s26 }
 0xbbb   :  { %6362 = vrot.lane.b32.xlu1 %v7418_v26, %s6579_s27 }
 0xbbf   :  { %6367 = vrot.lane.b32.xlu1 %v7428_v24, %s6577_s25 }
 0xbc0   :  { %6352 = vrot.lane.b32.xlu0 %v7418_v26, %s6577_s25  ;;  %v3594_v26 = vsel %vm424_vm1, %v7600_v49, 0.0 }
 0xbdf   :  { %3592 = vadd.xlane.f32.xlu0 %v3591_v16 }
 0xbe3   :  { %3595 = vadd.xlane.f32.xlu1 %v3594_v26 }
 0xc1b   :  { %v3512_v35 = vpop.xlane.xlu1 %3511  ;;  %v3506_v48 = vpop.xlane.xlu0 %3505 }
 0xc1c   :  { %v3548_v36 = vsub.f32 %v7520_v2, %v3512_v35  ;;  %v3546_v23 = vsub.f32 %v7517_v54, %v3506_v48 }
 0xc1e   :  { %v3565_v60 = vmul.f32 1.442695, %v3546_v23  ;;  %v3569_v25 = vmul.f32 1.442695, %v3548_v36 }
 0xc1f   :  { %v3503_v34 = vpop.xlane.xlu0 %3502 }
 0xc20   :  { %v3545_v45 = vsub.f32 %v7523_v6, %v3503_v34  ;;  %6473 = vpow2.f32 %v3565_v60 }
 0xc21   :  { %6475 = vpow2.f32 %v3569_v25 }
 0xc22   :  { %v3563_v47 = vmul.f32 1.442695, %v3545_v45 }
 0xc23   :  { %v3518_v0 = vpop.xlane.xlu1 %3517  ;;  %v3509_v51 = vpop.xlane.xlu0 %3508 }
 0xc24   :  { %6477 = vpow2.f32 %v3563_v47  ;;  %v3550_v1 = vsub.f32 %v7535_v8, %v3518_v0  ;;  %v3547_v17 = vsub.f32 %v7530_v30, %v3509_v51 }
 0xc26   :  { %v3573_v18 = vmul.f32 1.442695, %v3550_v1  ;;  %v3567_v21 = vmul.f32 1.442695, %v3547_v17 }
 0xc27   :  { %v3524_v2 = vpop.xlane.xlu1 %3523  ;;  %v3515_v55 = vpop.xlane.xlu0 %3514 }
 0xc28   :  { %6479 = vpow2.f32 %v3573_v18  ;;  %v3552_v54 = vsub.f32 %v7538_v59, %v3524_v2  ;;  %v3549_v58 = vsub.f32 %v7541_v20, %v3515_v55 }
 0xc29   :  { %6481 = vpow2.f32 %v3567_v21 }
 0xc2a   :  { %v3577_v6 = vmul.f32 1.442695, %v3552_v54  ;;  %v3571_v32 = vmul.f32 1.442695, %v3549_v58  ;;  %v7611_v61 = vpop.eup %6473 }
 0xc2b   :  { %v3530_v63 = vpop.xlane.xlu1 %3529  ;;  %v3521_v39 = vpop.xlane.xlu0 %3520  ;;  %v3600_v41 = vsel %vm424_vm1, %v7611_v61, 0.0 }
 0xc2c   :  { %6483 = vpow2.f32 %v3577_v6  ;;  %v3554_v8 = vsub.f32 %v7555_v3, %v3530_v63  ;;  %v3551_v30 = vsub.f32 %v7548_v37, %v3521_v39  ;;  %v7617_v14 = vpop.eup %6475  ;;  %3601 = vadd.xlane.f32.xlu1 %v3600_v41 }
 0xc2d   :  { %6485 = vpow2.f32 %v3571_v32  ;;  %v3606_v52 = vsel %vm424_vm1, %v7617_v14, 0.0 }
 0xc2e   :  { %v7619_v59 = vpop.eup %6477  ;;  %v3581_v20 = vmul.f32 1.442695, %v3554_v8  ;;  %v3575_v4 = vmul.f32 1.442695, %v3551_v30 }
 0xc2f   :  { %v3536_v19 = vpop.xlane.xlu1 %3535  ;;  %v3527_v7 = vpop.xlane.xlu0 %3526  ;;  %v3597_v9 = vsel %vm424_vm1, %v7619_v59, 0.0 }
 0xc30   :  { %6487 = vpow2.f32 %v3581_v20  ;;  %v3556_v3 = vsub.f32 %v7558_v15, %v3536_v19  ;;  %v3553_v37 = vsub.f32 %v7561_v46, %v3527_v7  ;;  %3598 = vadd.xlane.f32.xlu0 %v3597_v9  ;;  %3607 = vadd.xlane.f32.xlu1 %v3606_v52 }
 0xc31   :  { %6489 = vpow2.f32 %v3575_v4 }
 0xc32   :  { %v7627_v53 = vpop.eup %6479  ;;  %v3585_v57 = vmul.f32 1.442695, %v3556_v3  ;;  %v3579_v40 = vmul.f32 1.442695, %v3553_v37 }
 0xc33   :  { %v7629_v62 = vpop.eup %6481  ;;  %v3542_v11 = vpop.xlane.xlu1 %3541  ;;  %v3612_v5 = vsel %vm424_vm1, %v7627_v53, 0.0 }
 0xc34   :  { %v3533_v10 = vpop.xlane.xlu0 %3532  ;;  %6491 = vpow2.f32 %v3585_v57  ;;  %v3558_v15 = vsub.f32 %v7575_v56, %v3542_v11  ;;  %v3603_v12 = vsel %vm424_vm1, %v7629_v62, 0.0  ;;  %3613 = vadd.xlane.f32.xlu1 %v3612_v5 }
 0xc35   :  { %v3555_v46 = vsub.f32 %v7568_v31, %v3533_v10  ;;  %6493 = vpow2.f32 %v3579_v40  ;;  %3604 = vadd.xlane.f32.xlu0 %v3603_v12 }
 0xc36   :  { %v7637_v50 = vpop.eup %6483  ;;  %v3589_v44 = vmul.f32 1.442695, %v3558_v15 }
 0xc37   :  { %v3583_v42 = vmul.f32 1.442695, %v3555_v46  ;;  %v7639_v28 = vpop.eup %6485  ;;  %v6358_v16 = vpop.permute.xlu1 %6357  ;;  %v3618_v35 = vsel %vm424_vm1, %v7637_v50, 0.0 }
 0xc38   :  { %v3539_v26 = vpop.xlane.xlu0 %3538  ;;  %6495 = vpow2.f32 %v3589_v44  ;;  %v6360_v56 = vunpack.i.h.bf16 %v6358_v16  ;;  %v6359_v31 = vunpack.i.l.bf16 %v6358_v16  ;;  %3619 = vadd.xlane.f32.xlu1 %v3618_v35  ;;  %v3609_v36 = vsel %vm424_vm1, %v7639_v28, 0.0 }
 0xc39   :  { %v3557_v48 = vsub.f32 %v7578_v27, %v3539_v26  ;;  %6497 = vpow2.f32 %v3583_v42  ;;  %3610 = vadd.xlane.f32.xlu0 %v3609_v36 }
 0xc3a   :  { %v7646_v23 = vpop.eup %6487  ;;  %v6164_v60 = vpack.c.bf16 %v6360_v56, %v6359_v31 }
 0xc3b   :  { %v3587_v25 = vmul.f32 1.442695, %v3557_v48  ;;  %v7648_v34 = vpop.eup %6489  ;;  %v6363_v45 = vpop.permute.xlu1 %6362  ;;  %v3624_v0 = vsel %vm424_vm1, %v7646_v23, 0.0 }
 0xc3c   :  { %v6353_v47 = vpop.permute.xlu0 %6352  ;;  %6165 = vmatprep.subr.bf16.mxu0 %v6164_v60  ;;  %v6365_v27 = vunpack.i.h.bf16 %v6363_v45  ;;  %v6364_v1 = vunpack.i.l.bf16 %v6363_v45  ;;  %3625 = vadd.xlane.f32.xlu1 %v3624_v0  ;;  %v3615_v18 = vsel %vm424_vm1, %v7648_v34, 0.0 }
 0xc3d   :  { %6499 = vpow2.f32 %v3587_v25  ;;  %v6355_v51 = vunpack.i.h.bf16 %v6353_v47  ;;  %v6354_v17 = vunpack.i.l.bf16 %v6353_v47  ;;  %3616 = vadd.xlane.f32.xlu0 %v3615_v18 }
 0xc3e   :  { %v7654_v21 = vpop.eup %6491  ;;  %v6168_v6 = vpack.c.bf16 %v6365_v27, %v6364_v1 }
 0xc3f   :  { %v7656_v2 = vpop.eup %6493  ;;  %v6160_v55 = vpack.c.bf16 %v6355_v51, %v6354_v17  ;;  %v3630_v54 = vsel %vm424_vm1, %v7654_v21, 0.0  ;;  %v6368_v20 = vpop.permute.xlu1 %6367 }
 0xc40   :  { %v3621_v58 = vsel %vm424_vm1, %v7656_v2, 0.0  ;;  %3631 = vadd.xlane.f32.xlu1 %v3630_v54  ;;  %v6369_v46 = vunpack.i.l.bf16 %v6368_v20 }
 0xc41   :  { %6161 = vmatprep.subr.bf16.mxu1 %v6160_v55  ;;  %3622 = vadd.xlane.f32.xlu0 %v3621_v58 }
 0xc42   :  { %v7662_v32 = vpop.eup %6495  ;;  %6163 = vmatpush3.bf16.msra.mxu1 %v6160_v55 }
 0xc43   :  { %v7664_v63 = vpop.eup %6497  ;;  %6169 = vmatprep.subr.bf16.mxu1 %v6168_v6  ;;  %v3636_v39 = vsel %vm424_vm1, %v7662_v32, 0.0 }
 0xc44   :  { %v3627_v8 = vsel %vm424_vm1, %v7664_v63, 0.0  ;;  %3637 = vadd.xlane.f32.xlu1 %v3636_v39 }
 0xc45   :  { %3628 = vadd.xlane.f32.xlu0 %v3627_v8 }
 0xc47   :  { %v7670_v30 = vpop.eup %6499 }
 0xc48   :  { %v3633_v41 = vsel %vm424_vm1, %v7670_v30, 0.0 }
 0xc49   :  { %3634 = vadd.xlane.f32.xlu0 %v3633_v41 }
 0xc55   :  { %6377 = vrot.lane.b32.xlu1 %v7428_v24, %s6579_s27 }
 0xc5f   :  { %6372 = vrot.lane.b32.xlu0 %v7428_v24, %s6578_s26 }
 0xc6c   :  { %v3593_v4 = vpop.xlane.xlu0 %3592 }
 0xc6d   :  { %6501 = vrcp.f32 %v3593_v4 }
 0xc70   :  { %v3596_v19 = vpop.xlane.xlu1 %3595 }
 0xc71   :  { %6503 = vrcp.f32 %v3596_v19 }
 0xc77   :  { %v6502_v7 = vpop.eup %6501 }
 0xc78   :  { %v3655_v9 = vmul.f32 %v6502_v7, %v7596_v38 }
 0xc7a   :  { %5734 = vmatprep.mubr.msk.f32.mxu0 %vm424_vm1, %v3655_v9  ;;  %v5018_v9 = vld [vmem:[%s7905_s7 + $0x48] sm:$0xff] }
 0xc7b   :  { %v6504_v3 = vpop.eup %6503 }
 0xc7c   :  { %v3656_v37 = vmul.f32 %v6504_v3, %v7600_v49  ;;  %v6370_v49 = vunpack.i.h.bf16 %v6368_v20 }
 0xc7e   :  { %5735 = vmatmul.mubr.msk.f32.vlgmr.msra.gmra.mrb[36].mxu0 %vm424_vm1, %v3656_v37  ;;  %v6176_v26 = vpack.c.bf16 %v6370_v49, %v6369_v46 }
 0xc7f   :  { %6167 = vmatpush3.bf16.msra.mxu0 %v6164_v60 }
 0xc80   :  { %6173 = vmatprep.subr.bf16.mxu0 %v7430_v33 }
 0xcb9   :  { %v3602_v52 = vpop.xlane.xlu1 %3601 }
 0xcba   :  { %6505 = vrcp.f32 %v3602_v52 }
 0xcbd   :  { %v3599_v24 = vpop.xlane.xlu0 %3598  ;;  %v3608_v57 = vpop.xlane.xlu1 %3607 }
 0xcbe   :  { %6507 = vrcp.f32 %v3599_v24  ;;  %v5021_v24 = vld [vmem:[%s7905_s7 + $0x60] sm:$0xff] }
 0xcbf   :  { %6509 = vrcp.f32 %v3608_v57  ;;  %v5022_v57 = vld [vmem:[%s7905_s7 + $0x68] sm:$0xff] }
 0xcc1   :  { %v3614_v40 = vpop.xlane.xlu1 %3613 }
 0xcc2   :  { %v3605_v11 = vpop.xlane.xlu0 %3604 }
 0xcc3   :  { %6511 = vrcp.f32 %v3605_v11  ;;  %v5023_v11 = vld [vmem:[%s7905_s7 + $0x70] sm:$0xff] }
 0xcc4   :  { %v6506_v10 = vpop.eup %6505  ;;  %6513 = vrcp.f32 %v3614_v40  ;;  %v6196_v40 = vpack.c.bf16 %v5022_v57, %v5021_v24 }
 0xcc5   :  { %v3620_v38 = vpop.xlane.xlu1 %3619  ;;  %v3658_v44 = vmul.f32 %v6506_v10, %v7611_v61 }
 0xcc6   :  { %v3611_v5 = vpop.xlane.xlu0 %3610 }
 0xcc7   :  { %6515 = vrcp.f32 %v3611_v5 }
 0xcc8   :  { %v6508_v15 = vpop.eup %6507  ;;  %6517 = vrcp.f32 %v3620_v38  ;;  %v5024_v38 = vld [vmem:[%s7905_s7 + $0x78] sm:$0xff] }
 0xcc9   :  { %v3657_v12 = vmul.f32 %v6508_v15, %v7619_v59  ;;  %v3626_v42 = vpop.xlane.xlu1 %3625  ;;  %v6510_v35 = vpop.eup %6509  ;;  %v6200_v10 = vpack.c.bf16 %v5024_v38, %v5023_v11  ;;  %v5036_v11 = vld [vmem:[%s7907_s9 + $0x68] sm:$0xff] }
 0xcca   :  { %v3617_v16 = vpop.xlane.xlu0 %3616  ;;  %v3660_v61 = vmul.f32 %v6510_v35, %v7617_v14 }
 0xccb   :  { %5741 = vmatprep.mubr.msk.f32.mxu1 %vm424_vm1, %v3657_v12  ;;  %6519 = vrcp.f32 %v3617_v16 }
 0xccc   :  { %5742 = vmatmul.mubr.msk.f32.vlgmr.msra.gmra.mrb[48].mxu1 %vm424_vm1, %v3658_v44  ;;  %6521 = vrcp.f32 %v3626_v42 }
 0xccd   :  { %6171 = vmatpush3.bf16.msra.mxu1 %v6168_v6  ;;  %v6512_v56 = vpop.eup %6511  ;;  %v3632_v31 = vpop.xlane.xlu1 %3631 }
 0xcce   :  { %6177 = vmatprep.subr.bf16.mxu1 %v6176_v26  ;;  %v3623_v48 = vpop.xlane.xlu0 %3622  ;;  %v3659_v59 = vmul.f32 %v6512_v56, %v7629_v62  ;;  %v6514_v36 = vpop.eup %6513 }
 0xccf   :  { %6523 = vrcp.f32 %v3623_v48  ;;  %v3662_v0 = vmul.f32 %v6514_v36, %v7627_v53 }
 0xcd0   :  { %5748 = vmatprep.mubr.msk.f32.mxu0 %vm424_vm1, %v3659_v59 }
 0xcd1   :  { %v6516_v60 = vpop.eup %6515  ;;  %5749 = vmatmul.mubr.msk.f32.vlgmr.msra.gmra.mrb[38].mxu0 %vm424_vm1, %v3660_v61  ;;  %v3638_v25 = vpop.xlane.xlu1 %3637 }
 0xcd2   :  { %6175 = vmatpush3.bf16.msra.mxu0 %v7430_v33  ;;  %v3629_v45 = vpop.xlane.xlu0 %3628  ;;  %v3661_v47 = vmul.f32 %v6516_v60, %v7639_v28  ;;  %v6518_v51 = vpop.eup %6517 }
 0xcd3   :  { %6525 = vrcp.f32 %v3629_v45  ;;  %v3664_v28 = vmul.f32 %v6518_v51, %v7637_v50 }
 0xcd4   :  { %6527 = vrcp.f32 %v3632_v31  ;;  %5755 = vmatprep.mubr.msk.f32.mxu1 %vm424_vm1, %v3661_v47 }
 0xcd5   :  { %v6520_v14 = vpop.eup %6519  ;;  %5756 = vmatmul.mubr.msk.f32.vlgmr.msra.gmra.mrb[50].mxu1 %vm424_vm1, %v3662_v0  ;;  %v6378_v62 = vpop.permute.xlu1 %6377  ;;  %6529 = vrcp.f32 %v3638_v25 }
 0xcd6   :  { %6179 = vmatpush3.bf16.msra.mxu1 %v6176_v26  ;;  %v6380_v27 = vunpack.i.h.bf16 %v6378_v62  ;;  %v6379_v1 = vunpack.i.l.bf16 %v6378_v62  ;;  %v3635_v17 = vpop.xlane.xlu0 %3634  ;;  %v3663_v33 = vmul.f32 %v6520_v14, %v7648_v34  ;;  %v6522_v53 = vpop.eup %6521 }
 0xcd7   :  { %6531 = vrcp.f32 %v3635_v17  ;;  %v3666_v6 = vmul.f32 %v6522_v53, %v7646_v23 }
 0xcd8   :  { %v6184_v18 = vpack.c.bf16 %v6380_v27, %v6379_v1  ;;  %5762 = vmatprep.mubr.msk.f32.mxu0 %vm424_vm1, %v3663_v33 }
 0xcd9   :  { %v6524_v55 = vpop.eup %6523  ;;  %5763 = vmatmul.mubr.msk.f32.vlgmr.msra.gmra.mrb[40].mxu0 %vm424_vm1, %v3664_v28 }
 0xcda   :  { %v6373_v54 = vpop.permute.xlu0 %6372  ;;  %6185 = vmatprep.subr.bf16.mxu1 %v6184_v18  ;;  %v3665_v58 = vmul.f32 %v6524_v55, %v7656_v2 }
 0xcdb   :  { %v6375_v39 = vunpack.i.h.bf16 %v6373_v54  ;;  %v6374_v8 = vunpack.i.l.bf16 %v6373_v54 }
 0xcdc   :  { %5769 = vmatprep.mubr.msk.f32.mxu1 %vm424_vm1, %v3665_v58 }
 0xcdd   :  { %v6526_v34 = vpop.eup %6525  ;;  %v6180_v50 = vpack.c.bf16 %v6375_v39, %v6374_v8  ;;  %5770 = vmatmul.mubr.msk.f32.vlgmr.msra.gmra.mrb[52].mxu1 %vm424_vm1, %v3666_v6 }
 0xcde   :  { %v6528_v41 = vpop.eup %6527  ;;  %6187 = vmatpush3.bf16.msra.mxu1 %v6184_v18  ;;  %v3667_v20 = vmul.f32 %v6526_v34, %v7664_v63  ;;  %v5017_v63 = vld [vmem:[%s7905_s7 + $0x40] sm:$0xff] }
 0xcdf   :  { %6181 = vmatprep.subr.bf16.mxu0 %v6180_v50  ;;  %v6530_v4 = vpop.eup %6529  ;;  %v3668_v23 = vmul.f32 %v6528_v41, %v7654_v21  ;;  %v5019_v21 = vld [vmem:[%s7905_s7 + $0x50] sm:$0xff] }
 0xce0   :  { %6183 = vmatpush3.bf16.msra.mxu0 %v6180_v50  ;;  %5776 = vmatprep.mubr.msk.f32.mxu0 %vm424_vm1, %v3667_v20  ;;  %v3670_v7 = vmul.f32 %v6530_v4, %v7662_v32  ;;  %v5020_v32 = vld [vmem:[%s7905_s7 + $0x58] sm:$0xff] }
 0xce1   :  { %v6532_v2 = vpop.eup %6531  ;;  %v6192_v3 = vpack.c.bf16 %v5020_v32, %v5019_v21  ;;  %v5032_v32 = vld [vmem:[%s7907_s9 + $0x48] sm:$0xff] }
 0xce2   :  { %v3669_v19 = vmul.f32 %v6532_v2, %v7670_v30  ;;  %v6188_v30 = vpack.c.bf16 %v5018_v9, %v5017_v63 }
 0xce3   :  { %5777 = vmatmul.mubr.msk.f32.vlgmr.msra.gmra.mrb[42].mxu0 %vm424_vm1, %v3668_v23 }
 0xce4   :  { %5783 = vmatprep.mubr.msk.f32.mxu1 %vm424_vm1, %v3669_v19  ;;  %6189 = vmatprep.subr.bf16.mxu0 %v6188_v30 }
 0xce5   :  { %5784 = vmatmul.mubr.msk.f32.vlgmr.msra.gmra.mrb[54].mxu1 %vm424_vm1, %v3670_v7  ;;  %6191 = vmatpush3.bf16.msra.mxu0 %v6188_v30  ;;  %v5031_v30 = vld [vmem:[%s7907_s9 + $0x40] sm:$0xff] }
 0xce6   :  { %6193 = vmatprep.subr.bf16.mxu0 %v6192_v3 }
 0xce9   :  { %6195 = vmatpush3.bf16.msra.mxu0 %v6192_v3 }
 0xcea   :  { %6197 = vmatprep.subr.bf16.mxu0 %v6196_v40 }
 0xced   :  { %6199 = vmatpush3.bf16.msra.mxu0 %v6196_v40  ;;  %v5035_v40 = vld [vmem:[%s7907_s9 + $0x60] sm:$0xff] }
 0xcee   :  { %6201 = vmatprep.subr.bf16.mxu0 %v6200_v10  ;;  %v6212_v38 = vpack.c.bf16 %v5036_v11, %v5035_v40 }
 0xcf1   :  { %6203 = vmatpush3.bf16.msra.mxu0 %v6200_v10  ;;  %v5037_v10 = vld [vmem:[%s7907_s9 + $0x70] sm:$0xff] }
 0xd51   :  { %v5736_v37 = vpop.f32.mrb[36].mxu0 }
 0xd52   :  { %v3743_v52 = vpop.f32.mrb[37].mxu0 }
 0xd9f   :  { %v5743_v5 = vpop.f32.mrb[48].mxu1 }
 0xda0   :  { %4019 = vrot.lane.b32.xlu1 %v5743_v5, %s6580_s14  ;;  %v3832_v15 = vpop.f32.mrb[49].mxu1  ;;  %v5038_v5 = vld [vmem:[%s7907_s9 + $0x78] sm:$0xff] }
 0xda1   :  { %4017 = vrot.lane.b32.xlu0 %v3832_v15, %s6580_s14  ;;  %v6216_v15 = vpack.c.bf16 %v5038_v5, %v5037_v10 }
 0xda4   :  { %v5750_v49 = vpop.f32.mrb[38].mxu0 }
 0xda5   :  { %v3919_v46 = vpop.f32.mrb[39].mxu0  ;;  %4027 = vrot.lane.b32.xlu1 %v5750_v49, %s6581_s1  ;;  %v5043_v49 = vld [vmem:[%s7908_s10 + $0x80] sm:$0xff] }
 0xda6   :  { %4025 = vrot.lane.b32.xlu0 %v3919_v46, %s6581_s1  ;;  %v5044_v46 = vld [vmem:[%s7908_s10 + $0x88] sm:$0xff] }
 0xda8   :  { %v5757_v12 = vpop.f32.mrb[50].mxu1 }
 0xda9   :  { %4035 = vrot.lane.b32.xlu1 %v5757_v12, %s6582_s2  ;;  %v4006_v44 = vpop.f32.mrb[51].mxu1  ;;  %v5045_v12 = vld [vmem:[%s7908_s10 + $0x90] sm:$0xff] }
 0xdaa   :  { %4033 = vrot.lane.b32.xlu0 %v4006_v44, %s6582_s2  ;;  %v6220_v44 = vpack.c.bf16 %v5044_v46, %v5043_v49 }
 0xdac   :  { %v5764_v42 = vpop.f32.mrb[40].mxu0  ;;  %6221 = vmatprep.subr.bf16.mxu0 %v6220_v44 }
 0xdad   :  { %v4117_v16 = vpop.f32.mrb[41].mxu0 }
 0xdb0   :  { %v5771_v26 = vpop.f32.mrb[52].mxu1 }
 0xdb1   :  { %4393 = vrot.lane.b32.xlu1 %v5771_v26, %s6580_s14  ;;  %v4206_v35 = vpop.f32.mrb[53].mxu1  ;;  %v5047_v26 = vld [vmem:[%s7908_s10 + $0xa0] sm:$0xff] }
 0xdb2   :  { %4391 = vrot.lane.b32.xlu0 %v4206_v35, %s6580_s14  ;;  %v5048_v35 = vld [vmem:[%s7908_s10 + $0xa8] sm:$0xff] }
 0xdb6   :  { %v5778_v56 = vpop.f32.mrb[42].mxu0 }
 0xdb7   :  { %v4293_v31 = vpop.f32.mrb[43].mxu0  ;;  %4401 = vrot.lane.b32.xlu1 %v5778_v56, %s6581_s1  ;;  %v6228_v56 = vpack.c.bf16 %v5048_v35, %v5047_v26 }
 0xdb8   :  { %4399 = vrot.lane.b32.xlu0 %v4293_v31, %s6581_s1  ;;  %v5785_v48 = vpop.f32.mrb[54].mxu1  ;;  %v5049_v31 = vld [vmem:[%s7908_s10 + $0xb0] sm:$0xff] }
 0xdb9   :  { %v4380_v59 = vpop.f32.mrb[55].mxu1 }
 0xdbb   :  { %4409 = vrot.lane.b32.xlu1 %v5785_v48, %s6582_s2  ;;  %v5050_v48 = vld [vmem:[%s7908_s10 + $0xb8] sm:$0xff] }
 0xdbc   :  { %4407 = vrot.lane.b32.xlu0 %v4380_v59, %s6582_s2  ;;  %v6232_v59 = vpack.c.bf16 %v5050_v48, %v5049_v31 }
 0xe12   :  { %v4020_v61 = vpop.permute.xlu1 %4019 }
 0xe13   :  { %v4018_v36 = vpop.permute.xlu0 %4017  ;;  %v4040_v0 = vsel %vm424_vm1, %v5736_v37, %v4020_v61  ;;  %v6204_v37 = vpack.c.bf16 %v5032_v32, %v5031_v30  ;;  %v5051_v61 = vld [vmem:[%s7908_s10 + $0xc0] sm:$0xff]  ;;  %v5057_v32 = vld [vmem:[%s7908_s10 + $0xf0] sm:$0xff] }
 0xe14   :  { %v4039_v45 = vsel %vm424_vm1, %v3743_v52, %v4018_v36  ;;  %v5034_v52 = vld [vmem:[%s7907_s9 + $0x58] sm:$0xff]  ;;  %v5052_v36 = vld [vmem:[%s7908_s10 + $0xc8] sm:$0xff] }
 0xe15   :  { %6205 = vmatprep.subr.bf16.mxu1 %v6204_v37 }
 0xe16   :  { %6207 = vmatpush3.bf16.msra.mxu1 %v6204_v37 }
 0xe17   :  { %v4028_v60 = vpop.permute.xlu1 %4027 }
 0xe18   :  { %v4026_v25 = vpop.permute.xlu0 %4025  ;;  %v4042_v62 = vsel %vm1691_vm3, %v4040_v0, %v4028_v60  ;;  %v6236_v60 = vpack.c.bf16 %v5052_v36, %v5051_v61  ;;  %v5055_v0 = vld [vmem:[%s7908_s10 + $0xe0] sm:$0xff] }
 0xe19   :  { %v4041_v51 = vsel %vm1691_vm3, %v4039_v45, %v4026_v25  ;;  %v5053_v25 = vld [vmem:[%s7908_s10 + $0xd0] sm:$0xff]  ;;  %v5054_v45 = vld [vmem:[%s7908_s10 + $0xd8] sm:$0xff] }
 0xe1b   :  { %v4036_v47 = vpop.permute.xlu1 %4035 }
 0xe1c   :  { %v4034_v14 = vpop.permute.xlu0 %4033  ;;  %v4044_v1 = vsel %vm1694_vm4, %v4042_v62, %v4036_v47  ;;  %v6240_v47 = vpack.c.bf16 %v5054_v45, %v5053_v25 }
 0xe1d   :  { %v4043_v27 = vsel %vm1694_vm4, %v4041_v51, %v4034_v14  ;;  %v5056_v51 = vld [vmem:[%s7908_s10 + $0xe8] sm:$0xff] }
 0xe1e   :  { %5802 = vmatprep.mubr.msk.f32.mxu0 %vm93_vm0, %v4043_v27  ;;  %v6244_v14 = vpack.c.bf16 %v5056_v51, %v5055_v0 }
 0xe1f   :  { %5803 = vmatmul.mubr.msk.f32.vlgmr.msra.gmra.mrb[44].mxu0 %vm93_vm0, %v4044_v1 }
 0xe20   :  { %6223 = vmatpush3.bf16.msra.mxu0 %v6220_v44 }
 0xe23   :  { %v4394_v17 = vpop.permute.xlu1 %4393 }
 0xe24   :  { %v4392_v33 = vpop.permute.xlu0 %4391  ;;  %v4414_v54 = vsel %vm424_vm1, %v5764_v42, %v4394_v17  ;;  %v5046_v42 = vld [vmem:[%s7908_s10 + $0x98] sm:$0xff] }
 0xe25   :  { %v4413_v18 = vsel %vm424_vm1, %v4117_v16, %v4392_v33  ;;  %v6224_v16 = vpack.c.bf16 %v5046_v42, %v5045_v12 }
 0xe27   :  { %6225 = vmatprep.subr.bf16.mxu0 %v6224_v16 }
 0xe28   :  { %6227 = vmatpush3.bf16.msra.mxu0 %v6224_v16 }
 0xe29   :  { %v4402_v28 = vpop.permute.xlu1 %4401  ;;  %6229 = vmatprep.subr.bf16.mxu0 %v6228_v56 }
 0xe2a   :  { %v4400_v53 = vpop.permute.xlu0 %4399  ;;  %v4416_v39 = vsel %vm1691_vm3, %v4414_v54, %v4402_v28  ;;  %v5030_v54 = vld [vmem:[%s7906_s8 + $0x1] ss:$0 sm:$0xff] }
 0xe2b   :  { %v4415_v58 = vsel %vm1691_vm3, %v4413_v18, %v4400_v53 }
 0xe2c   :  { %6231 = vmatpush3.bf16.msra.mxu0 %v6228_v56 }
 0xe2d   :  { %v4410_v55 = vpop.permute.xlu1 %4409  ;;  %6233 = vmatprep.subr.bf16.mxu0 %v6232_v59 }
 0xe2e   :  { %v4408_v6 = vpop.permute.xlu0 %4407  ;;  %v4418_v34 = vsel %vm1694_vm4, %v4416_v39, %v4410_v55 }
 0xe2f   :  { %v4417_v8 = vsel %vm1694_vm4, %v4415_v58, %v4408_v6 }
 0xe30   :  { %5805 = vmatprep.mubr.msk.f32.mxu0 %vm93_vm0, %v4417_v8  ;;  %6235 = vmatpush3.bf16.msra.mxu0 %v6232_v59 }
 0xe31   :  { %5806 = vmatmul.mubr.msk.f32.gmra.mrb[46].mxu0 %vm93_vm0, %v4418_v34  ;;  %6237 = vmatprep.subr.bf16.mxu0 %v6236_v60 }
 0xe34   :  { %6239 = vmatpush3.bf16.msra.mxu0 %v6236_v60 }
 0xe35   :  { %6241 = vmatprep.subr.bf16.mxu0 %v6240_v47 }
 0xe38   :  { %6243 = vmatpush3.bf16.msra.mxu0 %v6240_v47 }
 0xe39   :  { %6245 = vmatprep.subr.bf16.mxu0 %v6244_v14 }
 0xe3c   :  { %6247 = vmatpush3.bf16.msra.mxu0 %v6244_v14 }
 0xef2   :  { %v5804_v50 = vpop.f32.mrb[44].mxu0 }
 0xef3   :  { %v7765_v41 = vadd.f32 %v5804_v50, %v7304_v13  ;;  %v4506_v20 = vpop.f32.mrb[45].mxu0 }
 0xef4   :  { %v7768_v4 = vadd.f32 %v4506_v20, %v7307_v22 }
 0xef5   :  { %v4532_v2 = vmul.f32 %v7765_v41, %v7765_v41 }
 0xef6   :  { %v4531_v23 = vmul.f32 %v7768_v4, %v7768_v4 }
 0xef7   :  { %v4538_v19 = vsel %vm93_vm0, %v4532_v2, 0.0 }
 0xef8   :  { %4539 = vadd.xlane.f32.xlu1 %v4538_v19  ;;  %v4535_v7 = vsel %vm93_vm0, %v4531_v23, 0.0 }
 0xef9   :  { %4536 = vadd.xlane.f32.xlu0 %v4535_v7 }
 0xf04   :  { %v5807_v63 = vpop.f32.mrb[46].mxu0 }
 0xf05   :  { %v4516_v9 = vpop.f32.mrb[47].mxu0  ;;  %v7777_v13 = vadd.f32 %v5807_v63, %v7316_v43 }
 0xf06   :  { %v7780_v22 = vadd.f32 %v4516_v9, %v7319_v29  ;;  %v5033_v29 = vld [vmem:[%s7907_s9 + $0x50] sm:$0xff] }
 0xf07   :  { %v4534_v43 = vmul.f32 %v7777_v13, %v7777_v13  ;;  %v6208_v57 = vpack.c.bf16 %v5034_v52, %v5033_v29 }
 0xf08   :  { %v4533_v21 = vmul.f32 %v7780_v22, %v7780_v22 }
 0xf09   :  { %v4544_v24 = vsel %vm93_vm0, %v4534_v43, 0.0  ;;  %6209 = vmatprep.subr.bf16.mxu1 %v6208_v57 }
 0xf0a   :  { %v4541_v3 = vsel %vm93_vm0, %v4533_v21, 0.0  ;;  %6211 = vmatpush3.bf16.msra.mxu1 %v6208_v57 }
 0xf0b   :  { %4542 = vadd.xlane.f32.xlu0 %v4541_v3  ;;  %6213 = vmatprep.subr.bf16.mxu1 %v6212_v38  ;;  %v5058_v3 = vld [vmem:[%s7908_s10 + $0xf8] sm:$0xff] }
 0xf0c   :  { %v6248_v43 = vpack.c.bf16 %v5058_v3, %v5057_v32 }
 0xf0e   :  { %6215 = vmatpush3.bf16.msra.mxu1 %v6212_v38  ;;  %6249 = vmatprep.subr.bf16.mxu0 %v6248_v43 }
 0xf0f   :  { %4545 = vadd.xlane.f32.xlu0 %v4544_v24  ;;  %6217 = vmatprep.subr.bf16.mxu1 %v6216_v15 }
 0xf10   :  { %6251 = vmatpush3.bf16.msra.mxu0 %v6248_v43 }
 0xf12   :  { %6219 = vmatpush3.bf16.msra.mxu1 %v6216_v15 }
 0xf85   :  { %v4540_v62 = vpop.xlane.xlu1 %4539 }
 0xf86   :  { %v4548_v27 = vmul.f32 0.015625, %v4540_v62  ;;  %v4537_v1 = vpop.xlane.xlu0 %4536 }
 0xf87   :  { %v4547_v17 = vmul.f32 0.015625, %v4537_v1 }
 0xf88   :  { %v4552_v33 = vadd.f32 1e-06, %v4548_v27 }
 0xf89   :  { %v4551_v28 = vadd.f32 1e-06, %v4547_v17 }
 0xf8a   :  { %6533 = vrsqrt.f32 %v4552_v33 }
 0xf8b   :  { %6535 = vrsqrt.f32 %v4551_v28 }
 0xf94   :  { %v6534_v53 = vpop.eup %6533 }
 0xf95   :  { %v6536_v18 = vpop.eup %6535  ;;  %v4560_v55 = vmul.f32 %v6534_v53, %v7765_v41 }
 0xf96   :  { %v4559_v58 = vmul.f32 %v6536_v18, %v7768_v4 }
 0xf97   :  { %v4570_v34 = vmul.f32 %v5030_v54, %v4560_v55 }
 0xf98   :  { %v4543_v6 = vpop.xlane.xlu0 %4542  ;;  %v4569_v39 = vmul.f32 %v5030_v54, %v4559_v58 }
 0xf99   :  { %v4549_v8 = vmul.f32 0.015625, %v4543_v6 }
 0xf9a   :  { %5824 = vmatprep.mubr.msk.f32.mxu1 %vm93_vm0, %v4569_v39 }
 0xf9b   :  { %v4553_v50 = vadd.f32 1e-06, %v4549_v8  ;;  %5825 = vmatmul.mubr.msk.f32.vlgmr.msra.gmra.mrb[56].mxu1 %vm93_vm0, %v4570_v34 }
 0xf9c   :  { %v4546_v20 = vpop.xlane.xlu0 %4545 }
 0xf9d   :  { %6537 = vrsqrt.f32 %v4553_v50  ;;  %v4550_v2 = vmul.f32 0.015625, %v4546_v20 }
 0xf9f   :  { %v4554_v23 = vadd.f32 1e-06, %v4550_v2 }
 0xfa1   :  { %6539 = vrsqrt.f32 %v4554_v23 }
 0xfa7   :  { %v6538_v19 = vpop.eup %6537 }
 0xfa8   :  { %v4561_v7 = vmul.f32 %v6538_v19, %v7780_v22 }
 0xfaa   :  { %v4571_v63 = vmul.f32 %v5030_v54, %v4561_v7 }
 0xfab   :  { %v6540_v9 = vpop.eup %6539 }
 0xfac   :  { %5827 = vmatprep.mubr.msk.f32.mxu1 %vm93_vm0, %v4571_v63  ;;  %v4562_v21 = vmul.f32 %v6540_v9, %v7777_v13 }
 0xfae   :  { %v4572_v30 = vmul.f32 %v5030_v54, %v4562_v21 }
 0xfb0   :  { %5828 = vmatmul.mubr.msk.f32.gmra.mrb[58].mxu1 %vm93_vm0, %v4572_v30 }
0x106e   :  { %v5826_v37 = vpop.f32.mrb[56].mxu1 }
0x106f   :  { %v4660_v29 = vpop.f32.mrb[57].mxu1  ;;  %v4680_v24 = vmax.f32 %v5826_v37, 0.0 }
0x1070   :  { %v4679_v52 = vmax.f32 %v4660_v29, 0.0 }
0x1072   :  { %5862 = vmatprep.mubr.f32.mxu0 %v4679_v52 }
0x1073   :  { %5863 = vmatmul.mubr.f32.vlgmr.msra.gmra.mrb[48].mxu0 %v4680_v24 }
0x1083   :  { %v5829_v57 = vpop.f32.mrb[58].mxu1 }
0x1084   :  { %v4670_v40 = vpop.f32.mrb[59].mxu1  ;;  %v4682_v38 = vmax.f32 %v5829_v57, 0.0 }
0x1085   :  { %v4681_v11 = vmax.f32 %v4670_v40, 0.0 }
0x1087   :  { %5865 = vmatprep.mubr.f32.mxu0 %v4681_v11 }
0x1088   :  { %5866 = vmatmul.mubr.f32.gmra.mrb[50].mxu0 %v4682_v38 }
0x1146   :  { %v5864_v10 = vpop.f32.mrb[48].mxu0 }
0x1147   :  { %v4786_v5 = vadd.f32 %v5864_v10, %v7765_v41  ;;  %v4766_v15 = vpop.f32.mrb[49].mxu0 }
0x1148   :  { %v4785_v49 = vadd.f32 %v4766_v15, %v7768_v4 }
0x1149   :  { %v4791_v46 = vmul.f32 %v4786_v5, %v4786_v5 }
0x114a   :  { %v4790_v12 = vmul.f32 %v4785_v49, %v4785_v49 }
0x114b   :  { %v4797_v44 = vsel %vm93_vm0, %v4791_v46, 0.0 }
0x114c   :  { %4798 = vadd.xlane.f32.xlu1 %v4797_v44  ;;  %v4794_v42 = vsel %vm93_vm0, %v4790_v12, 0.0 }
0x114d   :  { %4795 = vadd.xlane.f32.xlu0 %v4794_v42 }
0x115b   :  { %v5867_v16 = vpop.f32.mrb[50].mxu0 }
0x115c   :  { %v4788_v26 = vadd.f32 %v5867_v16, %v7777_v13  ;;  %v4776_v35 = vpop.f32.mrb[51].mxu0 }
0x115d   :  { %v4787_v56 = vadd.f32 %v4776_v35, %v7780_v22  ;;  %v5059_v22 = vld [vmem:[%s7909_s11] ss:$0 sm:$0xff]  ;;  %s6583_s11 = smov [#allocation2]  }
0x115e   :  { %v4793_v31 = vmul.f32 %v4788_v26, %v4788_v26  ;;  %s4841_s22 = sshll.u32 %s6583_s11, 4  ;;  %s4842_s22 = int_to_ptr.vmem [resolvable:$true] %s4841_s22 }
0x115f   :  { %v4792_v48 = vmul.f32 %v4787_v56, %v4787_v56  ;;  %s6553_s9 = scalar_lea.vmem %s4842_s22, 512  ;;  %p6558_p1 = scmp.lt.s32.totalorder %s4842_s22, %s4842_s22 }
0x1160   :  { %v4803_v41 = vsel %vm93_vm0, %v4793_v31, 0.0  ;;  %p6554_p0 = scmp.ne.s32.totalorder %s4842_s22, %s6553_s9  ;;  %p6559_p2 = scmp.lt.s32.totalorder %s6553_s9, %s6553_s9 }
0x1161   :  { %4804 = vadd.xlane.f32.xlu1 %v4803_v41  ;;  %v4800_v4 = vsel %vm93_vm0, %v4792_v48, 0.0 }
0x1162   :  { %4801 = vadd.xlane.f32.xlu0 %v4800_v4  ;;  %p6560_p3 = por %p6559_p2, %p6558_p1 }
0x1164   :  { %p6561_p4 = pnand %p6560_p3, %p6554_p0 }
0x11d9   :  { %v4799_v59 = vpop.xlane.xlu1 %4798 }
0x11da   :  { %v4807_v61 = vmul.f32 0.015625, %v4799_v59  ;;  %v4796_v36 = vpop.xlane.xlu0 %4795 }
0x11db   :  { %v4806_v60 = vmul.f32 0.015625, %v4796_v36 }
0x11dc   :  { %v4811_v25 = vadd.f32 1e-06, %v4807_v61 }
0x11dd   :  { %v4810_v45 = vadd.f32 1e-06, %v4806_v60 }
0x11de   :  { %6541 = vrsqrt.f32 %v4811_v25 }
0x11df   :  { %6543 = vrsqrt.f32 %v4810_v45 }
0x11e8   :  { %v6542_v13 = vpop.eup %6541 }
0x11e9   :  { %v6544_v47 = vpop.eup %6543  ;;  %v4819_v0 = vmul.f32 %v6542_v13, %v4786_v5 }
0x11ea   :  { %v4818_v51 = vmul.f32 %v6544_v47, %v4785_v49 }
0x11eb   :  { %v4829_v14 = vmul.f32 %v5059_v22, %v4819_v0 }
0x11ec   :  { %v4828_v62 = vmul.f32 %v5059_v22, %v4818_v51 }
0x11ed   :  { %4833 = vst.msk [vmem:[#allocation2 + $0x8] sm:$0xff] %vm93_vm0, %v4829_v14 }
0x11ee   :  { %4832 = vst.msk [vmem:[#allocation2] sm:$0xff] %vm93_vm0, %v4828_v62  ;;  %v4805_v27 = vpop.xlane.xlu1 %4804 }
0x11ef   :  { %v4809_v1 = vmul.f32 0.015625, %v4805_v27  ;;  %v4802_v17 = vpop.xlane.xlu0 %4801 }
0x11f0   :  { %v4808_v33 = vmul.f32 0.015625, %v4802_v17 }
0x11f1   :  { %v4813_v28 = vadd.f32 1e-06, %v4809_v1 }
0x11f2   :  { %v4812_v53 = vadd.f32 1e-06, %v4808_v33 }
0x11f3   :  { %6545 = vrsqrt.f32 %v4813_v28 }
0x11f4   :  { %6547 = vrsqrt.f32 %v4812_v53 }
0x11fd   :  { %v6546_v18 = vpop.eup %6545 }
0x11fe   :  { %v6548_v55 = vpop.eup %6547  ;;  %v4821_v54 = vmul.f32 %v6546_v18, %v4788_v26 }
0x11ff   :  { %v4820_v58 = vmul.f32 %v6548_v55, %v4787_v56 }
0x1200   :  { %v4831_v6 = vmul.f32 %v5059_v22, %v4821_v54 }
0x1201   :  { %v4830_v39 = vmul.f32 %v5059_v22, %v4820_v58 }
0x1202   :  { %4835 = vst.msk [vmem:[#allocation2 + $0x18] sm:$0xff] %vm93_vm0, %v4831_v6 }
0x1203   :  { %4834 = vst.msk [vmem:[#allocation2 + $0x10] sm:$0xff] %vm93_vm0, %v4830_v39 }
0x1204   :  { %6564 = shalt.err (!%p6561_p4)
}
0x1205   :  { %s6565_s7 = scalar_lea.hbm %s7910_s12, 512 }
0x1206   :  { %p6566_p5 = scmp.ne.s32.totalorder %s7910_s12, %s6565_s7  ;;  %p6569_p6 = scmp.lt.u32.totalorder %s6565_s7, %s7910_s12 }
0x1208   :  { %p6571_p7 = pnand %p6569_p6, %p6566_p5 }
0x120a   :  { %6574 = shalt.err (!%p6571_p7)
}
0x120b   :  { %s6584_s28 = smov 128   ;;  %s6585_s29 = smov 8  }
0x120c   :  { %4847 = dma.vmem_to_hbm [thread:$0]  %s4842_s22, 512, %s7910_s12, [#allocation3], %s6584_s28, %s6584_s28, %s6585_s29  }
0x120d   :  { %6575 = dma.done.wait [#allocation3], 512  }
0x120e   :  { %6576 = vsyncadd [#allocation3], 4294966784 }
0x120f   :  { %4851 = vsyncpa [#allocation3], 1 }

</bundles_post_ra>
